<compile_context>
chip_gen: v5e
topology: v5e:2x2
jax: 0.10.0
libtpu: 0.0.40
codegen_flags: <defaults>
</compile_context>

<pallas_src>
import math
from functools import partial

import numpy as np
import jax
import jax.numpy as jnp
from jax import lax
from jax.experimental import pallas as pl
from jax.experimental.pallas import tpu as pltpu


# ----------------------------- Pallas kernel -----------------------------

def _tgcn_fused_kernel(x_ref, big_adj_ref, w_ref, const_ref, misc_ref,
                       state_ref, out_ref, *,
                       num_patches, bn, d, ib, shift, plen_pad,
                       use_stencil, c_self, c_nbr):
    d2 = 2 * d
    owod = out_ref.shape[1]

    # ---- prologue (off the serial chain): value-embedding + x-path projection + x-side
    #      graph conv for ALL timesteps as two MXU matmuls over host-folded weights.
    ax = jnp.dot(big_adj_ref[...], x_ref[...].astype(jnp.bfloat16),
                 preferred_element_type=jnp.float32)                     # (P*BN, plen_pad)
    w_comb = w_ref[0:plen_pad, :]                                        # (plen_pad, 3D) bf16
    axp_all = jnp.dot(ax.astype(jnp.bfloat16), w_comb,
                      preferred_element_type=jnp.float32) + const_ref[...]   # (P*BN, 3D) f32

    # state-path weights: loaded once, already bf16 (loop-invariant, no per-step casts)
    wsg = w_ref[plen_pad:plen_pad + d, 0:d2]                             # (D, 2D): r|u gates
    wsc = w_ref[plen_pad + d:plen_pad + 2 * d, 0:d]                      # (D, D) : candidate

    if use_stencil:
        # Ring normalized Laplacian on the node-major fold is circulant with shift B:
        # adj @ v == c_self*v + c_nbr*(roll(v,+B) + roll(v,-B)).  XLU + VPU only (no MXU).
        def gconv(v):
            return c_self * v + c_nbr * (pltpu.roll(v, shift, axis=0) +
                                         pltpu.roll(v, bn - shift, axis=0))
    else:
        adj = w_ref[plen_pad + 2 * d:plen_pad + 2 * d + bn, 0:bn]        # (BN, BN) bf16 fallback
        def gconv(v):
            return jnp.dot(adj, v.astype(jnp.bfloat16),
                           preferred_element_type=jnp.float32)

    # ---- serial graph-conv GRU recurrence (fully unrolled, axp stays in registers) ----
    s = jnp.zeros((bn, d), jnp.float32)
    for t in range(num_patches):
        axp = axp_all[t * bn:(t + 1) * bn, :]                            # tile-aligned static slice
        gs = jnp.dot(gconv(s).astype(jnp.bfloat16), wsg,
                     preferred_element_type=jnp.float32)
        gates = pl.reciprocal(1.0 + jnp.exp(-(axp[:, :d2] + gs)), approx=True)
        r, u = gates[:, :d], gates[:, d:]
        cs = jnp.dot(gconv(r * s).astype(jnp.bfloat16), wsc,
                     preferred_element_type=jnp.float32)
        c = jnp.tanh(axp[:, d2:] + cs)
        s = u * s + (1.0 - u) * c
    state_ref[...] = s

    # ---- epilogue: IB reparameterization + output Linear (fused, no extra launch) ----
    misc = misc_ref[...]
    eps = misc[0:bn, 0:ib]
    w_out = misc[bn:bn + ib, 0:owod].astype(jnp.bfloat16)
    b_out = misc[bn + ib:bn + ib + 1, 0:owod]
    mu = s[:, :ib]
    tt = s[:, ib:]
    std = jnp.maximum(tt, 0.0) + jnp.log(1.0 + jnp.exp(-jnp.abs(tt)))    # stable softplus
    z = mu + eps * std
    out_ref[...] = jnp.dot(z.astype(jnp.bfloat16), w_out,
                           preferred_element_type=jnp.float32) + b_out


def tgcn_forward(x_patches, big_adj, w_pack, const_axp, misc, *,
                 num_patches, bn, d, ib, shift, plen_pad, owod,
                 use_stencil, c_self, c_nbr):
    """Single fused forward pass.  Row layout of all (BN, .) arrays is node-major (n, b)."""
    kernel = partial(_tgcn_fused_kernel, num_patches=num_patches, bn=bn, d=d, ib=ib,
                     shift=shift, plen_pad=plen_pad,
                     use_stencil=use_stencil, c_self=c_self, c_nbr=c_nbr)
    m = num_patches * bn
    flops = (2 * m * m * plen_pad + 2 * m * plen_pad * 3 * d             # prologue matmuls
             + num_patches * (2 * bn * d * 2 * d + 2 * bn * d * d)       # recurrence matmuls
             + num_patches * 16 * bn * d                                 # stencil + gating VPU work
             + 2 * bn * ib * owod)                                       # output linear
    transcendentals = num_patches * (bn * 2 * d + bn * d) + 2 * bn * ib
    inputs = (x_patches, big_adj, w_pack, const_axp, misc)
    out_bytes = (bn * d + bn * owod) * 4
    bytes_accessed = int(sum(int(a.size) * a.dtype.itemsize for a in inputs) + out_bytes)

    return pl.pallas_call(
        kernel,
        out_shape=(jax.ShapeDtypeStruct((bn, d), jnp.float32),
                   jax.ShapeDtypeStruct((bn, owod), jnp.float32)),
        in_specs=[pl.BlockSpec(memory_space=pltpu.MemorySpace.VMEM) for _ in range(len(inputs))],
        out_specs=(pl.BlockSpec(memory_space=pltpu.MemorySpace.VMEM),
                   pl.BlockSpec(memory_space=pltpu.MemorySpace.VMEM)),
        cost_estimate=pl.CostEstimate(flops=int(flops),
                                      transcendentals=int(transcendentals),
                                      bytes_accessed=bytes_accessed),
    )(*inputs)


# ----------------------------- host-side setup -----------------------------

def normalized_laplacian_np(adj):
    n = adj.shape[0]
    a = adj + np.eye(n, dtype=adj.dtype)
    deg = a.sum(1)
    d_inv_sqrt = np.where(deg > 0, 1.0 / np.sqrt(deg), 0.0).astype(adj.dtype)
    return (a * d_inv_sqrt[None, :]).T * d_inv_sqrt[None, :]


def positional_encoding(embed_dim, max_len=100):
    pos = jnp.arange(max_len, dtype=jnp.float32)[:, None]
    div = jnp.exp(jnp.arange(0, embed_dim, 2, dtype=jnp.float32)
                  * (-math.log(10000.0) / embed_dim))
    pe = jnp.zeros((max_len, embed_dim), jnp.float32)
    pe = pe.at[:, 0::2].set(jnp.sin(pos * div))
    pe = pe.at[:, 1::2].set(jnp.cos(pos * div))
    return pe


def make_params(key, gru_units, output_window, output_dim, patch_len=12):
    D = gru_units
    ks = jax.random.split(key, 5)
    w_emb = jax.random.uniform(ks[0], (D, patch_len), jnp.float32,
                               -1.0 / math.sqrt(patch_len), 1.0 / math.sqrt(patch_len))
    in_sz = 2 * D
    w0 = math.sqrt(2.0 / (in_sz + 2 * D)) * jax.random.normal(ks[1], (in_sz, 2 * D), jnp.float32)
    w1 = math.sqrt(2.0 / (in_sz + D)) * jax.random.normal(ks[2], (in_sz, D), jnp.float32)
    b0 = jnp.zeros((2 * D,), jnp.float32)
    b1 = jnp.zeros((D,), jnp.float32)
    ib = D // 2
    owod = output_window * output_dim
    bound = 1.0 / math.sqrt(ib)
    w_out = jax.random.uniform(ks[3], (owod, ib), jnp.float32, -bound, bound)
    b_out = jax.random.uniform(ks[4], (owod,), jnp.float32, -bound, bound)
    return w_emb, w0, b0, w1, b1, w_out, b_out


# ----------------------------- pure-JAX reference (f32) -----------------------------

_HI = lax.Precision.HIGHEST


def patch_embedding_flow_ref(x, w_emb, pe, patch_len=12):
    # x: (B, T, N, 1) -> (B, P, N, D)   (torch: squeeze/permute/unfold/Linear/+PE/permute)
    B, T, N, _ = x.shape
    x = jnp.squeeze(x, -1).transpose(0, 2, 1)                  # (B, N, T)
    if T == 144:
        x = x.reshape(B, N, T // patch_len, patch_len)
    else:
        gap = 144 // T
        sz = patch_len // gap
        x = x.reshape(B, N, T // sz, sz)
        x = jnp.pad(x, ((0, 0), (0, 0), (0, 0), (0, patch_len - sz)))
    x = jnp.einsum('bnpl,dl->bnpd', x, w_emb, precision=_HI)   # Linear(patch_len, D, bias=False)
    P = x.shape[2]
    x = x + pe[None, None, :P, :]
    return x.transpose(0, 2, 1, 3)                             # (B, P, N, D)


def tgcn_recurrence_ref(inputs_tbnd, adj, w0, b0, w1, b1):
    P, B, N, D = inputs_tbnd.shape
    state = jnp.zeros((B, N * D), jnp.float32)

    def gc(x_t, st_flat, w, bias):
        st = st_flat.reshape(B, N, D)
        xs = jnp.concatenate([x_t, st], axis=2)                            # (B, N, 2D)
        ax = jnp.einsum('nm,bmf->bnf', adj, xs, precision=_HI)
        return (jnp.dot(ax.reshape(B * N, 2 * D), w, precision=_HI) + bias).reshape(B, N, -1)

    for t in range(P):
        x_t = inputs_tbnd[t]
        value = jax.nn.sigmoid(gc(x_t, state, w0, b0))
        r = value[..., :D].reshape(B, N * D)
        u = value[..., D:].reshape(B, N * D)
        c = jnp.tanh(gc(x_t, r * state, w1, b1)).reshape(B, N * D)
        state = u * state + (1.0 - u) * c
    return state.reshape(B, N, D)


# ----------------------------- main -----------------------------

if __name__ == "__main__":
    B, T, N = 2, 144, 8              # batch, raw time window, num_nodes
    D = 32                           # rnn_units (== d_model of patch embedding)
    patch_len = 12
    P = T // patch_len               # 12 patches
    OW, OD = 3, 1
    OWOD = OW * OD
    IB = D // 2
    BN = B * N
    PLEN_PAD = ((patch_len + 7) // 8) * 8   # 16

    key = jax.random.PRNGKey(0)
    k_data, k_param, k_eps = jax.random.split(key, 3)
    source = jax.random.normal(k_data, (B, T, N, 1), dtype=jnp.float32)

    # deterministic symmetric ring adjacency + normalized Laplacian (host, dense)
    idx = np.arange(N)
    adj_mx = np.zeros((N, N), np.float32)
    adj_mx[idx, (idx + 1) % N] = 1.0
    adj_mx[(idx + 1) % N, idx] = 1.0
    adj_norm = normalized_laplacian_np(adj_mx)

    # node-major batch fold: row = n*B + b  ->  block adjacency = kron(adj, I_B) (circulant, shift B)
    adj_blk = np.kron(adj_norm, np.eye(B, dtype=np.float32))              # (BN, BN)
    bigA = np.kron(np.eye(P, dtype=np.float32), adj_blk)                  # (P*BN, P*BN)

    c_self = float(adj_norm[0, 0])
    c_nbr = float(adj_norm[0, 1])
    eye_bn = np.eye(BN, dtype=np.float32)
    stencil = c_self * eye_bn + c_nbr * (np.roll(eye_bn, B, axis=1) + np.roll(eye_bn, -B, axis=1))
    use_stencil = bool(np.allclose(adj_blk, stencil, atol=1e-6))          # ring-only fast path

    w_emb, w0, b0, w1, b1, w_out, b_out = make_params(k_param, D, OW, OD, patch_len)
    pe = positional_encoding(D)

    # ---- host-side weight folding (one-time, constants) ----
    wx_packed = jnp.concatenate([w0[:D, :], w1[:D, :]], axis=1)           # (D, 3D): r|u|c x-path
    wsg = w0[D:, :]                                                       # (D, 2D): r|u state path
    wsc = w1[D:, :]                                                       # (D, D)
    b_packed = jnp.concatenate([b0, b1])                                  # (3D,)
    w_comb = jnp.dot(w_emb.T, wx_packed, precision=_HI)                   # (patch_len, 3D) folded
    pe_rep = jnp.repeat(pe[:P], BN, axis=0)                               # (P*BN, D)
    const_axp = (jnp.dot(jnp.asarray(bigA), jnp.dot(pe_rep, wx_packed, precision=_HI),
                         precision=_HI) + b_packed[None, :])              # (P*BN, 3D) data-independent

    # ---- pack the small constant operands into few contiguous buffers ----
    w_pack_np = np.zeros((PLEN_PAD + 2 * D + BN, 3 * D), np.float32)
    w_pack_np[0:patch_len, :] = np.asarray(w_comb)
    w_pack_np[PLEN_PAD:PLEN_PAD + D, 0:2 * D] = np.asarray(wsg)
    w_pack_np[PLEN_PAD + D:PLEN_PAD + 2 * D, 0:D] = np.asarray(wsc)
    w_pack_np[PLEN_PAD + 2 * D:PLEN_PAD + 2 * D + BN, 0:BN] = adj_blk     # matmul fallback only
    w_pack = jnp.asarray(w_pack_np, jnp.bfloat16)
    bigA_bf16 = jnp.asarray(bigA, jnp.bfloat16)

    eps = jax.random.normal(k_eps, (B, N, IB), dtype=jnp.float32)         # num_sample == 1
    misc_np = np.zeros((BN + IB + 8, max(IB, OWOD)), np.float32)
    misc_np[0:BN, 0:IB] = np.asarray(eps.transpose(1, 0, 2).reshape(BN, IB))   # node-major
    misc_np[BN:BN + IB, 0:OWOD] = np.asarray(w_out.T)
    misc_np[BN + IB, 0:OWOD] = np.asarray(b_out)
    misc = jnp.asarray(misc_np)

    # data layout: (p, n, b)-major rows, patch dim zero-padded to PLEN_PAD (pure data movement)
    x = jnp.squeeze(source, -1).transpose(0, 2, 1)                        # (B, N, T)
    x = x.reshape(B, N, P, patch_len)                                     # unfold(size=step=12)
    x_patches = jnp.transpose(x, (2, 1, 0, 3)).reshape(P * BN, patch_len)
    x_patches = jnp.pad(x_patches, ((0, 0), (0, PLEN_PAD - patch_len)))

    # ---- fused forward pass (single Pallas kernel, no grid) ----
    fwd = partial(tgcn_forward, num_patches=P, bn=BN, d=D, ib=IB, shift=B,
                  plen_pad=PLEN_PAD, owod=OWOD, c_self=c_self, c_nbr=c_nbr)

    def run(stencil_flag):
        res = fwd(x_patches, bigA_bf16, w_pack, const_axp, misc, use_stencil=stencil_flag)
        jax.block_until_ready(res)
        return res

    if use_stencil:
        try:
            state_flat, out_flat = run(True)
        except Exception:
            # graceful static fallback to the general matmul graph conv
            state_flat, out_flat = run(False)
    else:
        state_flat, out_flat = run(False)

    state = state_flat.reshape(N, B, D).transpose(1, 0, 2)                # (B, N, D)
    output = out_flat.reshape(N, B, OW, OD).transpose(1, 2, 0, 3)         # (B, OW, N, OD)
    jax.block_until_ready((state, output))
    assert output.shape == (B, OW, N, OD)

    # ---- verification against f32 pure-JAX reference ----
    emb_ref = patch_embedding_flow_ref(source, w_emb, pe, patch_len)      # (B, P, N, D)
    inputs_tbnd = jnp.transpose(emb_ref, (1, 0, 2, 3))                    # (P, B, N, D)
    state_ref = tgcn_recurrence_ref(inputs_tbnd, jnp.asarray(adj_norm), w0, b0, w1, b1)
    mu_ref = state_ref[..., :IB]
    std_ref = jax.nn.softplus(state_ref[..., IB:])
    z_ref = mu_ref + eps * std_ref
    out_ref = jnp.dot(z_ref.reshape(B * N, IB), w_out.T, precision=_HI) + b_out
    out_ref = out_ref.reshape(B, N, OW, OD).transpose(0, 2, 1, 3)

    # MXU operands are bf16 (f32 accumulation) + approx-reciprocal sigmoid; the graph conv on
    # the recurrence is exact f32 now, so errors are well inside the 5e-2 budget.
    np.testing.assert_allclose(np.asarray(state), np.asarray(state_ref), rtol=5e-2, atol=5e-2)
    np.testing.assert_allclose(np.asarray(output), np.asarray(out_ref), rtol=5e-2, atol=5e-2)

    print("KERNEL_OK")
</pallas_src>

<mosaic_0001>
module attributes {stable_mosaic.version = 11 : i64} {
  func.func @_tgcn_fused_kernel(%arg0: memref<192x16xf32, #tpu.memory_space<vmem>>, %arg1: memref<192x192xbf16, #tpu.memory_space<vmem>>, %arg2: memref<96x96xbf16, #tpu.memory_space<vmem>>, %arg3: memref<192x96xf32, #tpu.memory_space<vmem>>, %arg4: memref<40x16xf32, #tpu.memory_space<vmem>>, %arg5: memref<16x32xf32, #tpu.memory_space<vmem>>, %arg6: memref<16x3xf32, #tpu.memory_space<vmem>>) attributes {dimension_semantics = [], scalar_prefetch = 0 : i64, scratch_operands = 0 : i64, tpu.core_type = #tpu.core_type<tc>} {
    %c0 = arith.constant 0 : index
    %c0_0 = arith.constant 0 : index
    %0 = vector.load %arg1[%c0, %c0_0] : memref<192x192xbf16, #tpu.memory_space<vmem>>, vector<192x192xbf16>
    %c0_1 = arith.constant 0 : index
    %c0_2 = arith.constant 0 : index
    %1 = vector.load %arg0[%c0_1, %c0_2] : memref<192x16xf32, #tpu.memory_space<vmem>>, vector<192x16xf32>
    %2 = arith.truncf %1 : vector<192x16xf32> to vector<192x16xbf16>
    %cst = arith.constant dense<0.000000e+00> : vector<192x16xf32>
    %3 = tpu.matmul %0, %2, %cst {dimension_numbers = #tpu.dot_dimension_numbers<[1], [0], [0], [1], [0, 0, 1, 1], [], []>} : vector<192x192xbf16>, vector<192x16xbf16>, vector<192x16xf32> -> vector<192x16xf32>
    %c0_3 = arith.constant 0 : index
    %c0_4 = arith.constant 0 : index
    %4 = vector.load %arg2[%c0_3, %c0_4] : memref<96x96xbf16, #tpu.memory_space<vmem>>, vector<16x96xbf16>
    %5 = arith.truncf %3 : vector<192x16xf32> to vector<192x16xbf16>
    %cst_5 = arith.constant dense<0.000000e+00> : vector<192x96xf32>
    %6 = tpu.matmul %5, %4, %cst_5 {dimension_numbers = #tpu.dot_dimension_numbers<[1], [0], [0], [1], [0, 0, 1, 1], [], []>} : vector<192x16xbf16>, vector<16x96xbf16>, vector<192x96xf32> -> vector<192x96xf32>
    %c0_6 = arith.constant 0 : index
    %c0_7 = arith.constant 0 : index
    %7 = vector.load %arg3[%c0_6, %c0_7] : memref<192x96xf32, #tpu.memory_space<vmem>>, vector<192x96xf32>
    %8 = arith.addf %6, %7 : vector<192x96xf32>
    %c16 = arith.constant 16 : index
    %c0_8 = arith.constant 0 : index
    %9 = vector.load %arg2[%c16, %c0_8] : memref<96x96xbf16, #tpu.memory_space<vmem>>, vector<32x64xbf16>
    %c48 = arith.constant 48 : index
    %c0_9 = arith.constant 0 : index
    %10 = vector.load %arg2[%c48, %c0_9] : memref<96x96xbf16, #tpu.memory_space<vmem>>, vector<32x32xbf16>
    %cst_10 = arith.constant 0.000000e+00 : f32
    %11 = vector.broadcast %cst_10 : f32 to vector<16x32xf32>
    %12 = vector.extract_strided_slice %8 {offsets = [0, 0], sizes = [16, 96], strides = [1, 1]} : vector<192x96xf32> to vector<16x96xf32>
    %cst_11 = arith.constant 0.333333313 : f32
    %13 = vector.broadcast %cst_11 : f32 to vector<16x32xf32>
    %14 = arith.mulf %13, %11 : vector<16x32xf32>
    %c2_i32 = arith.constant 2 : i32
    %15 = tpu.dynamic_rotate %11 by %c2_i32 dim 0 : vector<16x32xf32>, i32 -> vector<16x32xf32>
    %c14_i32 = arith.constant 14 : i32
    %16 = tpu.dynamic_rotate %11 by %c14_i32 dim 0 : vector<16x32xf32>, i32 -> vector<16x32xf32>
    %17 = arith.addf %15, %16 : vector<16x32xf32>
    %cst_12 = arith.constant 0.333333313 : f32
    %18 = vector.broadcast %cst_12 : f32 to vector<16x32xf32>
    %19 = arith.mulf %18, %17 : vector<16x32xf32>
    %20 = arith.addf %14, %19 : vector<16x32xf32>
    %21 = arith.truncf %20 : vector<16x32xf32> to vector<16x32xbf16>
    %cst_13 = arith.constant dense<0.000000e+00> : vector<16x64xf32>
    %22 = tpu.matmul %21, %9, %cst_13 {dimension_numbers = #tpu.dot_dimension_numbers<[1], [0], [0], [1], [0, 0, 1, 1], [], []>} : vector<16x32xbf16>, vector<32x64xbf16>, vector<16x64xf32> -> vector<16x64xf32>
    %23 = vector.extract_strided_slice %12 {offsets = [0, 0], sizes = [16, 64], strides = [1, 1]} : vector<16x96xf32> to vector<16x64xf32>
    %24 = arith.addf %23, %22 : vector<16x64xf32>
    %cst_14 = arith.constant 0.000000e+00 : f32
    %25 = vector.broadcast %cst_14 : f32 to vector<16x64xf32>
    %26 = arith.subf %25, %24 : vector<16x64xf32>
    %27 = math.exp %26 : vector<16x64xf32>
    %cst_15 = arith.constant 1.000000e+00 : f32
    %28 = vector.broadcast %cst_15 : f32 to vector<16x64xf32>
    %29 = arith.addf %28, %27 : vector<16x64xf32>
    %30 = tpu.reciprocal %29 {approx = true} : vector<16x64xf32> -> vector<16x64xf32>
    %31 = vector.extract_strided_slice %30 {offsets = [0, 0], sizes = [16, 32], strides = [1, 1]} : vector<16x64xf32> to vector<16x32xf32>
    %32 = vector.extract_strided_slice %30 {offsets = [0, 32], sizes = [16, 32], strides = [1, 1]} : vector<16x64xf32> to vector<16x32xf32>
    %33 = arith.mulf %31, %11 : vector<16x32xf32>
    %cst_16 = arith.constant 0.333333313 : f32
    %34 = vector.broadcast %cst_16 : f32 to vector<16x32xf32>
    %35 = arith.mulf %34, %33 : vector<16x32xf32>
    %c2_i32_17 = arith.constant 2 : i32
    %36 = tpu.dynamic_rotate %33 by %c2_i32_17 dim 0 : vector<16x32xf32>, i32 -> vector<16x32xf32>
    %c14_i32_18 = arith.constant 14 : i32
    %37 = tpu.dynamic_rotate %33 by %c14_i32_18 dim 0 : vector<16x32xf32>, i32 -> vector<16x32xf32>
    %38 = arith.addf %36, %37 : vector<16x32xf32>
    %cst_19 = arith.constant 0.333333313 : f32
    %39 = vector.broadcast %cst_19 : f32 to vector<16x32xf32>
    %40 = arith.mulf %39, %38 : vector<16x32xf32>
    %41 = arith.addf %35, %40 : vector<16x32xf32>
    %42 = arith.truncf %41 : vector<16x32xf32> to vector<16x32xbf16>
    %cst_20 = arith.constant dense<0.000000e+00> : vector<16x32xf32>
    %43 = tpu.matmul %42, %10, %cst_20 {dimension_numbers = #tpu.dot_dimension_numbers<[1], [0], [0], [1], [0, 0, 1, 1], [], []>} : vector<16x32xbf16>, vector<32x32xbf16>, vector<16x32xf32> -> vector<16x32xf32>
    %44 = vector.extract_strided_slice %12 {offsets = [0, 64], sizes = [16, 32], strides = [1, 1]} : vector<16x96xf32> to vector<16x32xf32>
    %45 = arith.addf %44, %43 : vector<16x32xf32>
    %46 = math.tanh %45 : vector<16x32xf32>
    %47 = arith.mulf %32, %11 : vector<16x32xf32>
    %cst_21 = arith.constant 1.000000e+00 : f32
    %48 = vector.broadcast %cst_21 : f32 to vector<16x32xf32>
    %49 = arith.subf %48, %32 : vector<16x32xf32>
    %50 = arith.mulf %49, %46 : vector<16x32xf32>
    %51 = arith.addf %47, %50 : vector<16x32xf32>
    %52 = vector.extract_strided_slice %8 {offsets = [16, 0], sizes = [16, 96], strides = [1, 1]} : vector<192x96xf32> to vector<16x96xf32>
    %cst_22 = arith.constant 0.333333313 : f32
    %53 = vector.broadcast %cst_22 : f32 to vector<16x32xf32>
    %54 = arith.mulf %53, %51 : vector<16x32xf32>
    %c2_i32_23 = arith.constant 2 : i32
    %55 = tpu.dynamic_rotate %51 by %c2_i32_23 dim 0 : vector<16x32xf32>, i32 -> vector<16x32xf32>
    %c14_i32_24 = arith.constant 14 : i32
    %56 = tpu.dynamic_rotate %51 by %c14_i32_24 dim 0 : vector<16x32xf32>, i32 -> vector<16x32xf32>
    %57 = arith.addf %55, %56 : vector<16x32xf32>
    %cst_25 = arith.constant 0.333333313 : f32
    %58 = vector.broadcast %cst_25 : f32 to vector<16x32xf32>
    %59 = arith.mulf %58, %57 : vector<16x32xf32>
    %60 = arith.addf %54, %59 : vector<16x32xf32>
    %61 = arith.truncf %60 : vector<16x32xf32> to vector<16x32xbf16>
    %cst_26 = arith.constant dense<0.000000e+00> : vector<16x64xf32>
    %62 = tpu.matmul %61, %9, %cst_26 {dimension_numbers = #tpu.dot_dimension_numbers<[1], [0], [0], [1], [0, 0, 1, 1], [], []>} : vector<16x32xbf16>, vector<32x64xbf16>, vector<16x64xf32> -> vector<16x64xf32>
    %63 = vector.extract_strided_slice %52 {offsets = [0, 0], sizes = [16, 64], strides = [1, 1]} : vector<16x96xf32> to vector<16x64xf32>
    %64 = arith.addf %63, %62 : vector<16x64xf32>
    %cst_27 = arith.constant 0.000000e+00 : f32
    %65 = vector.broadcast %cst_27 : f32 to vector<16x64xf32>
    %66 = arith.subf %65, %64 : vector<16x64xf32>
    %67 = math.exp %66 : vector<16x64xf32>
    %cst_28 = arith.constant 1.000000e+00 : f32
    %68 = vector.broadcast %cst_28 : f32 to vector<16x64xf32>
    %69 = arith.addf %68, %67 : vector<16x64xf32>
    %70 = tpu.reciprocal %69 {approx = true} : vector<16x64xf32> -> vector<16x64xf32>
    %71 = vector.extract_strided_slice %70 {offsets = [0, 0], sizes = [16, 32], strides = [1, 1]} : vector<16x64xf32> to vector<16x32xf32>
    %72 = vector.extract_strided_slice %70 {offsets = [0, 32], sizes = [16, 32], strides = [1, 1]} : vector<16x64xf32> to vector<16x32xf32>
    %73 = arith.mulf %71, %51 : vector<16x32xf32>
    %cst_29 = arith.constant 0.333333313 : f32
    %74 = vector.broadcast %cst_29 : f32 to vector<16x32xf32>
    %75 = arith.mulf %74, %73 : vector<16x32xf32>
    %c2_i32_30 = arith.constant 2 : i32
    %76 = tpu.dynamic_rotate %73 by %c2_i32_30 dim 0 : vector<16x32xf32>, i32 -> vector<16x32xf32>
    %c14_i32_31 = arith.constant 14 : i32
    %77 = tpu.dynamic_rotate %73 by %c14_i32_31 dim 0 : vector<16x32xf32>, i32 -> vector<16x32xf32>
    %78 = arith.addf %76, %77 : vector<16x32xf32>
    %cst_32 = arith.constant 0.333333313 : f32
    %79 = vector.broadcast %cst_32 : f32 to vector<16x32xf32>
    %80 = arith.mulf %79, %78 : vector<16x32xf32>
    %81 = arith.addf %75, %80 : vector<16x32xf32>
    %82 = arith.truncf %81 : vector<16x32xf32> to vector<16x32xbf16>
    %cst_33 = arith.constant dense<0.000000e+00> : vector<16x32xf32>
    %83 = tpu.matmul %82, %10, %cst_33 {dimension_numbers = #tpu.dot_dimension_numbers<[1], [0], [0], [1], [0, 0, 1, 1], [], []>} : vector<16x32xbf16>, vector<32x32xbf16>, vector<16x32xf32> -> vector<16x32xf32>
    %84 = vector.extract_strided_slice %52 {offsets = [0, 64], sizes = [16, 32], strides = [1, 1]} : vector<16x96xf32> to vector<16x32xf32>
    %85 = arith.addf %84, %83 : vector<16x32xf32>
    %86 = math.tanh %85 : vector<16x32xf32>
    %87 = arith.mulf %72, %51 : vector<16x32xf32>
    %cst_34 = arith.constant 1.000000e+00 : f32
    %88 = vector.broadcast %cst_34 : f32 to vector<16x32xf32>
    %89 = arith.subf %88, %72 : vector<16x32xf32>
    %90 = arith.mulf %89, %86 : vector<16x32xf32>
    %91 = arith.addf %87, %90 : vector<16x32xf32>
    %92 = vector.extract_strided_slice %8 {offsets = [32, 0], sizes = [16, 96], strides = [1, 1]} : vector<192x96xf32> to vector<16x96xf32>
    %cst_35 = arith.constant 0.333333313 : f32
    %93 = vector.broadcast %cst_35 : f32 to vector<16x32xf32>
    %94 = arith.mulf %93, %91 : vector<16x32xf32>
    %c2_i32_36 = arith.constant 2 : i32
    %95 = tpu.dynamic_rotate %91 by %c2_i32_36 dim 0 : vector<16x32xf32>, i32 -> vector<16x32xf32>
    %c14_i32_37 = arith.constant 14 : i32
    %96 = tpu.dynamic_rotate %91 by %c14_i32_37 dim 0 : vector<16x32xf32>, i32 -> vector<16x32xf32>
    %97 = arith.addf %95, %96 : vector<16x32xf32>
    %cst_38 = arith.constant 0.333333313 : f32
    %98 = vector.broadcast %cst_38 : f32 to vector<16x32xf32>
    %99 = arith.mulf %98, %97 : vector<16x32xf32>
    %100 = arith.addf %94, %99 : vector<16x32xf32>
    %101 = arith.truncf %100 : vector<16x32xf32> to vector<16x32xbf16>
    %cst_39 = arith.constant dense<0.000000e+00> : vector<16x64xf32>
    %102 = tpu.matmul %101, %9, %cst_39 {dimension_numbers = #tpu.dot_dimension_numbers<[1], [0], [0], [1], [0, 0, 1, 1], [], []>} : vector<16x32xbf16>, vector<32x64xbf16>, vector<16x64xf32> -> vector<16x64xf32>
    %103 = vector.extract_strided_slice %92 {offsets = [0, 0], sizes = [16, 64], strides = [1, 1]} : vector<16x96xf32> to vector<16x64xf32>
    %104 = arith.addf %103, %102 : vector<16x64xf32>
    %cst_40 = arith.constant 0.000000e+00 : f32
    %105 = vector.broadcast %cst_40 : f32 to vector<16x64xf32>
    %106 = arith.subf %105, %104 : vector<16x64xf32>
    %107 = math.exp %106 : vector<16x64xf32>
    %cst_41 = arith.constant 1.000000e+00 : f32
    %108 = vector.broadcast %cst_41 : f32 to vector<16x64xf32>
    %109 = arith.addf %108, %107 : vector<16x64xf32>
    %110 = tpu.reciprocal %109 {approx = true} : vector<16x64xf32> -> vector<16x64xf32>
    %111 = vector.extract_strided_slice %110 {offsets = [0, 0], sizes = [16, 32], strides = [1, 1]} : vector<16x64xf32> to vector<16x32xf32>
    %112 = vector.extract_strided_slice %110 {offsets = [0, 32], sizes = [16, 32], strides = [1, 1]} : vector<16x64xf32> to vector<16x32xf32>
    %113 = arith.mulf %111, %91 : vector<16x32xf32>
    %cst_42 = arith.constant 0.333333313 : f32
    %114 = vector.broadcast %cst_42 : f32 to vector<16x32xf32>
    %115 = arith.mulf %114, %113 : vector<16x32xf32>
    %c2_i32_43 = arith.constant 2 : i32
    %116 = tpu.dynamic_rotate %113 by %c2_i32_43 dim 0 : vector<16x32xf32>, i32 -> vector<16x32xf32>
    %c14_i32_44 = arith.constant 14 : i32
    %117 = tpu.dynamic_rotate %113 by %c14_i32_44 dim 0 : vector<16x32xf32>, i32 -> vector<16x32xf32>
    %118 = arith.addf %116, %117 : vector<16x32xf32>
    %cst_45 = arith.constant 0.333333313 : f32
    %119 = vector.broadcast %cst_45 : f32 to vector<16x32xf32>
    %120 = arith.mulf %119, %118 : vector<16x32xf32>
    %121 = arith.addf %115, %120 : vector<16x32xf32>
    %122 = arith.truncf %121 : vector<16x32xf32> to vector<16x32xbf16>
    %cst_46 = arith.constant dense<0.000000e+00> : vector<16x32xf32>
    %123 = tpu.matmul %122, %10, %cst_46 {dimension_numbers = #tpu.dot_dimension_numbers<[1], [0], [0], [1], [0, 0, 1, 1], [], []>} : vector<16x32xbf16>, vector<32x32xbf16>, vector<16x32xf32> -> vector<16x32xf32>
    %124 = vector.extract_strided_slice %92 {offsets = [0, 64], sizes = [16, 32], strides = [1, 1]} : vector<16x96xf32> to vector<16x32xf32>
    %125 = arith.addf %124, %123 : vector<16x32xf32>
    %126 = math.tanh %125 : vector<16x32xf32>
    %127 = arith.mulf %112, %91 : vector<16x32xf32>
    %cst_47 = arith.constant 1.000000e+00 : f32
    %128 = vector.broadcast %cst_47 : f32 to vector<16x32xf32>
    %129 = arith.subf %128, %112 : vector<16x32xf32>
    %130 = arith.mulf %129, %126 : vector<16x32xf32>
    %131 = arith.addf %127, %130 : vector<16x32xf32>
    %132 = vector.extract_strided_slice %8 {offsets = [48, 0], sizes = [16, 96], strides = [1, 1]} : vector<192x96xf32> to vector<16x96xf32>
    %cst_48 = arith.constant 0.333333313 : f32
    %133 = vector.broadcast %cst_48 : f32 to vector<16x32xf32>
    %134 = arith.mulf %133, %131 : vector<16x32xf32>
    %c2_i32_49 = arith.constant 2 : i32
    %135 = tpu.dynamic_rotate %131 by %c2_i32_49 dim 0 : vector<16x32xf32>, i32 -> vector<16x32xf32>
    %c14_i32_50 = arith.constant 14 : i32
    %136 = tpu.dynamic_rotate %131 by %c14_i32_50 dim 0 : vector<16x32xf32>, i32 -> vector<16x32xf32>
    %137 = arith.addf %135, %136 : vector<16x32xf32>
    %cst_51 = arith.constant 0.333333313 : f32
    %138 = vector.broadcast %cst_51 : f32 to vector<16x32xf32>
    %139 = arith.mulf %138, %137 : vector<16x32xf32>
    %140 = arith.addf %134, %139 : vector<16x32xf32>
    %141 = arith.truncf %140 : vector<16x32xf32> to vector<16x32xbf16>
    %cst_52 = arith.constant dense<0.000000e+00> : vector<16x64xf32>
    %142 = tpu.matmul %141, %9, %cst_52 {dimension_numbers = #tpu.dot_dimension_numbers<[1], [0], [0], [1], [0, 0, 1, 1], [], []>} : vector<16x32xbf16>, vector<32x64xbf16>, vector<16x64xf32> -> vector<16x64xf32>
    %143 = vector.extract_strided_slice %132 {offsets = [0, 0], sizes = [16, 64], strides = [1, 1]} : vector<16x96xf32> to vector<16x64xf32>
    %144 = arith.addf %143, %142 : vector<16x64xf32>
    %cst_53 = arith.constant 0.000000e+00 : f32
    %145 = vector.broadcast %cst_53 : f32 to vector<16x64xf32>
    %146 = arith.subf %145, %144 : vector<16x64xf32>
    %147 = math.exp %146 : vector<16x64xf32>
    %cst_54 = arith.constant 1.000000e+00 : f32
    %148 = vector.broadcast %cst_54 : f32 to vector<16x64xf32>
    %149 = arith.addf %148, %147 : vector<16x64xf32>
    %150 = tpu.reciprocal %149 {approx = true} : vector<16x64xf32> -> vector<16x64xf32>
    %151 = vector.extract_strided_slice %150 {offsets = [0, 0], sizes = [16, 32], strides = [1, 1]} : vector<16x64xf32> to vector<16x32xf32>
    %152 = vector.extract_strided_slice %150 {offsets = [0, 32], sizes = [16, 32], strides = [1, 1]} : vector<16x64xf32> to vector<16x32xf32>
    %153 = arith.mulf %151, %131 : vector<16x32xf32>
    %cst_55 = arith.constant 0.333333313 : f32
    %154 = vector.broadcast %cst_55 : f32 to vector<16x32xf32>
    %155 = arith.mulf %154, %153 : vector<16x32xf32>
    %c2_i32_56 = arith.constant 2 : i32
    %156 = tpu.dynamic_rotate %153 by %c2_i32_56 dim 0 : vector<16x32xf32>, i32 -> vector<16x32xf32>
    %c14_i32_57 = arith.constant 14 : i32
    %157 = tpu.dynamic_rotate %153 by %c14_i32_57 dim 0 : vector<16x32xf32>, i32 -> vector<16x32xf32>
    %158 = arith.addf %156, %157 : vector<16x32xf32>
    %cst_58 = arith.constant 0.333333313 : f32
    %159 = vector.broadcast %cst_58 : f32 to vector<16x32xf32>
    %160 = arith.mulf %159, %158 : vector<16x32xf32>
    %161 = arith.addf %155, %160 : vector<16x32xf32>
    %162 = arith.truncf %161 : vector<16x32xf32> to vector<16x32xbf16>
    %cst_59 = arith.constant dense<0.000000e+00> : vector<16x32xf32>
    %163 = tpu.matmul %162, %10, %cst_59 {dimension_numbers = #tpu.dot_dimension_numbers<[1], [0], [0], [1], [0, 0, 1, 1], [], []>} : vector<16x32xbf16>, vector<32x32xbf16>, vector<16x32xf32> -> vector<16x32xf32>
    %164 = vector.extract_strided_slice %132 {offsets = [0, 64], sizes = [16, 32], strides = [1, 1]} : vector<16x96xf32> to vector<16x32xf32>
    %165 = arith.addf %164, %163 : vector<16x32xf32>
    %166 = math.tanh %165 : vector<16x32xf32>
    %167 = arith.mulf %152, %131 : vector<16x32xf32>
    %cst_60 = arith.constant 1.000000e+00 : f32
    %168 = vector.broadcast %cst_60 : f32 to vector<16x32xf32>
    %169 = arith.subf %168, %152 : vector<16x32xf32>
    %170 = arith.mulf %169, %166 : vector<16x32xf32>
    %171 = arith.addf %167, %170 : vector<16x32xf32>
    %172 = vector.extract_strided_slice %8 {offsets = [64, 0], sizes = [16, 96], strides = [1, 1]} : vector<192x96xf32> to vector<16x96xf32>
    %cst_61 = arith.constant 0.333333313 : f32
    %173 = vector.broadcast %cst_61 : f32 to vector<16x32xf32>
    %174 = arith.mulf %173, %171 : vector<16x32xf32>
    %c2_i32_62 = arith.constant 2 : i32
    %175 = tpu.dynamic_rotate %171 by %c2_i32_62 dim 0 : vector<16x32xf32>, i32 -> vector<16x32xf32>
    %c14_i32_63 = arith.constant 14 : i32
    %176 = tpu.dynamic_rotate %171 by %c14_i32_63 dim 0 : vector<16x32xf32>, i32 -> vector<16x32xf32>
    %177 = arith.addf %175, %176 : vector<16x32xf32>
    %cst_64 = arith.constant 0.333333313 : f32
    %178 = vector.broadcast %cst_64 : f32 to vector<16x32xf32>
    %179 = arith.mulf %178, %177 : vector<16x32xf32>
    %180 = arith.addf %174, %179 : vector<16x32xf32>
    %181 = arith.truncf %180 : vector<16x32xf32> to vector<16x32xbf16>
    %cst_65 = arith.constant dense<0.000000e+00> : vector<16x64xf32>
    %182 = tpu.matmul %181, %9, %cst_65 {dimension_numbers = #tpu.dot_dimension_numbers<[1], [0], [0], [1], [0, 0, 1, 1], [], []>} : vector<16x32xbf16>, vector<32x64xbf16>, vector<16x64xf32> -> vector<16x64xf32>
    %183 = vector.extract_strided_slice %172 {offsets = [0, 0], sizes = [16, 64], strides = [1, 1]} : vector<16x96xf32> to vector<16x64xf32>
    %184 = arith.addf %183, %182 : vector<16x64xf32>
    %cst_66 = arith.constant 0.000000e+00 : f32
    %185 = vector.broadcast %cst_66 : f32 to vector<16x64xf32>
    %186 = arith.subf %185, %184 : vector<16x64xf32>
    %187 = math.exp %186 : vector<16x64xf32>
    %cst_67 = arith.constant 1.000000e+00 : f32
    %188 = vector.broadcast %cst_67 : f32 to vector<16x64xf32>
    %189 = arith.addf %188, %187 : vector<16x64xf32>
    %190 = tpu.reciprocal %189 {approx = true} : vector<16x64xf32> -> vector<16x64xf32>
    %191 = vector.extract_strided_slice %190 {offsets = [0, 0], sizes = [16, 32], strides = [1, 1]} : vector<16x64xf32> to vector<16x32xf32>
    %192 = vector.extract_strided_slice %190 {offsets = [0, 32], sizes = [16, 32], strides = [1, 1]} : vector<16x64xf32> to vector<16x32xf32>
    %193 = arith.mulf %191, %171 : vector<16x32xf32>
    %cst_68 = arith.constant 0.333333313 : f32
    %194 = vector.broadcast %cst_68 : f32 to vector<16x32xf32>
    %195 = arith.mulf %194, %193 : vector<16x32xf32>
    %c2_i32_69 = arith.constant 2 : i32
    %196 = tpu.dynamic_rotate %193 by %c2_i32_69 dim 0 : vector<16x32xf32>, i32 -> vector<16x32xf32>
    %c14_i32_70 = arith.constant 14 : i32
    %197 = tpu.dynamic_rotate %193 by %c14_i32_70 dim 0 : vector<16x32xf32>, i32 -> vector<16x32xf32>
    %198 = arith.addf %196, %197 : vector<16x32xf32>
    %cst_71 = arith.constant 0.333333313 : f32
    %199 = vector.broadcast %cst_71 : f32 to vector<16x32xf32>
    %200 = arith.mulf %199, %198 : vector<16x32xf32>
    %201 = arith.addf %195, %200 : vector<16x32xf32>
    %202 = arith.truncf %201 : vector<16x32xf32> to vector<16x32xbf16>
    %cst_72 = arith.constant dense<0.000000e+00> : vector<16x32xf32>
    %203 = tpu.matmul %202, %10, %cst_72 {dimension_numbers = #tpu.dot_dimension_numbers<[1], [0], [0], [1], [0, 0, 1, 1], [], []>} : vector<16x32xbf16>, vector<32x32xbf16>, vector<16x32xf32> -> vector<16x32xf32>
    %204 = vector.extract_strided_slice %172 {offsets = [0, 64], sizes = [16, 32], strides = [1, 1]} : vector<16x96xf32> to vector<16x32xf32>
    %205 = arith.addf %204, %203 : vector<16x32xf32>
    %206 = math.tanh %205 : vector<16x32xf32>
    %207 = arith.mulf %192, %171 : vector<16x32xf32>
    %cst_73 = arith.constant 1.000000e+00 : f32
    %208 = vector.broadcast %cst_73 : f32 to vector<16x32xf32>
    %209 = arith.subf %208, %192 : vector<16x32xf32>
    %210 = arith.mulf %209, %206 : vector<16x32xf32>
    %211 = arith.addf %207, %210 : vector<16x32xf32>
    %212 = vector.extract_strided_slice %8 {offsets = [80, 0], sizes = [16, 96], strides = [1, 1]} : vector<192x96xf32> to vector<16x96xf32>
    %cst_74 = arith.constant 0.333333313 : f32
    %213 = vector.broadcast %cst_74 : f32 to vector<16x32xf32>
    %214 = arith.mulf %213, %211 : vector<16x32xf32>
    %c2_i32_75 = arith.constant 2 : i32
    %215 = tpu.dynamic_rotate %211 by %c2_i32_75 dim 0 : vector<16x32xf32>, i32 -> vector<16x32xf32>
    %c14_i32_76 = arith.constant 14 : i32
    %216 = tpu.dynamic_rotate %211 by %c14_i32_76 dim 0 : vector<16x32xf32>, i32 -> vector<16x32xf32>
    %217 = arith.addf %215, %216 : vector<16x32xf32>
    %cst_77 = arith.constant 0.333333313 : f32
    %218 = vector.broadcast %cst_77 : f32 to vector<16x32xf32>
    %219 = arith.mulf %218, %217 : vector<16x32xf32>
    %220 = arith.addf %214, %219 : vector<16x32xf32>
    %221 = arith.truncf %220 : vector<16x32xf32> to vector<16x32xbf16>
    %cst_78 = arith.constant dense<0.000000e+00> : vector<16x64xf32>
    %222 = tpu.matmul %221, %9, %cst_78 {dimension_numbers = #tpu.dot_dimension_numbers<[1], [0], [0], [1], [0, 0, 1, 1], [], []>} : vector<16x32xbf16>, vector<32x64xbf16>, vector<16x64xf32> -> vector<16x64xf32>
    %223 = vector.extract_strided_slice %212 {offsets = [0, 0], sizes = [16, 64], strides = [1, 1]} : vector<16x96xf32> to vector<16x64xf32>
    %224 = arith.addf %223, %222 : vector<16x64xf32>
    %cst_79 = arith.constant 0.000000e+00 : f32
    %225 = vector.broadcast %cst_79 : f32 to vector<16x64xf32>
    %226 = arith.subf %225, %224 : vector<16x64xf32>
    %227 = math.exp %226 : vector<16x64xf32>
    %cst_80 = arith.constant 1.000000e+00 : f32
    %228 = vector.broadcast %cst_80 : f32 to vector<16x64xf32>
    %229 = arith.addf %228, %227 : vector<16x64xf32>
    %230 = tpu.reciprocal %229 {approx = true} : vector<16x64xf32> -> vector<16x64xf32>
    %231 = vector.extract_strided_slice %230 {offsets = [0, 0], sizes = [16, 32], strides = [1, 1]} : vector<16x64xf32> to vector<16x32xf32>
    %232 = vector.extract_strided_slice %230 {offsets = [0, 32], sizes = [16, 32], strides = [1, 1]} : vector<16x64xf32> to vector<16x32xf32>
    %233 = arith.mulf %231, %211 : vector<16x32xf32>
    %cst_81 = arith.constant 0.333333313 : f32
    %234 = vector.broadcast %cst_81 : f32 to vector<16x32xf32>
    %235 = arith.mulf %234, %233 : vector<16x32xf32>
    %c2_i32_82 = arith.constant 2 : i32
    %236 = tpu.dynamic_rotate %233 by %c2_i32_82 dim 0 : vector<16x32xf32>, i32 -> vector<16x32xf32>
    %c14_i32_83 = arith.constant 14 : i32
    %237 = tpu.dynamic_rotate %233 by %c14_i32_83 dim 0 : vector<16x32xf32>, i32 -> vector<16x32xf32>
    %238 = arith.addf %236, %237 : vector<16x32xf32>
    %cst_84 = arith.constant 0.333333313 : f32
    %239 = vector.broadcast %cst_84 : f32 to vector<16x32xf32>
    %240 = arith.mulf %239, %238 : vector<16x32xf32>
    %241 = arith.addf %235, %240 : vector<16x32xf32>
    %242 = arith.truncf %241 : vector<16x32xf32> to vector<16x32xbf16>
    %cst_85 = arith.constant dense<0.000000e+00> : vector<16x32xf32>
    %243 = tpu.matmul %242, %10, %cst_85 {dimension_numbers = #tpu.dot_dimension_numbers<[1], [0], [0], [1], [0, 0, 1, 1], [], []>} : vector<16x32xbf16>, vector<32x32xbf16>, vector<16x32xf32> -> vector<16x32xf32>
    %244 = vector.extract_strided_slice %212 {offsets = [0, 64], sizes = [16, 32], strides = [1, 1]} : vector<16x96xf32> to vector<16x32xf32>
    %245 = arith.addf %244, %243 : vector<16x32xf32>
    %246 = math.tanh %245 : vector<16x32xf32>
    %247 = arith.mulf %232, %211 : vector<16x32xf32>
    %cst_86 = arith.constant 1.000000e+00 : f32
    %248 = vector.broadcast %cst_86 : f32 to vector<16x32xf32>
    %249 = arith.subf %248, %232 : vector<16x32xf32>
    %250 = arith.mulf %249, %246 : vector<16x32xf32>
    %251 = arith.addf %247, %250 : vector<16x32xf32>
    %252 = vector.extract_strided_slice %8 {offsets = [96, 0], sizes = [16, 96], strides = [1, 1]} : vector<192x96xf32> to vector<16x96xf32>
    %cst_87 = arith.constant 0.333333313 : f32
    %253 = vector.broadcast %cst_87 : f32 to vector<16x32xf32>
    %254 = arith.mulf %253, %251 : vector<16x32xf32>
    %c2_i32_88 = arith.constant 2 : i32
    %255 = tpu.dynamic_rotate %251 by %c2_i32_88 dim 0 : vector<16x32xf32>, i32 -> vector<16x32xf32>
    %c14_i32_89 = arith.constant 14 : i32
    %256 = tpu.dynamic_rotate %251 by %c14_i32_89 dim 0 : vector<16x32xf32>, i32 -> vector<16x32xf32>
    %257 = arith.addf %255, %256 : vector<16x32xf32>
    %cst_90 = arith.constant 0.333333313 : f32
    %258 = vector.broadcast %cst_90 : f32 to vector<16x32xf32>
    %259 = arith.mulf %258, %257 : vector<16x32xf32>
    %260 = arith.addf %254, %259 : vector<16x32xf32>
    %261 = arith.truncf %260 : vector<16x32xf32> to vector<16x32xbf16>
    %cst_91 = arith.constant dense<0.000000e+00> : vector<16x64xf32>
    %262 = tpu.matmul %261, %9, %cst_91 {dimension_numbers = #tpu.dot_dimension_numbers<[1], [0], [0], [1], [0, 0, 1, 1], [], []>} : vector<16x32xbf16>, vector<32x64xbf16>, vector<16x64xf32> -> vector<16x64xf32>
    %263 = vector.extract_strided_slice %252 {offsets = [0, 0], sizes = [16, 64], strides = [1, 1]} : vector<16x96xf32> to vector<16x64xf32>
    %264 = arith.addf %263, %262 : vector<16x64xf32>
    %cst_92 = arith.constant 0.000000e+00 : f32
    %265 = vector.broadcast %cst_92 : f32 to vector<16x64xf32>
    %266 = arith.subf %265, %264 : vector<16x64xf32>
    %267 = math.exp %266 : vector<16x64xf32>
    %cst_93 = arith.constant 1.000000e+00 : f32
    %268 = vector.broadcast %cst_93 : f32 to vector<16x64xf32>
    %269 = arith.addf %268, %267 : vector<16x64xf32>
    %270 = tpu.reciprocal %269 {approx = true} : vector<16x64xf32> -> vector<16x64xf32>
    %271 = vector.extract_strided_slice %270 {offsets = [0, 0], sizes = [16, 32], strides = [1, 1]} : vector<16x64xf32> to vector<16x32xf32>
    %272 = vector.extract_strided_slice %270 {offsets = [0, 32], sizes = [16, 32], strides = [1, 1]} : vector<16x64xf32> to vector<16x32xf32>
    %273 = arith.mulf %271, %251 : vector<16x32xf32>
    %cst_94 = arith.constant 0.333333313 : f32
    %274 = vector.broadcast %cst_94 : f32 to vector<16x32xf32>
    %275 = arith.mulf %274, %273 : vector<16x32xf32>
    %c2_i32_95 = arith.constant 2 : i32
    %276 = tpu.dynamic_rotate %273 by %c2_i32_95 dim 0 : vector<16x32xf32>, i32 -> vector<16x32xf32>
    %c14_i32_96 = arith.constant 14 : i32
    %277 = tpu.dynamic_rotate %273 by %c14_i32_96 dim 0 : vector<16x32xf32>, i32 -> vector<16x32xf32>
    %278 = arith.addf %276, %277 : vector<16x32xf32>
    %cst_97 = arith.constant 0.333333313 : f32
    %279 = vector.broadcast %cst_97 : f32 to vector<16x32xf32>
    %280 = arith.mulf %279, %278 : vector<16x32xf32>
    %281 = arith.addf %275, %280 : vector<16x32xf32>
    %282 = arith.truncf %281 : vector<16x32xf32> to vector<16x32xbf16>
    %cst_98 = arith.constant dense<0.000000e+00> : vector<16x32xf32>
    %283 = tpu.matmul %282, %10, %cst_98 {dimension_numbers = #tpu.dot_dimension_numbers<[1], [0], [0], [1], [0, 0, 1, 1], [], []>} : vector<16x32xbf16>, vector<32x32xbf16>, vector<16x32xf32> -> vector<16x32xf32>
    %284 = vector.extract_strided_slice %252 {offsets = [0, 64], sizes = [16, 32], strides = [1, 1]} : vector<16x96xf32> to vector<16x32xf32>
    %285 = arith.addf %284, %283 : vector<16x32xf32>
    %286 = math.tanh %285 : vector<16x32xf32>
    %287 = arith.mulf %272, %251 : vector<16x32xf32>
    %cst_99 = arith.constant 1.000000e+00 : f32
    %288 = vector.broadcast %cst_99 : f32 to vector<16x32xf32>
    %289 = arith.subf %288, %272 : vector<16x32xf32>
    %290 = arith.mulf %289, %286 : vector<16x32xf32>
    %291 = arith.addf %287, %290 : vector<16x32xf32>
    %292 = vector.extract_strided_slice %8 {offsets = [112, 0], sizes = [16, 96], strides = [1, 1]} : vector<192x96xf32> to vector<16x96xf32>
    %cst_100 = arith.constant 0.333333313 : f32
    %293 = vector.broadcast %cst_100 : f32 to vector<16x32xf32>
    %294 = arith.mulf %293, %291 : vector<16x32xf32>
    %c2_i32_101 = arith.constant 2 : i32
    %295 = tpu.dynamic_rotate %291 by %c2_i32_101 dim 0 : vector<16x32xf32>, i32 -> vector<16x32xf32>
    %c14_i32_102 = arith.constant 14 : i32
    %296 = tpu.dynamic_rotate %291 by %c14_i32_102 dim 0 : vector<16x32xf32>, i32 -> vector<16x32xf32>
    %297 = arith.addf %295, %296 : vector<16x32xf32>
    %cst_103 = arith.constant 0.333333313 : f32
    %298 = vector.broadcast %cst_103 : f32 to vector<16x32xf32>
    %299 = arith.mulf %298, %297 : vector<16x32xf32>
    %300 = arith.addf %294, %299 : vector<16x32xf32>
    %301 = arith.truncf %300 : vector<16x32xf32> to vector<16x32xbf16>
    %cst_104 = arith.constant dense<0.000000e+00> : vector<16x64xf32>
    %302 = tpu.matmul %301, %9, %cst_104 {dimension_numbers = #tpu.dot_dimension_numbers<[1], [0], [0], [1], [0, 0, 1, 1], [], []>} : vector<16x32xbf16>, vector<32x64xbf16>, vector<16x64xf32> -> vector<16x64xf32>
    %303 = vector.extract_strided_slice %292 {offsets = [0, 0], sizes = [16, 64], strides = [1, 1]} : vector<16x96xf32> to vector<16x64xf32>
    %304 = arith.addf %303, %302 : vector<16x64xf32>
    %cst_105 = arith.constant 0.000000e+00 : f32
    %305 = vector.broadcast %cst_105 : f32 to vector<16x64xf32>
    %306 = arith.subf %305, %304 : vector<16x64xf32>
    %307 = math.exp %306 : vector<16x64xf32>
    %cst_106 = arith.constant 1.000000e+00 : f32
    %308 = vector.broadcast %cst_106 : f32 to vector<16x64xf32>
    %309 = arith.addf %308, %307 : vector<16x64xf32>
    %310 = tpu.reciprocal %309 {approx = true} : vector<16x64xf32> -> vector<16x64xf32>
    %311 = vector.extract_strided_slice %310 {offsets = [0, 0], sizes = [16, 32], strides = [1, 1]} : vector<16x64xf32> to vector<16x32xf32>
    %312 = vector.extract_strided_slice %310 {offsets = [0, 32], sizes = [16, 32], strides = [1, 1]} : vector<16x64xf32> to vector<16x32xf32>
    %313 = arith.mulf %311, %291 : vector<16x32xf32>
    %cst_107 = arith.constant 0.333333313 : f32
    %314 = vector.broadcast %cst_107 : f32 to vector<16x32xf32>
    %315 = arith.mulf %314, %313 : vector<16x32xf32>
    %c2_i32_108 = arith.constant 2 : i32
    %316 = tpu.dynamic_rotate %313 by %c2_i32_108 dim 0 : vector<16x32xf32>, i32 -> vector<16x32xf32>
    %c14_i32_109 = arith.constant 14 : i32
    %317 = tpu.dynamic_rotate %313 by %c14_i32_109 dim 0 : vector<16x32xf32>, i32 -> vector<16x32xf32>
    %318 = arith.addf %316, %317 : vector<16x32xf32>
    %cst_110 = arith.constant 0.333333313 : f32
    %319 = vector.broadcast %cst_110 : f32 to vector<16x32xf32>
    %320 = arith.mulf %319, %318 : vector<16x32xf32>
    %321 = arith.addf %315, %320 : vector<16x32xf32>
    %322 = arith.truncf %321 : vector<16x32xf32> to vector<16x32xbf16>
    %cst_111 = arith.constant dense<0.000000e+00> : vector<16x32xf32>
    %323 = tpu.matmul %322, %10, %cst_111 {dimension_numbers = #tpu.dot_dimension_numbers<[1], [0], [0], [1], [0, 0, 1, 1], [], []>} : vector<16x32xbf16>, vector<32x32xbf16>, vector<16x32xf32> -> vector<16x32xf32>
    %324 = vector.extract_strided_slice %292 {offsets = [0, 64], sizes = [16, 32], strides = [1, 1]} : vector<16x96xf32> to vector<16x32xf32>
    %325 = arith.addf %324, %323 : vector<16x32xf32>
    %326 = math.tanh %325 : vector<16x32xf32>
    %327 = arith.mulf %312, %291 : vector<16x32xf32>
    %cst_112 = arith.constant 1.000000e+00 : f32
    %328 = vector.broadcast %cst_112 : f32 to vector<16x32xf32>
    %329 = arith.subf %328, %312 : vector<16x32xf32>
    %330 = arith.mulf %329, %326 : vector<16x32xf32>
    %331 = arith.addf %327, %330 : vector<16x32xf32>
    %332 = vector.extract_strided_slice %8 {offsets = [128, 0], sizes = [16, 96], strides = [1, 1]} : vector<192x96xf32> to vector<16x96xf32>
    %cst_113 = arith.constant 0.333333313 : f32
    %333 = vector.broadcast %cst_113 : f32 to vector<16x32xf32>
    %334 = arith.mulf %333, %331 : vector<16x32xf32>
    %c2_i32_114 = arith.constant 2 : i32
    %335 = tpu.dynamic_rotate %331 by %c2_i32_114 dim 0 : vector<16x32xf32>, i32 -> vector<16x32xf32>
    %c14_i32_115 = arith.constant 14 : i32
    %336 = tpu.dynamic_rotate %331 by %c14_i32_115 dim 0 : vector<16x32xf32>, i32 -> vector<16x32xf32>
    %337 = arith.addf %335, %336 : vector<16x32xf32>
    %cst_116 = arith.constant 0.333333313 : f32
    %338 = vector.broadcast %cst_116 : f32 to vector<16x32xf32>
    %339 = arith.mulf %338, %337 : vector<16x32xf32>
    %340 = arith.addf %334, %339 : vector<16x32xf32>
    %341 = arith.truncf %340 : vector<16x32xf32> to vector<16x32xbf16>
    %cst_117 = arith.constant dense<0.000000e+00> : vector<16x64xf32>
    %342 = tpu.matmul %341, %9, %cst_117 {dimension_numbers = #tpu.dot_dimension_numbers<[1], [0], [0], [1], [0, 0, 1, 1], [], []>} : vector<16x32xbf16>, vector<32x64xbf16>, vector<16x64xf32> -> vector<16x64xf32>
    %343 = vector.extract_strided_slice %332 {offsets = [0, 0], sizes = [16, 64], strides = [1, 1]} : vector<16x96xf32> to vector<16x64xf32>
    %344 = arith.addf %343, %342 : vector<16x64xf32>
    %cst_118 = arith.constant 0.000000e+00 : f32
    %345 = vector.broadcast %cst_118 : f32 to vector<16x64xf32>
    %346 = arith.subf %345, %344 : vector<16x64xf32>
    %347 = math.exp %346 : vector<16x64xf32>
    %cst_119 = arith.constant 1.000000e+00 : f32
    %348 = vector.broadcast %cst_119 : f32 to vector<16x64xf32>
    %349 = arith.addf %348, %347 : vector<16x64xf32>
    %350 = tpu.reciprocal %349 {approx = true} : vector<16x64xf32> -> vector<16x64xf32>
    %351 = vector.extract_strided_slice %350 {offsets = [0, 0], sizes = [16, 32], strides = [1, 1]} : vector<16x64xf32> to vector<16x32xf32>
    %352 = vector.extract_strided_slice %350 {offsets = [0, 32], sizes = [16, 32], strides = [1, 1]} : vector<16x64xf32> to vector<16x32xf32>
    %353 = arith.mulf %351, %331 : vector<16x32xf32>
    %cst_120 = arith.constant 0.333333313 : f32
    %354 = vector.broadcast %cst_120 : f32 to vector<16x32xf32>
    %355 = arith.mulf %354, %353 : vector<16x32xf32>
    %c2_i32_121 = arith.constant 2 : i32
    %356 = tpu.dynamic_rotate %353 by %c2_i32_121 dim 0 : vector<16x32xf32>, i32 -> vector<16x32xf32>
    %c14_i32_122 = arith.constant 14 : i32
    %357 = tpu.dynamic_rotate %353 by %c14_i32_122 dim 0 : vector<16x32xf32>, i32 -> vector<16x32xf32>
    %358 = arith.addf %356, %357 : vector<16x32xf32>
    %cst_123 = arith.constant 0.333333313 : f32
    %359 = vector.broadcast %cst_123 : f32 to vector<16x32xf32>
    %360 = arith.mulf %359, %358 : vector<16x32xf32>
    %361 = arith.addf %355, %360 : vector<16x32xf32>
    %362 = arith.truncf %361 : vector<16x32xf32> to vector<16x32xbf16>
    %cst_124 = arith.constant dense<0.000000e+00> : vector<16x32xf32>
    %363 = tpu.matmul %362, %10, %cst_124 {dimension_numbers = #tpu.dot_dimension_numbers<[1], [0], [0], [1], [0, 0, 1, 1], [], []>} : vector<16x32xbf16>, vector<32x32xbf16>, vector<16x32xf32> -> vector<16x32xf32>
    %364 = vector.extract_strided_slice %332 {offsets = [0, 64], sizes = [16, 32], strides = [1, 1]} : vector<16x96xf32> to vector<16x32xf32>
    %365 = arith.addf %364, %363 : vector<16x32xf32>
    %366 = math.tanh %365 : vector<16x32xf32>
    %367 = arith.mulf %352, %331 : vector<16x32xf32>
    %cst_125 = arith.constant 1.000000e+00 : f32
    %368 = vector.broadcast %cst_125 : f32 to vector<16x32xf32>
    %369 = arith.subf %368, %352 : vector<16x32xf32>
    %370 = arith.mulf %369, %366 : vector<16x32xf32>
    %371 = arith.addf %367, %370 : vector<16x32xf32>
    %372 = vector.extract_strided_slice %8 {offsets = [144, 0], sizes = [16, 96], strides = [1, 1]} : vector<192x96xf32> to vector<16x96xf32>
    %cst_126 = arith.constant 0.333333313 : f32
    %373 = vector.broadcast %cst_126 : f32 to vector<16x32xf32>
    %374 = arith.mulf %373, %371 : vector<16x32xf32>
    %c2_i32_127 = arith.constant 2 : i32
    %375 = tpu.dynamic_rotate %371 by %c2_i32_127 dim 0 : vector<16x32xf32>, i32 -> vector<16x32xf32>
    %c14_i32_128 = arith.constant 14 : i32
    %376 = tpu.dynamic_rotate %371 by %c14_i32_128 dim 0 : vector<16x32xf32>, i32 -> vector<16x32xf32>
    %377 = arith.addf %375, %376 : vector<16x32xf32>
    %cst_129 = arith.constant 0.333333313 : f32
    %378 = vector.broadcast %cst_129 : f32 to vector<16x32xf32>
    %379 = arith.mulf %378, %377 : vector<16x32xf32>
    %380 = arith.addf %374, %379 : vector<16x32xf32>
    %381 = arith.truncf %380 : vector<16x32xf32> to vector<16x32xbf16>
    %cst_130 = arith.constant dense<0.000000e+00> : vector<16x64xf32>
    %382 = tpu.matmul %381, %9, %cst_130 {dimension_numbers = #tpu.dot_dimension_numbers<[1], [0], [0], [1], [0, 0, 1, 1], [], []>} : vector<16x32xbf16>, vector<32x64xbf16>, vector<16x64xf32> -> vector<16x64xf32>
    %383 = vector.extract_strided_slice %372 {offsets = [0, 0], sizes = [16, 64], strides = [1, 1]} : vector<16x96xf32> to vector<16x64xf32>
    %384 = arith.addf %383, %382 : vector<16x64xf32>
    %cst_131 = arith.constant 0.000000e+00 : f32
    %385 = vector.broadcast %cst_131 : f32 to vector<16x64xf32>
    %386 = arith.subf %385, %384 : vector<16x64xf32>
    %387 = math.exp %386 : vector<16x64xf32>
    %cst_132 = arith.constant 1.000000e+00 : f32
    %388 = vector.broadcast %cst_132 : f32 to vector<16x64xf32>
    %389 = arith.addf %388, %387 : vector<16x64xf32>
    %390 = tpu.reciprocal %389 {approx = true} : vector<16x64xf32> -> vector<16x64xf32>
    %391 = vector.extract_strided_slice %390 {offsets = [0, 0], sizes = [16, 32], strides = [1, 1]} : vector<16x64xf32> to vector<16x32xf32>
    %392 = vector.extract_strided_slice %390 {offsets = [0, 32], sizes = [16, 32], strides = [1, 1]} : vector<16x64xf32> to vector<16x32xf32>
    %393 = arith.mulf %391, %371 : vector<16x32xf32>
    %cst_133 = arith.constant 0.333333313 : f32
    %394 = vector.broadcast %cst_133 : f32 to vector<16x32xf32>
    %395 = arith.mulf %394, %393 : vector<16x32xf32>
    %c2_i32_134 = arith.constant 2 : i32
    %396 = tpu.dynamic_rotate %393 by %c2_i32_134 dim 0 : vector<16x32xf32>, i32 -> vector<16x32xf32>
    %c14_i32_135 = arith.constant 14 : i32
    %397 = tpu.dynamic_rotate %393 by %c14_i32_135 dim 0 : vector<16x32xf32>, i32 -> vector<16x32xf32>
    %398 = arith.addf %396, %397 : vector<16x32xf32>
    %cst_136 = arith.constant 0.333333313 : f32
    %399 = vector.broadcast %cst_136 : f32 to vector<16x32xf32>
    %400 = arith.mulf %399, %398 : vector<16x32xf32>
    %401 = arith.addf %395, %400 : vector<16x32xf32>
    %402 = arith.truncf %401 : vector<16x32xf32> to vector<16x32xbf16>
    %cst_137 = arith.constant dense<0.000000e+00> : vector<16x32xf32>
    %403 = tpu.matmul %402, %10, %cst_137 {dimension_numbers = #tpu.dot_dimension_numbers<[1], [0], [0], [1], [0, 0, 1, 1], [], []>} : vector<16x32xbf16>, vector<32x32xbf16>, vector<16x32xf32> -> vector<16x32xf32>
    %404 = vector.extract_strided_slice %372 {offsets = [0, 64], sizes = [16, 32], strides = [1, 1]} : vector<16x96xf32> to vector<16x32xf32>
    %405 = arith.addf %404, %403 : vector<16x32xf32>
    %406 = math.tanh %405 : vector<16x32xf32>
    %407 = arith.mulf %392, %371 : vector<16x32xf32>
    %cst_138 = arith.constant 1.000000e+00 : f32
    %408 = vector.broadcast %cst_138 : f32 to vector<16x32xf32>
    %409 = arith.subf %408, %392 : vector<16x32xf32>
    %410 = arith.mulf %409, %406 : vector<16x32xf32>
    %411 = arith.addf %407, %410 : vector<16x32xf32>
    %412 = vector.extract_strided_slice %8 {offsets = [160, 0], sizes = [16, 96], strides = [1, 1]} : vector<192x96xf32> to vector<16x96xf32>
    %cst_139 = arith.constant 0.333333313 : f32
    %413 = vector.broadcast %cst_139 : f32 to vector<16x32xf32>
    %414 = arith.mulf %413, %411 : vector<16x32xf32>
    %c2_i32_140 = arith.constant 2 : i32
    %415 = tpu.dynamic_rotate %411 by %c2_i32_140 dim 0 : vector<16x32xf32>, i32 -> vector<16x32xf32>
    %c14_i32_141 = arith.constant 14 : i32
    %416 = tpu.dynamic_rotate %411 by %c14_i32_141 dim 0 : vector<16x32xf32>, i32 -> vector<16x32xf32>
    %417 = arith.addf %415, %416 : vector<16x32xf32>
    %cst_142 = arith.constant 0.333333313 : f32
    %418 = vector.broadcast %cst_142 : f32 to vector<16x32xf32>
    %419 = arith.mulf %418, %417 : vector<16x32xf32>
    %420 = arith.addf %414, %419 : vector<16x32xf32>
    %421 = arith.truncf %420 : vector<16x32xf32> to vector<16x32xbf16>
    %cst_143 = arith.constant dense<0.000000e+00> : vector<16x64xf32>
    %422 = tpu.matmul %421, %9, %cst_143 {dimension_numbers = #tpu.dot_dimension_numbers<[1], [0], [0], [1], [0, 0, 1, 1], [], []>} : vector<16x32xbf16>, vector<32x64xbf16>, vector<16x64xf32> -> vector<16x64xf32>
    %423 = vector.extract_strided_slice %412 {offsets = [0, 0], sizes = [16, 64], strides = [1, 1]} : vector<16x96xf32> to vector<16x64xf32>
    %424 = arith.addf %423, %422 : vector<16x64xf32>
    %cst_144 = arith.constant 0.000000e+00 : f32
    %425 = vector.broadcast %cst_144 : f32 to vector<16x64xf32>
    %426 = arith.subf %425, %424 : vector<16x64xf32>
    %427 = math.exp %426 : vector<16x64xf32>
    %cst_145 = arith.constant 1.000000e+00 : f32
    %428 = vector.broadcast %cst_145 : f32 to vector<16x64xf32>
    %429 = arith.addf %428, %427 : vector<16x64xf32>
    %430 = tpu.reciprocal %429 {approx = true} : vector<16x64xf32> -> vector<16x64xf32>
    %431 = vector.extract_strided_slice %430 {offsets = [0, 0], sizes = [16, 32], strides = [1, 1]} : vector<16x64xf32> to vector<16x32xf32>
    %432 = vector.extract_strided_slice %430 {offsets = [0, 32], sizes = [16, 32], strides = [1, 1]} : vector<16x64xf32> to vector<16x32xf32>
    %433 = arith.mulf %431, %411 : vector<16x32xf32>
    %cst_146 = arith.constant 0.333333313 : f32
    %434 = vector.broadcast %cst_146 : f32 to vector<16x32xf32>
    %435 = arith.mulf %434, %433 : vector<16x32xf32>
    %c2_i32_147 = arith.constant 2 : i32
    %436 = tpu.dynamic_rotate %433 by %c2_i32_147 dim 0 : vector<16x32xf32>, i32 -> vector<16x32xf32>
    %c14_i32_148 = arith.constant 14 : i32
    %437 = tpu.dynamic_rotate %433 by %c14_i32_148 dim 0 : vector<16x32xf32>, i32 -> vector<16x32xf32>
    %438 = arith.addf %436, %437 : vector<16x32xf32>
    %cst_149 = arith.constant 0.333333313 : f32
    %439 = vector.broadcast %cst_149 : f32 to vector<16x32xf32>
    %440 = arith.mulf %439, %438 : vector<16x32xf32>
    %441 = arith.addf %435, %440 : vector<16x32xf32>
    %442 = arith.truncf %441 : vector<16x32xf32> to vector<16x32xbf16>
    %cst_150 = arith.constant dense<0.000000e+00> : vector<16x32xf32>
    %443 = tpu.matmul %442, %10, %cst_150 {dimension_numbers = #tpu.dot_dimension_numbers<[1], [0], [0], [1], [0, 0, 1, 1], [], []>} : vector<16x32xbf16>, vector<32x32xbf16>, vector<16x32xf32> -> vector<16x32xf32>
    %444 = vector.extract_strided_slice %412 {offsets = [0, 64], sizes = [16, 32], strides = [1, 1]} : vector<16x96xf32> to vector<16x32xf32>
    %445 = arith.addf %444, %443 : vector<16x32xf32>
    %446 = math.tanh %445 : vector<16x32xf32>
    %447 = arith.mulf %432, %411 : vector<16x32xf32>
    %cst_151 = arith.constant 1.000000e+00 : f32
    %448 = vector.broadcast %cst_151 : f32 to vector<16x32xf32>
    %449 = arith.subf %448, %432 : vector<16x32xf32>
    %450 = arith.mulf %449, %446 : vector<16x32xf32>
    %451 = arith.addf %447, %450 : vector<16x32xf32>
    %452 = vector.extract_strided_slice %8 {offsets = [176, 0], sizes = [16, 96], strides = [1, 1]} : vector<192x96xf32> to vector<16x96xf32>
    %cst_152 = arith.constant 0.333333313 : f32
    %453 = vector.broadcast %cst_152 : f32 to vector<16x32xf32>
    %454 = arith.mulf %453, %451 : vector<16x32xf32>
    %c2_i32_153 = arith.constant 2 : i32
    %455 = tpu.dynamic_rotate %451 by %c2_i32_153 dim 0 : vector<16x32xf32>, i32 -> vector<16x32xf32>
    %c14_i32_154 = arith.constant 14 : i32
    %456 = tpu.dynamic_rotate %451 by %c14_i32_154 dim 0 : vector<16x32xf32>, i32 -> vector<16x32xf32>
    %457 = arith.addf %455, %456 : vector<16x32xf32>
    %cst_155 = arith.constant 0.333333313 : f32
    %458 = vector.broadcast %cst_155 : f32 to vector<16x32xf32>
    %459 = arith.mulf %458, %457 : vector<16x32xf32>
    %460 = arith.addf %454, %459 : vector<16x32xf32>
    %461 = arith.truncf %460 : vector<16x32xf32> to vector<16x32xbf16>
    %cst_156 = arith.constant dense<0.000000e+00> : vector<16x64xf32>
    %462 = tpu.matmul %461, %9, %cst_156 {dimension_numbers = #tpu.dot_dimension_numbers<[1], [0], [0], [1], [0, 0, 1, 1], [], []>} : vector<16x32xbf16>, vector<32x64xbf16>, vector<16x64xf32> -> vector<16x64xf32>
    %463 = vector.extract_strided_slice %452 {offsets = [0, 0], sizes = [16, 64], strides = [1, 1]} : vector<16x96xf32> to vector<16x64xf32>
    %464 = arith.addf %463, %462 : vector<16x64xf32>
    %cst_157 = arith.constant 0.000000e+00 : f32
    %465 = vector.broadcast %cst_157 : f32 to vector<16x64xf32>
    %466 = arith.subf %465, %464 : vector<16x64xf32>
    %467 = math.exp %466 : vector<16x64xf32>
    %cst_158 = arith.constant 1.000000e+00 : f32
    %468 = vector.broadcast %cst_158 : f32 to vector<16x64xf32>
    %469 = arith.addf %468, %467 : vector<16x64xf32>
    %470 = tpu.reciprocal %469 {approx = true} : vector<16x64xf32> -> vector<16x64xf32>
    %471 = vector.extract_strided_slice %470 {offsets = [0, 0], sizes = [16, 32], strides = [1, 1]} : vector<16x64xf32> to vector<16x32xf32>
    %472 = vector.extract_strided_slice %470 {offsets = [0, 32], sizes = [16, 32], strides = [1, 1]} : vector<16x64xf32> to vector<16x32xf32>
    %473 = arith.mulf %471, %451 : vector<16x32xf32>
    %cst_159 = arith.constant 0.333333313 : f32
    %474 = vector.broadcast %cst_159 : f32 to vector<16x32xf32>
    %475 = arith.mulf %474, %473 : vector<16x32xf32>
    %c2_i32_160 = arith.constant 2 : i32
    %476 = tpu.dynamic_rotate %473 by %c2_i32_160 dim 0 : vector<16x32xf32>, i32 -> vector<16x32xf32>
    %c14_i32_161 = arith.constant 14 : i32
    %477 = tpu.dynamic_rotate %473 by %c14_i32_161 dim 0 : vector<16x32xf32>, i32 -> vector<16x32xf32>
    %478 = arith.addf %476, %477 : vector<16x32xf32>
    %cst_162 = arith.constant 0.333333313 : f32
    %479 = vector.broadcast %cst_162 : f32 to vector<16x32xf32>
    %480 = arith.mulf %479, %478 : vector<16x32xf32>
    %481 = arith.addf %475, %480 : vector<16x32xf32>
    %482 = arith.truncf %481 : vector<16x32xf32> to vector<16x32xbf16>
    %cst_163 = arith.constant dense<0.000000e+00> : vector<16x32xf32>
    %483 = tpu.matmul %482, %10, %cst_163 {dimension_numbers = #tpu.dot_dimension_numbers<[1], [0], [0], [1], [0, 0, 1, 1], [], []>} : vector<16x32xbf16>, vector<32x32xbf16>, vector<16x32xf32> -> vector<16x32xf32>
    %484 = vector.extract_strided_slice %452 {offsets = [0, 64], sizes = [16, 32], strides = [1, 1]} : vector<16x96xf32> to vector<16x32xf32>
    %485 = arith.addf %484, %483 : vector<16x32xf32>
    %486 = math.tanh %485 : vector<16x32xf32>
    %487 = arith.mulf %472, %451 : vector<16x32xf32>
    %cst_164 = arith.constant 1.000000e+00 : f32
    %488 = vector.broadcast %cst_164 : f32 to vector<16x32xf32>
    %489 = arith.subf %488, %472 : vector<16x32xf32>
    %490 = arith.mulf %489, %486 : vector<16x32xf32>
    %491 = arith.addf %487, %490 : vector<16x32xf32>
    %c0_165 = arith.constant 0 : index
    %c0_166 = arith.constant 0 : index
    %492 = vector.load %arg5[%c0_165, %c0_166] : memref<16x32xf32, #tpu.memory_space<vmem>>, vector<16x32xf32>
    tpu.vector_store %arg5[%c0_165, %c0_166], %491 {strides = array<i32>} : memref<16x32xf32, #tpu.memory_space<vmem>>, vector<16x32xf32>,
    %c0_167 = arith.constant 0 : index
    %c0_168 = arith.constant 0 : index
    %493 = vector.load %arg4[%c0_167, %c0_168] : memref<40x16xf32, #tpu.memory_space<vmem>>, vector<40x16xf32>
    %494 = vector.extract_strided_slice %493 {offsets = [0, 0], sizes = [16, 16], strides = [1, 1]} : vector<40x16xf32> to vector<16x16xf32>
    %495 = vector.extract_strided_slice %493 {offsets = [16, 0], sizes = [16, 3], strides = [1, 1]} : vector<40x16xf32> to vector<16x3xf32>
    %496 = arith.truncf %495 : vector<16x3xf32> to vector<16x3xbf16>
    %497 = vector.extract_strided_slice %493 {offsets = [32, 0], sizes = [1, 3], strides = [1, 1]} : vector<40x16xf32> to vector<1x3xf32>
    %498 = vector.extract_strided_slice %491 {offsets = [0, 0], sizes = [16, 16], strides = [1, 1]} : vector<16x32xf32> to vector<16x16xf32>
    %499 = vector.extract_strided_slice %491 {offsets = [0, 16], sizes = [16, 16], strides = [1, 1]} : vector<16x32xf32> to vector<16x16xf32>
    %cst_169 = arith.constant 0.000000e+00 : f32
    %500 = vector.broadcast %cst_169 : f32 to vector<16x16xf32>
    %501 = arith.maximumf %499, %500 : vector<16x16xf32>
    %502 = math.absf %499 : vector<16x16xf32>
    %cst_170 = arith.constant 0.000000e+00 : f32
    %503 = vector.broadcast %cst_170 : f32 to vector<16x16xf32>
    %504 = arith.subf %503, %502 : vector<16x16xf32>
    %505 = math.exp %504 : vector<16x16xf32>
    %cst_171 = arith.constant 1.000000e+00 : f32
    %506 = vector.broadcast %cst_171 : f32 to vector<16x16xf32>
    %507 = arith.addf %506, %505 : vector<16x16xf32>
    %508 = math.log %507 : vector<16x16xf32>
    %509 = arith.addf %501, %508 : vector<16x16xf32>
    %510 = arith.mulf %494, %509 : vector<16x16xf32>
    %511 = arith.addf %498, %510 : vector<16x16xf32>
    %512 = arith.truncf %511 : vector<16x16xf32> to vector<16x16xbf16>
    %cst_172 = arith.constant dense<0.000000e+00> : vector<16x3xf32>
    %513 = tpu.matmul %512, %496, %cst_172 {dimension_numbers = #tpu.dot_dimension_numbers<[1], [0], [0], [1], [0, 0, 1, 1], [], []>} : vector<16x16xbf16>, vector<16x3xbf16>, vector<16x3xf32> -> vector<16x3xf32>
    %514 = vector.broadcast %497 : vector<1x3xf32> to vector<16x3xf32>
    %515 = arith.addf %513, %514 : vector<16x3xf32>
    %c0_173 = arith.constant 0 : index
    %c0_174 = arith.constant 0 : index
    %516 = vector.load %arg6[%c0_173, %c0_174] : memref<16x3xf32, #tpu.memory_space<vmem>>, vector<16x3xf32>
    tpu.vector_store %arg6[%c0_173, %c0_174], %515 {strides = array<i32>} : memref<16x3xf32, #tpu.memory_space<vmem>>, vector<16x3xf32>,
    return
  }
}

module attributes {stable_mosaic.version = 11 : i64} {
  func.func @_tgcn_fused_kernel(%arg0: memref<192x16xf32, #tpu.memory_space<vmem>>, %arg1: memref<192x192xbf16, #tpu.memory_space<vmem>>, %arg2: memref<96x96xbf16, #tpu.memory_space<vmem>>, %arg3: memref<192x96xf32, #tpu.memory_space<vmem>>, %arg4: memref<40x16xf32, #tpu.memory_space<vmem>>, %arg5: memref<16x32xf32, #tpu.memory_space<vmem>>, %arg6: memref<16x3xf32, #tpu.memory_space<vmem>>) attributes {dimension_semantics = [], scalar_prefetch = 0 : i64, scratch_operands = 0 : i64, tpu.core_type = #tpu.core_type<tc>} {
    %c0 = arith.constant 0 : index
    %c0_0 = arith.constant 0 : index
    %0 = vector.load %arg1[%c0, %c0_0] : memref<192x192xbf16, #tpu.memory_space<vmem>>, vector<192x192xbf16>
    %c0_1 = arith.constant 0 : index
    %c0_2 = arith.constant 0 : index
    %1 = vector.load %arg0[%c0_1, %c0_2] : memref<192x16xf32, #tpu.memory_space<vmem>>, vector<192x16xf32>
    %2 = arith.truncf %1 : vector<192x16xf32> to vector<192x16xbf16>
    %cst = arith.constant dense<0.000000e+00> : vector<192x16xf32>
    %3 = tpu.matmul %0, %2, %cst {dimension_numbers = #tpu.dot_dimension_numbers<[1], [0], [0], [1], [0, 0, 1, 1], [], []>} : vector<192x192xbf16>, vector<192x16xbf16>, vector<192x16xf32> -> vector<192x16xf32>
    %c0_3 = arith.constant 0 : index
    %c0_4 = arith.constant 0 : index
    %4 = vector.load %arg2[%c0_3, %c0_4] : memref<96x96xbf16, #tpu.memory_space<vmem>>, vector<16x96xbf16>
    %5 = arith.truncf %3 : vector<192x16xf32> to vector<192x16xbf16>
    %cst_5 = arith.constant dense<0.000000e+00> : vector<192x96xf32>
    %6 = tpu.matmul %5, %4, %cst_5 {dimension_numbers = #tpu.dot_dimension_numbers<[1], [0], [0], [1], [0, 0, 1, 1], [], []>} : vector<192x16xbf16>, vector<16x96xbf16>, vector<192x96xf32> -> vector<192x96xf32>
    %c0_6 = arith.constant 0 : index
    %c0_7 = arith.constant 0 : index
    %7 = vector.load %arg3[%c0_6, %c0_7] : memref<192x96xf32, #tpu.memory_space<vmem>>, vector<192x96xf32>
    %8 = arith.addf %6, %7 : vector<192x96xf32>
    %c16 = arith.constant 16 : index
    %c0_8 = arith.constant 0 : index
    %9 = vector.load %arg2[%c16, %c0_8] : memref<96x96xbf16, #tpu.memory_space<vmem>>, vector<32x64xbf16>
    %c48 = arith.constant 48 : index
    %c0_9 = arith.constant 0 : index
    %10 = vector.load %arg2[%c48, %c0_9] : memref<96x96xbf16, #tpu.memory_space<vmem>>, vector<32x32xbf16>
    %c80 = arith.constant 80 : index
    %c0_10 = arith.constant 0 : index
    %11 = vector.load %arg2[%c80, %c0_10] : memref<96x96xbf16, #tpu.memory_space<vmem>>, vector<16x16xbf16>
    %cst_11 = arith.constant 0.000000e+00 : f32
    %12 = vector.broadcast %cst_11 : f32 to vector<16x32xf32>
    %13 = vector.extract_strided_slice %8 {offsets = [0, 0], sizes = [16, 96], strides = [1, 1]} : vector<192x96xf32> to vector<16x96xf32>
    %14 = arith.truncf %12 : vector<16x32xf32> to vector<16x32xbf16>
    %cst_12 = arith.constant dense<0.000000e+00> : vector<16x32xf32>
    %15 = tpu.matmul %11, %14, %cst_12 {dimension_numbers = #tpu.dot_dimension_numbers<[1], [0], [0], [1], [0, 0, 1, 1], [], []>} : vector<16x16xbf16>, vector<16x32xbf16>, vector<16x32xf32> -> vector<16x32xf32>
    %16 = arith.truncf %15 : vector<16x32xf32> to vector<16x32xbf16>
    %cst_13 = arith.constant dense<0.000000e+00> : vector<16x64xf32>
    %17 = tpu.matmul %16, %9, %cst_13 {dimension_numbers = #tpu.dot_dimension_numbers<[1], [0], [0], [1], [0, 0, 1, 1], [], []>} : vector<16x32xbf16>, vector<32x64xbf16>, vector<16x64xf32> -> vector<16x64xf32>
    %18 = vector.extract_strided_slice %13 {offsets = [0, 0], sizes = [16, 64], strides = [1, 1]} : vector<16x96xf32> to vector<16x64xf32>
    %19 = arith.addf %18, %17 : vector<16x64xf32>
    %cst_14 = arith.constant 0.000000e+00 : f32
    %20 = vector.broadcast %cst_14 : f32 to vector<16x64xf32>
    %21 = arith.subf %20, %19 : vector<16x64xf32>
    %22 = math.exp %21 : vector<16x64xf32>
    %cst_15 = arith.constant 1.000000e+00 : f32
    %23 = vector.broadcast %cst_15 : f32 to vector<16x64xf32>
    %24 = arith.addf %23, %22 : vector<16x64xf32>
    %25 = tpu.reciprocal %24 {approx = true} : vector<16x64xf32> -> vector<16x64xf32>
    %26 = vector.extract_strided_slice %25 {offsets = [0, 0], sizes = [16, 32], strides = [1, 1]} : vector<16x64xf32> to vector<16x32xf32>
    %27 = vector.extract_strided_slice %25 {offsets = [0, 32], sizes = [16, 32], strides = [1, 1]} : vector<16x64xf32> to vector<16x32xf32>
    %28 = arith.mulf %26, %12 : vector<16x32xf32>
    %29 = arith.truncf %28 : vector<16x32xf32> to vector<16x32xbf16>
    %cst_16 = arith.constant dense<0.000000e+00> : vector<16x32xf32>
    %30 = tpu.matmul %11, %29, %cst_16 {dimension_numbers = #tpu.dot_dimension_numbers<[1], [0], [0], [1], [0, 0, 1, 1], [], []>} : vector<16x16xbf16>, vector<16x32xbf16>, vector<16x32xf32> -> vector<16x32xf32>
    %31 = arith.truncf %30 : vector<16x32xf32> to vector<16x32xbf16>
    %cst_17 = arith.constant dense<0.000000e+00> : vector<16x32xf32>
    %32 = tpu.matmul %31, %10, %cst_17 {dimension_numbers = #tpu.dot_dimension_numbers<[1], [0], [0], [1], [0, 0, 1, 1], [], []>} : vector<16x32xbf16>, vector<32x32xbf16>, vector<16x32xf32> -> vector<16x32xf32>
    %33 = vector.extract_strided_slice %13 {offsets = [0, 64], sizes = [16, 32], strides = [1, 1]} : vector<16x96xf32> to vector<16x32xf32>
    %34 = arith.addf %33, %32 : vector<16x32xf32>
    %35 = math.tanh %34 : vector<16x32xf32>
    %36 = arith.mulf %27, %12 : vector<16x32xf32>
    %cst_18 = arith.constant 1.000000e+00 : f32
    %37 = vector.broadcast %cst_18 : f32 to vector<16x32xf32>
    %38 = arith.subf %37, %27 : vector<16x32xf32>
    %39 = arith.mulf %38, %35 : vector<16x32xf32>
    %40 = arith.addf %36, %39 : vector<16x32xf32>
    %41 = vector.extract_strided_slice %8 {offsets = [16, 0], sizes = [16, 96], strides = [1, 1]} : vector<192x96xf32> to vector<16x96xf32>
    %42 = arith.truncf %40 : vector<16x32xf32> to vector<16x32xbf16>
    %cst_19 = arith.constant dense<0.000000e+00> : vector<16x32xf32>
    %43 = tpu.matmul %11, %42, %cst_19 {dimension_numbers = #tpu.dot_dimension_numbers<[1], [0], [0], [1], [0, 0, 1, 1], [], []>} : vector<16x16xbf16>, vector<16x32xbf16>, vector<16x32xf32> -> vector<16x32xf32>
    %44 = arith.truncf %43 : vector<16x32xf32> to vector<16x32xbf16>
    %cst_20 = arith.constant dense<0.000000e+00> : vector<16x64xf32>
    %45 = tpu.matmul %44, %9, %cst_20 {dimension_numbers = #tpu.dot_dimension_numbers<[1], [0], [0], [1], [0, 0, 1, 1], [], []>} : vector<16x32xbf16>, vector<32x64xbf16>, vector<16x64xf32> -> vector<16x64xf32>
    %46 = vector.extract_strided_slice %41 {offsets = [0, 0], sizes = [16, 64], strides = [1, 1]} : vector<16x96xf32> to vector<16x64xf32>
    %47 = arith.addf %46, %45 : vector<16x64xf32>
    %cst_21 = arith.constant 0.000000e+00 : f32
    %48 = vector.broadcast %cst_21 : f32 to vector<16x64xf32>
    %49 = arith.subf %48, %47 : vector<16x64xf32>
    %50 = math.exp %49 : vector<16x64xf32>
    %cst_22 = arith.constant 1.000000e+00 : f32
    %51 = vector.broadcast %cst_22 : f32 to vector<16x64xf32>
    %52 = arith.addf %51, %50 : vector<16x64xf32>
    %53 = tpu.reciprocal %52 {approx = true} : vector<16x64xf32> -> vector<16x64xf32>
    %54 = vector.extract_strided_slice %53 {offsets = [0, 0], sizes = [16, 32], strides = [1, 1]} : vector<16x64xf32> to vector<16x32xf32>
    %55 = vector.extract_strided_slice %53 {offsets = [0, 32], sizes = [16, 32], strides = [1, 1]} : vector<16x64xf32> to vector<16x32xf32>
    %56 = arith.mulf %54, %40 : vector<16x32xf32>
    %57 = arith.truncf %56 : vector<16x32xf32> to vector<16x32xbf16>
    %cst_23 = arith.constant dense<0.000000e+00> : vector<16x32xf32>
    %58 = tpu.matmul %11, %57, %cst_23 {dimension_numbers = #tpu.dot_dimension_numbers<[1], [0], [0], [1], [0, 0, 1, 1], [], []>} : vector<16x16xbf16>, vector<16x32xbf16>, vector<16x32xf32> -> vector<16x32xf32>
    %59 = arith.truncf %58 : vector<16x32xf32> to vector<16x32xbf16>
    %cst_24 = arith.constant dense<0.000000e+00> : vector<16x32xf32>
    %60 = tpu.matmul %59, %10, %cst_24 {dimension_numbers = #tpu.dot_dimension_numbers<[1], [0], [0], [1], [0, 0, 1, 1], [], []>} : vector<16x32xbf16>, vector<32x32xbf16>, vector<16x32xf32> -> vector<16x32xf32>
    %61 = vector.extract_strided_slice %41 {offsets = [0, 64], sizes = [16, 32], strides = [1, 1]} : vector<16x96xf32> to vector<16x32xf32>
    %62 = arith.addf %61, %60 : vector<16x32xf32>
    %63 = math.tanh %62 : vector<16x32xf32>
    %64 = arith.mulf %55, %40 : vector<16x32xf32>
    %cst_25 = arith.constant 1.000000e+00 : f32
    %65 = vector.broadcast %cst_25 : f32 to vector<16x32xf32>
    %66 = arith.subf %65, %55 : vector<16x32xf32>
    %67 = arith.mulf %66, %63 : vector<16x32xf32>
    %68 = arith.addf %64, %67 : vector<16x32xf32>
    %69 = vector.extract_strided_slice %8 {offsets = [32, 0], sizes = [16, 96], strides = [1, 1]} : vector<192x96xf32> to vector<16x96xf32>
    %70 = arith.truncf %68 : vector<16x32xf32> to vector<16x32xbf16>
    %cst_26 = arith.constant dense<0.000000e+00> : vector<16x32xf32>
    %71 = tpu.matmul %11, %70, %cst_26 {dimension_numbers = #tpu.dot_dimension_numbers<[1], [0], [0], [1], [0, 0, 1, 1], [], []>} : vector<16x16xbf16>, vector<16x32xbf16>, vector<16x32xf32> -> vector<16x32xf32>
    %72 = arith.truncf %71 : vector<16x32xf32> to vector<16x32xbf16>
    %cst_27 = arith.constant dense<0.000000e+00> : vector<16x64xf32>
    %73 = tpu.matmul %72, %9, %cst_27 {dimension_numbers = #tpu.dot_dimension_numbers<[1], [0], [0], [1], [0, 0, 1, 1], [], []>} : vector<16x32xbf16>, vector<32x64xbf16>, vector<16x64xf32> -> vector<16x64xf32>
    %74 = vector.extract_strided_slice %69 {offsets = [0, 0], sizes = [16, 64], strides = [1, 1]} : vector<16x96xf32> to vector<16x64xf32>
    %75 = arith.addf %74, %73 : vector<16x64xf32>
    %cst_28 = arith.constant 0.000000e+00 : f32
    %76 = vector.broadcast %cst_28 : f32 to vector<16x64xf32>
    %77 = arith.subf %76, %75 : vector<16x64xf32>
    %78 = math.exp %77 : vector<16x64xf32>
    %cst_29 = arith.constant 1.000000e+00 : f32
    %79 = vector.broadcast %cst_29 : f32 to vector<16x64xf32>
    %80 = arith.addf %79, %78 : vector<16x64xf32>
    %81 = tpu.reciprocal %80 {approx = true} : vector<16x64xf32> -> vector<16x64xf32>
    %82 = vector.extract_strided_slice %81 {offsets = [0, 0], sizes = [16, 32], strides = [1, 1]} : vector<16x64xf32> to vector<16x32xf32>
    %83 = vector.extract_strided_slice %81 {offsets = [0, 32], sizes = [16, 32], strides = [1, 1]} : vector<16x64xf32> to vector<16x32xf32>
    %84 = arith.mulf %82, %68 : vector<16x32xf32>
    %85 = arith.truncf %84 : vector<16x32xf32> to vector<16x32xbf16>
    %cst_30 = arith.constant dense<0.000000e+00> : vector<16x32xf32>
    %86 = tpu.matmul %11, %85, %cst_30 {dimension_numbers = #tpu.dot_dimension_numbers<[1], [0], [0], [1], [0, 0, 1, 1], [], []>} : vector<16x16xbf16>, vector<16x32xbf16>, vector<16x32xf32> -> vector<16x32xf32>
    %87 = arith.truncf %86 : vector<16x32xf32> to vector<16x32xbf16>
    %cst_31 = arith.constant dense<0.000000e+00> : vector<16x32xf32>
    %88 = tpu.matmul %87, %10, %cst_31 {dimension_numbers = #tpu.dot_dimension_numbers<[1], [0], [0], [1], [0, 0, 1, 1], [], []>} : vector<16x32xbf16>, vector<32x32xbf16>, vector<16x32xf32> -> vector<16x32xf32>
    %89 = vector.extract_strided_slice %69 {offsets = [0, 64], sizes = [16, 32], strides = [1, 1]} : vector<16x96xf32> to vector<16x32xf32>
    %90 = arith.addf %89, %88 : vector<16x32xf32>
    %91 = math.tanh %90 : vector<16x32xf32>
    %92 = arith.mulf %83, %68 : vector<16x32xf32>
    %cst_32 = arith.constant 1.000000e+00 : f32
    %93 = vector.broadcast %cst_32 : f32 to vector<16x32xf32>
    %94 = arith.subf %93, %83 : vector<16x32xf32>
    %95 = arith.mulf %94, %91 : vector<16x32xf32>
    %96 = arith.addf %92, %95 : vector<16x32xf32>
    %97 = vector.extract_strided_slice %8 {offsets = [48, 0], sizes = [16, 96], strides = [1, 1]} : vector<192x96xf32> to vector<16x96xf32>
    %98 = arith.truncf %96 : vector<16x32xf32> to vector<16x32xbf16>
    %cst_33 = arith.constant dense<0.000000e+00> : vector<16x32xf32>
    %99 = tpu.matmul %11, %98, %cst_33 {dimension_numbers = #tpu.dot_dimension_numbers<[1], [0], [0], [1], [0, 0, 1, 1], [], []>} : vector<16x16xbf16>, vector<16x32xbf16>, vector<16x32xf32> -> vector<16x32xf32>
    %100 = arith.truncf %99 : vector<16x32xf32> to vector<16x32xbf16>
    %cst_34 = arith.constant dense<0.000000e+00> : vector<16x64xf32>
    %101 = tpu.matmul %100, %9, %cst_34 {dimension_numbers = #tpu.dot_dimension_numbers<[1], [0], [0], [1], [0, 0, 1, 1], [], []>} : vector<16x32xbf16>, vector<32x64xbf16>, vector<16x64xf32> -> vector<16x64xf32>
    %102 = vector.extract_strided_slice %97 {offsets = [0, 0], sizes = [16, 64], strides = [1, 1]} : vector<16x96xf32> to vector<16x64xf32>
    %103 = arith.addf %102, %101 : vector<16x64xf32>
    %cst_35 = arith.constant 0.000000e+00 : f32
    %104 = vector.broadcast %cst_35 : f32 to vector<16x64xf32>
    %105 = arith.subf %104, %103 : vector<16x64xf32>
    %106 = math.exp %105 : vector<16x64xf32>
    %cst_36 = arith.constant 1.000000e+00 : f32
    %107 = vector.broadcast %cst_36 : f32 to vector<16x64xf32>
    %108 = arith.addf %107, %106 : vector<16x64xf32>
    %109 = tpu.reciprocal %108 {approx = true} : vector<16x64xf32> -> vector<16x64xf32>
    %110 = vector.extract_strided_slice %109 {offsets = [0, 0], sizes = [16, 32], strides = [1, 1]} : vector<16x64xf32> to vector<16x32xf32>
    %111 = vector.extract_strided_slice %109 {offsets = [0, 32], sizes = [16, 32], strides = [1, 1]} : vector<16x64xf32> to vector<16x32xf32>
    %112 = arith.mulf %110, %96 : vector<16x32xf32>
    %113 = arith.truncf %112 : vector<16x32xf32> to vector<16x32xbf16>
    %cst_37 = arith.constant dense<0.000000e+00> : vector<16x32xf32>
    %114 = tpu.matmul %11, %113, %cst_37 {dimension_numbers = #tpu.dot_dimension_numbers<[1], [0], [0], [1], [0, 0, 1, 1], [], []>} : vector<16x16xbf16>, vector<16x32xbf16>, vector<16x32xf32> -> vector<16x32xf32>
    %115 = arith.truncf %114 : vector<16x32xf32> to vector<16x32xbf16>
    %cst_38 = arith.constant dense<0.000000e+00> : vector<16x32xf32>
    %116 = tpu.matmul %115, %10, %cst_38 {dimension_numbers = #tpu.dot_dimension_numbers<[1], [0], [0], [1], [0, 0, 1, 1], [], []>} : vector<16x32xbf16>, vector<32x32xbf16>, vector<16x32xf32> -> vector<16x32xf32>
    %117 = vector.extract_strided_slice %97 {offsets = [0, 64], sizes = [16, 32], strides = [1, 1]} : vector<16x96xf32> to vector<16x32xf32>
    %118 = arith.addf %117, %116 : vector<16x32xf32>
    %119 = math.tanh %118 : vector<16x32xf32>
    %120 = arith.mulf %111, %96 : vector<16x32xf32>
    %cst_39 = arith.constant 1.000000e+00 : f32
    %121 = vector.broadcast %cst_39 : f32 to vector<16x32xf32>
    %122 = arith.subf %121, %111 : vector<16x32xf32>
    %123 = arith.mulf %122, %119 : vector<16x32xf32>
    %124 = arith.addf %120, %123 : vector<16x32xf32>
    %125 = vector.extract_strided_slice %8 {offsets = [64, 0], sizes = [16, 96], strides = [1, 1]} : vector<192x96xf32> to vector<16x96xf32>
    %126 = arith.truncf %124 : vector<16x32xf32> to vector<16x32xbf16>
    %cst_40 = arith.constant dense<0.000000e+00> : vector<16x32xf32>
    %127 = tpu.matmul %11, %126, %cst_40 {dimension_numbers = #tpu.dot_dimension_numbers<[1], [0], [0], [1], [0, 0, 1, 1], [], []>} : vector<16x16xbf16>, vector<16x32xbf16>, vector<16x32xf32> -> vector<16x32xf32>
    %128 = arith.truncf %127 : vector<16x32xf32> to vector<16x32xbf16>
    %cst_41 = arith.constant dense<0.000000e+00> : vector<16x64xf32>
    %129 = tpu.matmul %128, %9, %cst_41 {dimension_numbers = #tpu.dot_dimension_numbers<[1], [0], [0], [1], [0, 0, 1, 1], [], []>} : vector<16x32xbf16>, vector<32x64xbf16>, vector<16x64xf32> -> vector<16x64xf32>
    %130 = vector.extract_strided_slice %125 {offsets = [0, 0], sizes = [16, 64], strides = [1, 1]} : vector<16x96xf32> to vector<16x64xf32>
    %131 = arith.addf %130, %129 : vector<16x64xf32>
    %cst_42 = arith.constant 0.000000e+00 : f32
    %132 = vector.broadcast %cst_42 : f32 to vector<16x64xf32>
    %133 = arith.subf %132, %131 : vector<16x64xf32>
    %134 = math.exp %133 : vector<16x64xf32>
    %cst_43 = arith.constant 1.000000e+00 : f32
    %135 = vector.broadcast %cst_43 : f32 to vector<16x64xf32>
    %136 = arith.addf %135, %134 : vector<16x64xf32>
    %137 = tpu.reciprocal %136 {approx = true} : vector<16x64xf32> -> vector<16x64xf32>
    %138 = vector.extract_strided_slice %137 {offsets = [0, 0], sizes = [16, 32], strides = [1, 1]} : vector<16x64xf32> to vector<16x32xf32>
    %139 = vector.extract_strided_slice %137 {offsets = [0, 32], sizes = [16, 32], strides = [1, 1]} : vector<16x64xf32> to vector<16x32xf32>
    %140 = arith.mulf %138, %124 : vector<16x32xf32>
    %141 = arith.truncf %140 : vector<16x32xf32> to vector<16x32xbf16>
    %cst_44 = arith.constant dense<0.000000e+00> : vector<16x32xf32>
    %142 = tpu.matmul %11, %141, %cst_44 {dimension_numbers = #tpu.dot_dimension_numbers<[1], [0], [0], [1], [0, 0, 1, 1], [], []>} : vector<16x16xbf16>, vector<16x32xbf16>, vector<16x32xf32> -> vector<16x32xf32>
    %143 = arith.truncf %142 : vector<16x32xf32> to vector<16x32xbf16>
    %cst_45 = arith.constant dense<0.000000e+00> : vector<16x32xf32>
    %144 = tpu.matmul %143, %10, %cst_45 {dimension_numbers = #tpu.dot_dimension_numbers<[1], [0], [0], [1], [0, 0, 1, 1], [], []>} : vector<16x32xbf16>, vector<32x32xbf16>, vector<16x32xf32> -> vector<16x32xf32>
    %145 = vector.extract_strided_slice %125 {offsets = [0, 64], sizes = [16, 32], strides = [1, 1]} : vector<16x96xf32> to vector<16x32xf32>
    %146 = arith.addf %145, %144 : vector<16x32xf32>
    %147 = math.tanh %146 : vector<16x32xf32>
    %148 = arith.mulf %139, %124 : vector<16x32xf32>
    %cst_46 = arith.constant 1.000000e+00 : f32
    %149 = vector.broadcast %cst_46 : f32 to vector<16x32xf32>
    %150 = arith.subf %149, %139 : vector<16x32xf32>
    %151 = arith.mulf %150, %147 : vector<16x32xf32>
    %152 = arith.addf %148, %151 : vector<16x32xf32>
    %153 = vector.extract_strided_slice %8 {offsets = [80, 0], sizes = [16, 96], strides = [1, 1]} : vector<192x96xf32> to vector<16x96xf32>
    %154 = arith.truncf %152 : vector<16x32xf32> to vector<16x32xbf16>
    %cst_47 = arith.constant dense<0.000000e+00> : vector<16x32xf32>
    %155 = tpu.matmul %11, %154, %cst_47 {dimension_numbers = #tpu.dot_dimension_numbers<[1], [0], [0], [1], [0, 0, 1, 1], [], []>} : vector<16x16xbf16>, vector<16x32xbf16>, vector<16x32xf32> -> vector<16x32xf32>
    %156 = arith.truncf %155 : vector<16x32xf32> to vector<16x32xbf16>
    %cst_48 = arith.constant dense<0.000000e+00> : vector<16x64xf32>
    %157 = tpu.matmul %156, %9, %cst_48 {dimension_numbers = #tpu.dot_dimension_numbers<[1], [0], [0], [1], [0, 0, 1, 1], [], []>} : vector<16x32xbf16>, vector<32x64xbf16>, vector<16x64xf32> -> vector<16x64xf32>
    %158 = vector.extract_strided_slice %153 {offsets = [0, 0], sizes = [16, 64], strides = [1, 1]} : vector<16x96xf32> to vector<16x64xf32>
    %159 = arith.addf %158, %157 : vector<16x64xf32>
    %cst_49 = arith.constant 0.000000e+00 : f32
    %160 = vector.broadcast %cst_49 : f32 to vector<16x64xf32>
    %161 = arith.subf %160, %159 : vector<16x64xf32>
    %162 = math.exp %161 : vector<16x64xf32>
    %cst_50 = arith.constant 1.000000e+00 : f32
    %163 = vector.broadcast %cst_50 : f32 to vector<16x64xf32>
    %164 = arith.addf %163, %162 : vector<16x64xf32>
    %165 = tpu.reciprocal %164 {approx = true} : vector<16x64xf32> -> vector<16x64xf32>
    %166 = vector.extract_strided_slice %165 {offsets = [0, 0], sizes = [16, 32], strides = [1, 1]} : vector<16x64xf32> to vector<16x32xf32>
    %167 = vector.extract_strided_slice %165 {offsets = [0, 32], sizes = [16, 32], strides = [1, 1]} : vector<16x64xf32> to vector<16x32xf32>
    %168 = arith.mulf %166, %152 : vector<16x32xf32>
    %169 = arith.truncf %168 : vector<16x32xf32> to vector<16x32xbf16>
    %cst_51 = arith.constant dense<0.000000e+00> : vector<16x32xf32>
    %170 = tpu.matmul %11, %169, %cst_51 {dimension_numbers = #tpu.dot_dimension_numbers<[1], [0], [0], [1], [0, 0, 1, 1], [], []>} : vector<16x16xbf16>, vector<16x32xbf16>, vector<16x32xf32> -> vector<16x32xf32>
    %171 = arith.truncf %170 : vector<16x32xf32> to vector<16x32xbf16>
    %cst_52 = arith.constant dense<0.000000e+00> : vector<16x32xf32>
    %172 = tpu.matmul %171, %10, %cst_52 {dimension_numbers = #tpu.dot_dimension_numbers<[1], [0], [0], [1], [0, 0, 1, 1], [], []>} : vector<16x32xbf16>, vector<32x32xbf16>, vector<16x32xf32> -> vector<16x32xf32>
    %173 = vector.extract_strided_slice %153 {offsets = [0, 64], sizes = [16, 32], strides = [1, 1]} : vector<16x96xf32> to vector<16x32xf32>
    %174 = arith.addf %173, %172 : vector<16x32xf32>
    %175 = math.tanh %174 : vector<16x32xf32>
    %176 = arith.mulf %167, %152 : vector<16x32xf32>
    %cst_53 = arith.constant 1.000000e+00 : f32
    %177 = vector.broadcast %cst_53 : f32 to vector<16x32xf32>
    %178 = arith.subf %177, %167 : vector<16x32xf32>
    %179 = arith.mulf %178, %175 : vector<16x32xf32>
    %180 = arith.addf %176, %179 : vector<16x32xf32>
    %181 = vector.extract_strided_slice %8 {offsets = [96, 0], sizes = [16, 96], strides = [1, 1]} : vector<192x96xf32> to vector<16x96xf32>
    %182 = arith.truncf %180 : vector<16x32xf32> to vector<16x32xbf16>
    %cst_54 = arith.constant dense<0.000000e+00> : vector<16x32xf32>
    %183 = tpu.matmul %11, %182, %cst_54 {dimension_numbers = #tpu.dot_dimension_numbers<[1], [0], [0], [1], [0, 0, 1, 1], [], []>} : vector<16x16xbf16>, vector<16x32xbf16>, vector<16x32xf32> -> vector<16x32xf32>
    %184 = arith.truncf %183 : vector<16x32xf32> to vector<16x32xbf16>
    %cst_55 = arith.constant dense<0.000000e+00> : vector<16x64xf32>
    %185 = tpu.matmul %184, %9, %cst_55 {dimension_numbers = #tpu.dot_dimension_numbers<[1], [0], [0], [1], [0, 0, 1, 1], [], []>} : vector<16x32xbf16>, vector<32x64xbf16>, vector<16x64xf32> -> vector<16x64xf32>
    %186 = vector.extract_strided_slice %181 {offsets = [0, 0], sizes = [16, 64], strides = [1, 1]} : vector<16x96xf32> to vector<16x64xf32>
    %187 = arith.addf %186, %185 : vector<16x64xf32>
    %cst_56 = arith.constant 0.000000e+00 : f32
    %188 = vector.broadcast %cst_56 : f32 to vector<16x64xf32>
    %189 = arith.subf %188, %187 : vector<16x64xf32>
    %190 = math.exp %189 : vector<16x64xf32>
    %cst_57 = arith.constant 1.000000e+00 : f32
    %191 = vector.broadcast %cst_57 : f32 to vector<16x64xf32>
    %192 = arith.addf %191, %190 : vector<16x64xf32>
    %193 = tpu.reciprocal %192 {approx = true} : vector<16x64xf32> -> vector<16x64xf32>
    %194 = vector.extract_strided_slice %193 {offsets = [0, 0], sizes = [16, 32], strides = [1, 1]} : vector<16x64xf32> to vector<16x32xf32>
    %195 = vector.extract_strided_slice %193 {offsets = [0, 32], sizes = [16, 32], strides = [1, 1]} : vector<16x64xf32> to vector<16x32xf32>
    %196 = arith.mulf %194, %180 : vector<16x32xf32>
    %197 = arith.truncf %196 : vector<16x32xf32> to vector<16x32xbf16>
    %cst_58 = arith.constant dense<0.000000e+00> : vector<16x32xf32>
    %198 = tpu.matmul %11, %197, %cst_58 {dimension_numbers = #tpu.dot_dimension_numbers<[1], [0], [0], [1], [0, 0, 1, 1], [], []>} : vector<16x16xbf16>, vector<16x32xbf16>, vector<16x32xf32> -> vector<16x32xf32>
    %199 = arith.truncf %198 : vector<16x32xf32> to vector<16x32xbf16>
    %cst_59 = arith.constant dense<0.000000e+00> : vector<16x32xf32>
    %200 = tpu.matmul %199, %10, %cst_59 {dimension_numbers = #tpu.dot_dimension_numbers<[1], [0], [0], [1], [0, 0, 1, 1], [], []>} : vector<16x32xbf16>, vector<32x32xbf16>, vector<16x32xf32> -> vector<16x32xf32>
    %201 = vector.extract_strided_slice %181 {offsets = [0, 64], sizes = [16, 32], strides = [1, 1]} : vector<16x96xf32> to vector<16x32xf32>
    %202 = arith.addf %201, %200 : vector<16x32xf32>
    %203 = math.tanh %202 : vector<16x32xf32>
    %204 = arith.mulf %195, %180 : vector<16x32xf32>
    %cst_60 = arith.constant 1.000000e+00 : f32
    %205 = vector.broadcast %cst_60 : f32 to vector<16x32xf32>
    %206 = arith.subf %205, %195 : vector<16x32xf32>
    %207 = arith.mulf %206, %203 : vector<16x32xf32>
    %208 = arith.addf %204, %207 : vector<16x32xf32>
    %209 = vector.extract_strided_slice %8 {offsets = [112, 0], sizes = [16, 96], strides = [1, 1]} : vector<192x96xf32> to vector<16x96xf32>
    %210 = arith.truncf %208 : vector<16x32xf32> to vector<16x32xbf16>
    %cst_61 = arith.constant dense<0.000000e+00> : vector<16x32xf32>
    %211 = tpu.matmul %11, %210, %cst_61 {dimension_numbers = #tpu.dot_dimension_numbers<[1], [0], [0], [1], [0, 0, 1, 1], [], []>} : vector<16x16xbf16>, vector<16x32xbf16>, vector<16x32xf32> -> vector<16x32xf32>
    %212 = arith.truncf %211 : vector<16x32xf32> to vector<16x32xbf16>
    %cst_62 = arith.constant dense<0.000000e+00> : vector<16x64xf32>
    %213 = tpu.matmul %212, %9, %cst_62 {dimension_numbers = #tpu.dot_dimension_numbers<[1], [0], [0], [1], [0, 0, 1, 1], [], []>} : vector<16x32xbf16>, vector<32x64xbf16>, vector<16x64xf32> -> vector<16x64xf32>
    %214 = vector.extract_strided_slice %209 {offsets = [0, 0], sizes = [16, 64], strides = [1, 1]} : vector<16x96xf32> to vector<16x64xf32>
    %215 = arith.addf %214, %213 : vector<16x64xf32>
    %cst_63 = arith.constant 0.000000e+00 : f32
    %216 = vector.broadcast %cst_63 : f32 to vector<16x64xf32>
    %217 = arith.subf %216, %215 : vector<16x64xf32>
    %218 = math.exp %217 : vector<16x64xf32>
    %cst_64 = arith.constant 1.000000e+00 : f32
    %219 = vector.broadcast %cst_64 : f32 to vector<16x64xf32>
    %220 = arith.addf %219, %218 : vector<16x64xf32>
    %221 = tpu.reciprocal %220 {approx = true} : vector<16x64xf32> -> vector<16x64xf32>
    %222 = vector.extract_strided_slice %221 {offsets = [0, 0], sizes = [16, 32], strides = [1, 1]} : vector<16x64xf32> to vector<16x32xf32>
    %223 = vector.extract_strided_slice %221 {offsets = [0, 32], sizes = [16, 32], strides = [1, 1]} : vector<16x64xf32> to vector<16x32xf32>
    %224 = arith.mulf %222, %208 : vector<16x32xf32>
    %225 = arith.truncf %224 : vector<16x32xf32> to vector<16x32xbf16>
    %cst_65 = arith.constant dense<0.000000e+00> : vector<16x32xf32>
    %226 = tpu.matmul %11, %225, %cst_65 {dimension_numbers = #tpu.dot_dimension_numbers<[1], [0], [0], [1], [0, 0, 1, 1], [], []>} : vector<16x16xbf16>, vector<16x32xbf16>, vector<16x32xf32> -> vector<16x32xf32>
    %227 = arith.truncf %226 : vector<16x32xf32> to vector<16x32xbf16>
    %cst_66 = arith.constant dense<0.000000e+00> : vector<16x32xf32>
    %228 = tpu.matmul %227, %10, %cst_66 {dimension_numbers = #tpu.dot_dimension_numbers<[1], [0], [0], [1], [0, 0, 1, 1], [], []>} : vector<16x32xbf16>, vector<32x32xbf16>, vector<16x32xf32> -> vector<16x32xf32>
    %229 = vector.extract_strided_slice %209 {offsets = [0, 64], sizes = [16, 32], strides = [1, 1]} : vector<16x96xf32> to vector<16x32xf32>
    %230 = arith.addf %229, %228 : vector<16x32xf32>
    %231 = math.tanh %230 : vector<16x32xf32>
    %232 = arith.mulf %223, %208 : vector<16x32xf32>
    %cst_67 = arith.constant 1.000000e+00 : f32
    %233 = vector.broadcast %cst_67 : f32 to vector<16x32xf32>
    %234 = arith.subf %233, %223 : vector<16x32xf32>
    %235 = arith.mulf %234, %231 : vector<16x32xf32>
    %236 = arith.addf %232, %235 : vector<16x32xf32>
    %237 = vector.extract_strided_slice %8 {offsets = [128, 0], sizes = [16, 96], strides = [1, 1]} : vector<192x96xf32> to vector<16x96xf32>
    %238 = arith.truncf %236 : vector<16x32xf32> to vector<16x32xbf16>
    %cst_68 = arith.constant dense<0.000000e+00> : vector<16x32xf32>
    %239 = tpu.matmul %11, %238, %cst_68 {dimension_numbers = #tpu.dot_dimension_numbers<[1], [0], [0], [1], [0, 0, 1, 1], [], []>} : vector<16x16xbf16>, vector<16x32xbf16>, vector<16x32xf32> -> vector<16x32xf32>
    %240 = arith.truncf %239 : vector<16x32xf32> to vector<16x32xbf16>
    %cst_69 = arith.constant dense<0.000000e+00> : vector<16x64xf32>
    %241 = tpu.matmul %240, %9, %cst_69 {dimension_numbers = #tpu.dot_dimension_numbers<[1], [0], [0], [1], [0, 0, 1, 1], [], []>} : vector<16x32xbf16>, vector<32x64xbf16>, vector<16x64xf32> -> vector<16x64xf32>
    %242 = vector.extract_strided_slice %237 {offsets = [0, 0], sizes = [16, 64], strides = [1, 1]} : vector<16x96xf32> to vector<16x64xf32>
    %243 = arith.addf %242, %241 : vector<16x64xf32>
    %cst_70 = arith.constant 0.000000e+00 : f32
    %244 = vector.broadcast %cst_70 : f32 to vector<16x64xf32>
    %245 = arith.subf %244, %243 : vector<16x64xf32>
    %246 = math.exp %245 : vector<16x64xf32>
    %cst_71 = arith.constant 1.000000e+00 : f32
    %247 = vector.broadcast %cst_71 : f32 to vector<16x64xf32>
    %248 = arith.addf %247, %246 : vector<16x64xf32>
    %249 = tpu.reciprocal %248 {approx = true} : vector<16x64xf32> -> vector<16x64xf32>
    %250 = vector.extract_strided_slice %249 {offsets = [0, 0], sizes = [16, 32], strides = [1, 1]} : vector<16x64xf32> to vector<16x32xf32>
    %251 = vector.extract_strided_slice %249 {offsets = [0, 32], sizes = [16, 32], strides = [1, 1]} : vector<16x64xf32> to vector<16x32xf32>
    %252 = arith.mulf %250, %236 : vector<16x32xf32>
    %253 = arith.truncf %252 : vector<16x32xf32> to vector<16x32xbf16>
    %cst_72 = arith.constant dense<0.000000e+00> : vector<16x32xf32>
    %254 = tpu.matmul %11, %253, %cst_72 {dimension_numbers = #tpu.dot_dimension_numbers<[1], [0], [0], [1], [0, 0, 1, 1], [], []>} : vector<16x16xbf16>, vector<16x32xbf16>, vector<16x32xf32> -> vector<16x32xf32>
    %255 = arith.truncf %254 : vector<16x32xf32> to vector<16x32xbf16>
    %cst_73 = arith.constant dense<0.000000e+00> : vector<16x32xf32>
    %256 = tpu.matmul %255, %10, %cst_73 {dimension_numbers = #tpu.dot_dimension_numbers<[1], [0], [0], [1], [0, 0, 1, 1], [], []>} : vector<16x32xbf16>, vector<32x32xbf16>, vector<16x32xf32> -> vector<16x32xf32>
    %257 = vector.extract_strided_slice %237 {offsets = [0, 64], sizes = [16, 32], strides = [1, 1]} : vector<16x96xf32> to vector<16x32xf32>
    %258 = arith.addf %257, %256 : vector<16x32xf32>
    %259 = math.tanh %258 : vector<16x32xf32>
    %260 = arith.mulf %251, %236 : vector<16x32xf32>
    %cst_74 = arith.constant 1.000000e+00 : f32
    %261 = vector.broadcast %cst_74 : f32 to vector<16x32xf32>
    %262 = arith.subf %261, %251 : vector<16x32xf32>
    %263 = arith.mulf %262, %259 : vector<16x32xf32>
    %264 = arith.addf %260, %263 : vector<16x32xf32>
    %265 = vector.extract_strided_slice %8 {offsets = [144, 0], sizes = [16, 96], strides = [1, 1]} : vector<192x96xf32> to vector<16x96xf32>
    %266 = arith.truncf %264 : vector<16x32xf32> to vector<16x32xbf16>
    %cst_75 = arith.constant dense<0.000000e+00> : vector<16x32xf32>
    %267 = tpu.matmul %11, %266, %cst_75 {dimension_numbers = #tpu.dot_dimension_numbers<[1], [0], [0], [1], [0, 0, 1, 1], [], []>} : vector<16x16xbf16>, vector<16x32xbf16>, vector<16x32xf32> -> vector<16x32xf32>
    %268 = arith.truncf %267 : vector<16x32xf32> to vector<16x32xbf16>
    %cst_76 = arith.constant dense<0.000000e+00> : vector<16x64xf32>
    %269 = tpu.matmul %268, %9, %cst_76 {dimension_numbers = #tpu.dot_dimension_numbers<[1], [0], [0], [1], [0, 0, 1, 1], [], []>} : vector<16x32xbf16>, vector<32x64xbf16>, vector<16x64xf32> -> vector<16x64xf32>
    %270 = vector.extract_strided_slice %265 {offsets = [0, 0], sizes = [16, 64], strides = [1, 1]} : vector<16x96xf32> to vector<16x64xf32>
    %271 = arith.addf %270, %269 : vector<16x64xf32>
    %cst_77 = arith.constant 0.000000e+00 : f32
    %272 = vector.broadcast %cst_77 : f32 to vector<16x64xf32>
    %273 = arith.subf %272, %271 : vector<16x64xf32>
    %274 = math.exp %273 : vector<16x64xf32>
    %cst_78 = arith.constant 1.000000e+00 : f32
    %275 = vector.broadcast %cst_78 : f32 to vector<16x64xf32>
    %276 = arith.addf %275, %274 : vector<16x64xf32>
    %277 = tpu.reciprocal %276 {approx = true} : vector<16x64xf32> -> vector<16x64xf32>
    %278 = vector.extract_strided_slice %277 {offsets = [0, 0], sizes = [16, 32], strides = [1, 1]} : vector<16x64xf32> to vector<16x32xf32>
    %279 = vector.extract_strided_slice %277 {offsets = [0, 32], sizes = [16, 32], strides = [1, 1]} : vector<16x64xf32> to vector<16x32xf32>
    %280 = arith.mulf %278, %264 : vector<16x32xf32>
    %281 = arith.truncf %280 : vector<16x32xf32> to vector<16x32xbf16>
    %cst_79 = arith.constant dense<0.000000e+00> : vector<16x32xf32>
    %282 = tpu.matmul %11, %281, %cst_79 {dimension_numbers = #tpu.dot_dimension_numbers<[1], [0], [0], [1], [0, 0, 1, 1], [], []>} : vector<16x16xbf16>, vector<16x32xbf16>, vector<16x32xf32> -> vector<16x32xf32>
    %283 = arith.truncf %282 : vector<16x32xf32> to vector<16x32xbf16>
    %cst_80 = arith.constant dense<0.000000e+00> : vector<16x32xf32>
    %284 = tpu.matmul %283, %10, %cst_80 {dimension_numbers = #tpu.dot_dimension_numbers<[1], [0], [0], [1], [0, 0, 1, 1], [], []>} : vector<16x32xbf16>, vector<32x32xbf16>, vector<16x32xf32> -> vector<16x32xf32>
    %285 = vector.extract_strided_slice %265 {offsets = [0, 64], sizes = [16, 32], strides = [1, 1]} : vector<16x96xf32> to vector<16x32xf32>
    %286 = arith.addf %285, %284 : vector<16x32xf32>
    %287 = math.tanh %286 : vector<16x32xf32>
    %288 = arith.mulf %279, %264 : vector<16x32xf32>
    %cst_81 = arith.constant 1.000000e+00 : f32
    %289 = vector.broadcast %cst_81 : f32 to vector<16x32xf32>
    %290 = arith.subf %289, %279 : vector<16x32xf32>
    %291 = arith.mulf %290, %287 : vector<16x32xf32>
    %292 = arith.addf %288, %291 : vector<16x32xf32>
    %293 = vector.extract_strided_slice %8 {offsets = [160, 0], sizes = [16, 96], strides = [1, 1]} : vector<192x96xf32> to vector<16x96xf32>
    %294 = arith.truncf %292 : vector<16x32xf32> to vector<16x32xbf16>
    %cst_82 = arith.constant dense<0.000000e+00> : vector<16x32xf32>
    %295 = tpu.matmul %11, %294, %cst_82 {dimension_numbers = #tpu.dot_dimension_numbers<[1], [0], [0], [1], [0, 0, 1, 1], [], []>} : vector<16x16xbf16>, vector<16x32xbf16>, vector<16x32xf32> -> vector<16x32xf32>
    %296 = arith.truncf %295 : vector<16x32xf32> to vector<16x32xbf16>
    %cst_83 = arith.constant dense<0.000000e+00> : vector<16x64xf32>
    %297 = tpu.matmul %296, %9, %cst_83 {dimension_numbers = #tpu.dot_dimension_numbers<[1], [0], [0], [1], [0, 0, 1, 1], [], []>} : vector<16x32xbf16>, vector<32x64xbf16>, vector<16x64xf32> -> vector<16x64xf32>
    %298 = vector.extract_strided_slice %293 {offsets = [0, 0], sizes = [16, 64], strides = [1, 1]} : vector<16x96xf32> to vector<16x64xf32>
    %299 = arith.addf %298, %297 : vector<16x64xf32>
    %cst_84 = arith.constant 0.000000e+00 : f32
    %300 = vector.broadcast %cst_84 : f32 to vector<16x64xf32>
    %301 = arith.subf %300, %299 : vector<16x64xf32>
    %302 = math.exp %301 : vector<16x64xf32>
    %cst_85 = arith.constant 1.000000e+00 : f32
    %303 = vector.broadcast %cst_85 : f32 to vector<16x64xf32>
    %304 = arith.addf %303, %302 : vector<16x64xf32>
    %305 = tpu.reciprocal %304 {approx = true} : vector<16x64xf32> -> vector<16x64xf32>
    %306 = vector.extract_strided_slice %305 {offsets = [0, 0], sizes = [16, 32], strides = [1, 1]} : vector<16x64xf32> to vector<16x32xf32>
    %307 = vector.extract_strided_slice %305 {offsets = [0, 32], sizes = [16, 32], strides = [1, 1]} : vector<16x64xf32> to vector<16x32xf32>
    %308 = arith.mulf %306, %292 : vector<16x32xf32>
    %309 = arith.truncf %308 : vector<16x32xf32> to vector<16x32xbf16>
    %cst_86 = arith.constant dense<0.000000e+00> : vector<16x32xf32>
    %310 = tpu.matmul %11, %309, %cst_86 {dimension_numbers = #tpu.dot_dimension_numbers<[1], [0], [0], [1], [0, 0, 1, 1], [], []>} : vector<16x16xbf16>, vector<16x32xbf16>, vector<16x32xf32> -> vector<16x32xf32>
    %311 = arith.truncf %310 : vector<16x32xf32> to vector<16x32xbf16>
    %cst_87 = arith.constant dense<0.000000e+00> : vector<16x32xf32>
    %312 = tpu.matmul %311, %10, %cst_87 {dimension_numbers = #tpu.dot_dimension_numbers<[1], [0], [0], [1], [0, 0, 1, 1], [], []>} : vector<16x32xbf16>, vector<32x32xbf16>, vector<16x32xf32> -> vector<16x32xf32>
    %313 = vector.extract_strided_slice %293 {offsets = [0, 64], sizes = [16, 32], strides = [1, 1]} : vector<16x96xf32> to vector<16x32xf32>
    %314 = arith.addf %313, %312 : vector<16x32xf32>
    %315 = math.tanh %314 : vector<16x32xf32>
    %316 = arith.mulf %307, %292 : vector<16x32xf32>
    %cst_88 = arith.constant 1.000000e+00 : f32
    %317 = vector.broadcast %cst_88 : f32 to vector<16x32xf32>
    %318 = arith.subf %317, %307 : vector<16x32xf32>
    %319 = arith.mulf %318, %315 : vector<16x32xf32>
    %320 = arith.addf %316, %319 : vector<16x32xf32>
    %321 = vector.extract_strided_slice %8 {offsets = [176, 0], sizes = [16, 96], strides = [1, 1]} : vector<192x96xf32> to vector<16x96xf32>
    %322 = arith.truncf %320 : vector<16x32xf32> to vector<16x32xbf16>
    %cst_89 = arith.constant dense<0.000000e+00> : vector<16x32xf32>
    %323 = tpu.matmul %11, %322, %cst_89 {dimension_numbers = #tpu.dot_dimension_numbers<[1], [0], [0], [1], [0, 0, 1, 1], [], []>} : vector<16x16xbf16>, vector<16x32xbf16>, vector<16x32xf32> -> vector<16x32xf32>
    %324 = arith.truncf %323 : vector<16x32xf32> to vector<16x32xbf16>
    %cst_90 = arith.constant dense<0.000000e+00> : vector<16x64xf32>
    %325 = tpu.matmul %324, %9, %cst_90 {dimension_numbers = #tpu.dot_dimension_numbers<[1], [0], [0], [1], [0, 0, 1, 1], [], []>} : vector<16x32xbf16>, vector<32x64xbf16>, vector<16x64xf32> -> vector<16x64xf32>
    %326 = vector.extract_strided_slice %321 {offsets = [0, 0], sizes = [16, 64], strides = [1, 1]} : vector<16x96xf32> to vector<16x64xf32>
    %327 = arith.addf %326, %325 : vector<16x64xf32>
    %cst_91 = arith.constant 0.000000e+00 : f32
    %328 = vector.broadcast %cst_91 : f32 to vector<16x64xf32>
    %329 = arith.subf %328, %327 : vector<16x64xf32>
    %330 = math.exp %329 : vector<16x64xf32>
    %cst_92 = arith.constant 1.000000e+00 : f32
    %331 = vector.broadcast %cst_92 : f32 to vector<16x64xf32>
    %332 = arith.addf %331, %330 : vector<16x64xf32>
    %333 = tpu.reciprocal %332 {approx = true} : vector<16x64xf32> -> vector<16x64xf32>
    %334 = vector.extract_strided_slice %333 {offsets = [0, 0], sizes = [16, 32], strides = [1, 1]} : vector<16x64xf32> to vector<16x32xf32>
    %335 = vector.extract_strided_slice %333 {offsets = [0, 32], sizes = [16, 32], strides = [1, 1]} : vector<16x64xf32> to vector<16x32xf32>
    %336 = arith.mulf %334, %320 : vector<16x32xf32>
    %337 = arith.truncf %336 : vector<16x32xf32> to vector<16x32xbf16>
    %cst_93 = arith.constant dense<0.000000e+00> : vector<16x32xf32>
    %338 = tpu.matmul %11, %337, %cst_93 {dimension_numbers = #tpu.dot_dimension_numbers<[1], [0], [0], [1], [0, 0, 1, 1], [], []>} : vector<16x16xbf16>, vector<16x32xbf16>, vector<16x32xf32> -> vector<16x32xf32>
    %339 = arith.truncf %338 : vector<16x32xf32> to vector<16x32xbf16>
    %cst_94 = arith.constant dense<0.000000e+00> : vector<16x32xf32>
    %340 = tpu.matmul %339, %10, %cst_94 {dimension_numbers = #tpu.dot_dimension_numbers<[1], [0], [0], [1], [0, 0, 1, 1], [], []>} : vector<16x32xbf16>, vector<32x32xbf16>, vector<16x32xf32> -> vector<16x32xf32>
    %341 = vector.extract_strided_slice %321 {offsets = [0, 64], sizes = [16, 32], strides = [1, 1]} : vector<16x96xf32> to vector<16x32xf32>
    %342 = arith.addf %341, %340 : vector<16x32xf32>
    %343 = math.tanh %342 : vector<16x32xf32>
    %344 = arith.mulf %335, %320 : vector<16x32xf32>
    %cst_95 = arith.constant 1.000000e+00 : f32
    %345 = vector.broadcast %cst_95 : f32 to vector<16x32xf32>
    %346 = arith.subf %345, %335 : vector<16x32xf32>
    %347 = arith.mulf %346, %343 : vector<16x32xf32>
    %348 = arith.addf %344, %347 : vector<16x32xf32>
    %c0_96 = arith.constant 0 : index
    %c0_97 = arith.constant 0 : index
    %349 = vector.load %arg5[%c0_96, %c0_97] : memref<16x32xf32, #tpu.memory_space<vmem>>, vector<16x32xf32>
    tpu.vector_store %arg5[%c0_96, %c0_97], %348 {strides = array<i32>} : memref<16x32xf32, #tpu.memory_space<vmem>>, vector<16x32xf32>,
    %c0_98 = arith.constant 0 : index
    %c0_99 = arith.constant 0 : index
    %350 = vector.load %arg4[%c0_98, %c0_99] : memref<40x16xf32, #tpu.memory_space<vmem>>, vector<40x16xf32>
    %351 = vector.extract_strided_slice %350 {offsets = [0, 0], sizes = [16, 16], strides = [1, 1]} : vector<40x16xf32> to vector<16x16xf32>
    %352 = vector.extract_strided_slice %350 {offsets = [16, 0], sizes = [16, 3], strides = [1, 1]} : vector<40x16xf32> to vector<16x3xf32>
    %353 = arith.truncf %352 : vector<16x3xf32> to vector<16x3xbf16>
    %354 = vector.extract_strided_slice %350 {offsets = [32, 0], sizes = [1, 3], strides = [1, 1]} : vector<40x16xf32> to vector<1x3xf32>
    %355 = vector.extract_strided_slice %348 {offsets = [0, 0], sizes = [16, 16], strides = [1, 1]} : vector<16x32xf32> to vector<16x16xf32>
    %356 = vector.extract_strided_slice %348 {offsets = [0, 16], sizes = [16, 16], strides = [1, 1]} : vector<16x32xf32> to vector<16x16xf32>
    %cst_100 = arith.constant 0.000000e+00 : f32
    %357 = vector.broadcast %cst_100 : f32 to vector<16x16xf32>
    %358 = arith.maximumf %356, %357 : vector<16x16xf32>
    %359 = math.absf %356 : vector<16x16xf32>
    %cst_101 = arith.constant 0.000000e+00 : f32
    %360 = vector.broadcast %cst_101 : f32 to vector<16x16xf32>
    %361 = arith.subf %360, %359 : vector<16x16xf32>
    %362 = math.exp %361 : vector<16x16xf32>
    %cst_102 = arith.constant 1.000000e+00 : f32
    %363 = vector.broadcast %cst_102 : f32 to vector<16x16xf32>
    %364 = arith.addf %363, %362 : vector<16x16xf32>
    %365 = math.log %364 : vector<16x16xf32>
    %366 = arith.addf %358, %365 : vector<16x16xf32>
    %367 = arith.mulf %351, %366 : vector<16x16xf32>
    %368 = arith.addf %355, %367 : vector<16x16xf32>
    %369 = arith.truncf %368 : vector<16x16xf32> to vector<16x16xbf16>
    %cst_103 = arith.constant dense<0.000000e+00> : vector<16x3xf32>
    %370 = tpu.matmul %369, %353, %cst_103 {dimension_numbers = #tpu.dot_dimension_numbers<[1], [0], [0], [1], [0, 0, 1, 1], [], []>} : vector<16x16xbf16>, vector<16x3xbf16>, vector<16x3xf32> -> vector<16x3xf32>
    %371 = vector.broadcast %354 : vector<1x3xf32> to vector<16x3xf32>
    %372 = arith.addf %370, %371 : vector<16x3xf32>
    %c0_104 = arith.constant 0 : index
    %c0_105 = arith.constant 0 : index
    %373 = vector.load %arg6[%c0_104, %c0_105] : memref<16x3xf32, #tpu.memory_space<vmem>>, vector<16x3xf32>
    tpu.vector_store %arg6[%c0_104, %c0_105], %372 {strides = array<i32>} : memref<16x3xf32, #tpu.memory_space<vmem>>, vector<16x3xf32>,
    return
  }
}

</mosaic_0001>

<bundles_post_ra>
// kernel: tpu_custom_call.1
= control target key start
LH: loop header
LB: loop body
LE: loop exit
PB: predicated region body
PF: predicated region fallthrough
CT: control target
= control target key end

     0   :  { %12 = vsyncpa [#allocation3], 0  ;;  %s3485_s0 = inlined_call_operand.vmem [shape: f32[192,16], index: 0, kind: input, shape index: {}]   ;;  %s3486_s1 = inlined_call_operand.vmem [shape: bf16[192,192], index: 1, kind: input, shape index: {}]   ;;  %s3487_s2 = inlined_call_operand.vmem [shape: bf16[96,96], index: 2, kind: input, shape index: {}]   ;;  %s3488_s3 = inlined_call_operand.hbm [shape: f32[192,96], index: 3, kind: input, shape index: {}]   ;;  %s3489_s4 = inlined_call_operand.vmem [shape: f32[40,16], index: 4, kind: input, shape index: {}]   ;;  %s3490_s5 = inlined_call_operand.hbm [shape: f32[16,32], index: 5, kind: output, shape index: {0}]   ;;  %s3491_s6 = inlined_call_operand.vmem [shape: f32[16,3], index: 6, kind: output, shape index: {1}]  }
   0x1   :  { %13 = vsyncpa [#allocation4], 0  ;;  %s24_s23 = sshll.u32 %s3488_s3, 4  ;;  %s2596_s24 = smov [#allocation2]   ;;  %s25_s23 = int_to_ptr.hbm [resolvable:$true] %s24_s23 }
   0x2   :  { %s26_s25 = sshll.u32 %s2596_s24, 4  ;;  %s2597_s26 = smov 128   ;;  %s27_s25 = int_to_ptr.vmem [resolvable:$true] %s26_s25 }
   0x3   :  { %s2598_s27 = smov 8  }
   0x4   :  { %32 = dma.hbm_to_vmem [thread:$0]  %s25_s23, 3072, %s27_s25, [#allocation3], %s2597_s26, %s2597_s26, %s2598_s27  }
   0x5   :  { %2592 = dma.done.wait [#allocation3], 3072  }
   0x6   :  { %2593 = vsyncadd [#allocation3], 4294964224  ;;  %v78_v0 = vld [vmem:[%s3485_s0 + $0x70] sm:$0xff]  ;;  %v79_v1 = vld [vmem:[%s3485_s0 + $0x78] sm:$0xff]  ;;  %vm208_vm0 = vcmask 523264   ;;  %v2599_v44 = vmov 0.0|0.0  }
   0x7   :  { %v76_v2 = vld [vmem:[%s3485_s0 + $0x60] sm:$0xff]  ;;  %v95_v3 = vpack.c.bf16 %v79_v1, %v78_v0  ;;  %v77_v4 = vld [vmem:[%s3485_s0 + $0x68] sm:$0xff]  ;;  %v86_v5 = vld [vmem:[%s3485_s0 + $0xb0] sm:$0xff]  ;;  %vm427_vm1 = vcmask 130048   ;;  %vm561_vm4 = vcmask 261120   ;;  %s2600_s22 = smov 64  }
   0x8   :  { %v87_v6 = vld [vmem:[%s3485_s0 + $0xb8] sm:$0xff]  ;;  %v94_v7 = vpack.c.bf16 %v77_v4, %v76_v2  ;;  %v84_v9 = vld [vmem:[%s3485_s0 + $0xa0] sm:$0xff]  ;;  %v85_v10 = vld [vmem:[%s3485_s0 + $0xa8] sm:$0xff]  ;;  %s2601_s23 = smov 96   ;;  %s2602_s9 = smov 32   ;;  %vm2160_vm5 = vcmask 23552  }
   0x9   :  { %245 = vmatpush.bf16.msra.mxu0 %v95_v3  ;;  %v99_v8 = vpack.c.bf16 %v87_v6, %v86_v5  ;;  %v74_v11 = vld [vmem:[%s3485_s0 + $0x50] sm:$0xff]  ;;  %v75_v12 = vld [vmem:[%s3485_s0 + $0x58] sm:$0xff]  ;;  %v98_v13 = vpack.c.bf16 %v85_v10, %v84_v9  ;;  %v72_v17 = vld [vmem:[%s3485_s0 + $0x40] sm:$0xff]  ;;  %v541_v9 = vlaneseq  ;;  %s2169_s20 = sshll.u32 %s3490_s5, 4  ;;  %s2170_s20 = int_to_ptr.hbm [resolvable:$true] %s2169_s20 }
   0xa   :  { %v82_v14 = vld [vmem:[%s3485_s0 + $0x90] sm:$0xff]  ;;  %v83_v15 = vld [vmem:[%s3485_s0 + $0x98] sm:$0xff]  ;;  %v93_v16 = vpack.c.bf16 %v75_v12, %v74_v11  ;;  %v73_v18 = vld [vmem:[%s3485_s0 + $0x48] sm:$0xff] }
   0xb   :  { %318 = vmatpush.bf16.msra.mxu1 %v99_v8  ;;  %v97_v19 = vpack.c.bf16 %v83_v15, %v82_v14  ;;  %v80_v20 = vld [vmem:[%s3485_s0 + $0x80] sm:$0xff]  ;;  %v81_v21 = vld [vmem:[%s3485_s0 + $0x88] sm:$0xff]  ;;  %v92_v22 = vpack.c.bf16 %v73_v18, %v72_v17  ;;  %v70_v23 = vld [vmem:[%s3485_s0 + $0x30] sm:$0xff]  ;;  %v2776_v11 = vshrl.u32 %v541_v9, 7 }
   0xc   :  { %v71_v24 = vld [vmem:[%s3485_s0 + $0x38] sm:$0xff]  ;;  %v96_v25 = vpack.c.bf16 %v81_v21, %v80_v20  ;;  %v2350_v26 = vld [vmem:[%s3486_s1 + $0x4] sm:$0xf]  ;;  %v2190_v27 = vld [vmem:[%s3486_s1 + $0x8] sm:$0xf0] }
   0xd   :  { %246 = vmatpush.bf16.msra.mxu0 %v94_v7  ;;  %v91_v28 = vpack.c.bf16 %v71_v24, %v70_v23  ;;  %v68_v29 = vld [vmem:[%s3485_s0 + $0x20] sm:$0xff]  ;;  %v69_v30 = vld [vmem:[%s3485_s0 + $0x28] sm:$0xff]  ;;  %v2193_v31 = vor.u32 %v2350_v26, %v2190_v27  ;;  %v66_v33 = vld [vmem:[%s3485_s0 + $0x10] sm:$0xff]  ;;  %vm543_vm2 = vcmp.lt.s32.totalorder %v2776_v11, 2  ;;  %vm544_vm3 = vcmp.lt.s32.totalorder %v2776_v11, 6 }
   0xe   :  { %v90_v32 = vpack.c.bf16 %v69_v30, %v68_v29  ;;  %v67_v34 = vld [vmem:[%s3485_s0 + $0x18] sm:$0xff]  ;;  %v64_v36 = vld [vmem:[%s3485_s0] sm:$0xff]  ;;  %v65_v37 = vld [vmem:[%s3485_s0 + $0x8] sm:$0xff] }
   0xf   :  { %319 = vmatpush.bf16.msra.mxu1 %v98_v13  ;;  %v89_v35 = vpack.c.bf16 %v67_v34, %v66_v33  ;;  %v88_v38 = vpack.c.bf16 %v65_v37, %v64_v36  ;;  %v2188_v39 = vld [vmem:[%s3486_s1] sm:$0xf]  ;;  %v2351_v40 = vld [vmem:[%s3486_s1 + $0x4] sm:$0xf0]  ;;  %v2734_v42 = vld [vmem:[%s3487_s2 + $0x10] sm:$0xff] }
  0x10   :  { %v2189_v41 = vor.u32 %v2351_v40, %v2188_v39  ;;  %571 = vmatpush.bf16.msra.mxu3 %v2734_v42  ;;  %v2741_v43 = vld [vmem:[%s3487_s2 + $0x8] sm:$0xff]  ;;  %v2374_v45 = vld [vmem:[%s3487_s2] sm:$0xff]  ;;  %v2765_v59 = vld [vmem:[%s3487_s2 + $0x18] sm:$0xff] }
  0x11   :  { %247 = vmatpush.bf16.msra.mxu0 %v93_v16  ;;  %471 = vmatpush.bf16.msra.mxu2 %v2374_v45  ;;  %v397_v53 = vld [vmem:[#allocation2] sm:$0xff]  ;;  %v398_v61 = vld [vmem:[#allocation2 + $0x8] sm:$0xff] }
  0x12   :  { %v2758_v57 = vld [vmem:[%s3487_s2 + $0x20] sm:$0xff] }
  0x13   :  { %320 = vmatpush.bf16.msra.mxu1 %v97_v19 }
  0x14   :  { %572 = vmatpush.bf16.msra.mxu3 %v2741_v43 }
  0x15   :  { %248 = vmatpush.bf16.msra.mxu0 %v92_v22  ;;  %1355 = vmatpush.bf16.msrb.mxu2 %v2734_v42 }
  0x17   :  { %321 = vmatpush.bf16.msra.mxu1 %v96_v25  ;;  %573 = vmatmul.bf16.vlgmr.msra.gmra.mxu3 %v2599_v44 }
  0x18   :  { %631 = vmatpush.bf16.msrb.mxu3 %v2758_v57 }
  0x19   :  { %249 = vmatpush.bf16.msra.mxu0 %v91_v28  ;;  %1356 = vmatpush.bf16.msrb.mxu2 %v2741_v43 }
  0x1a   :  { %2282 = vmatmul.msk.bf16.vlgmr.msra.gmra.mxu1 %vm208_vm0, %v2193_v31 }
  0x1b   :  { %1484 = vmatpush.bf16.msrb.mxu1 %v2734_v42 }
  0x1c   :  { %632 = vmatpush.bf16.msrb.mxu3 %v2765_v59 }
  0x1d   :  { %250 = vmatpush.bf16.msra.mxu0 %v90_v32 }
  0x1f   :  { %1485 = vmatpush.bf16.msrb.mxu1 %v2741_v43 }
  0x20   :  { %710 = vmatpush.bf16.msra.mxu3 %v2734_v42 }
  0x21   :  { %251 = vmatpush.bf16.msra.mxu0 %v89_v35 }
  0x23   :  { %1742 = vmatpush.bf16.msra.mxu1 %v2734_v42 }
  0x24   :  { %711 = vmatpush.bf16.msra.mxu3 %v2741_v43 }
  0x25   :  { %252 = vmatpush.bf16.msra.mxu0 %v88_v38 }
  0x27   :  { %1743 = vmatpush.bf16.msra.mxu1 %v2741_v43 }
  0x28   :  { %253 = vmatmul.bf16.vlgmr.msra.gmra.mxu0 %v2189_v41 }
  0x29   :  { %1661 = vmatpush.bf16.msrb.mxu0 %v2758_v57 }
  0x2d   :  { %1662 = vmatpush.bf16.msrb.mxu0 %v2765_v59 }
  0x31   :  { %1919 = vmatpush.bf16.msra.mxu0 %v2758_v57 }
  0x35   :  { %1920 = vmatpush.bf16.msra.mxu0 %v2765_v59 }
  0x97   :  { %v323_v46 = vpop.f32.mrf.mxu1 }
  0x9a   :  { %v574_v54 = vpop.f32.mrf.mxu3 }
  0x9f   :  { %v325_v48 = vpop.f32.mrf.mxu1 }
  0xa2   :  { %v576_v1 = vpop.f32.mrf.mxu3 }
  0xa5   :  { %v254_v47 = vpop.f32.mrf.mxu0 }
  0xa6   :  { %v324_v50 = vadd.f32 %v323_v46, %v254_v47 }
  0xad   :  { %v256_v49 = vpop.f32.mrf.mxu0 }
  0xae   :  { %v326_v51 = vadd.f32 %v325_v48, %v256_v49 }
  0xb0   :  { %v385_v52 = vpack.c.bf16 %v326_v51, %v324_v50  ;;  %v2196_v50 = vld [vmem:[%s3486_s1 + $0x10] sm:$0xf]  ;;  %v2353_v51 = vld [vmem:[%s3486_s1 + $0x14] sm:$0xf0] }
  0xb2   :  { %2298 = vmatmul.msk.bf16.vlgmr.msra.gmra.mxu2 %vm427_vm1, %v385_v52  ;;  %v2352_v52 = vld [vmem:[%s3486_s1 + $0x14] sm:$0xf] }
  0xb3   :  { %1532 = vmatpush.bf16.msra.mxu2 %v2758_v57 }
  0xb7   :  { %1533 = vmatpush.bf16.msra.mxu2 %v2765_v59 }
 0x135   :  { %v473_v55 = vpop.f32.mrf.mxu2 }
 0x136   :  { %v2753_v56 = vadd.f32 %v473_v55, %v397_v53  ;;  %v2197_v53 = vor.u32 %v2353_v51, %v2196_v50 }
 0x138   :  { %v579_v58 = vadd.f32 %v574_v54, %v2753_v56  ;;  %v2198_v54 = vld [vmem:[%s3486_s1 + $0x18] sm:$0xf0]  ;;  %258 = vmatmul.bf16.gmra.mxu0 %v2197_v53 }
 0x139   :  { %v2201_v55 = vor.u32 %v2352_v52, %v2198_v54 }
 0x13a   :  { %v581_v60 = vsub.f32 0.0, %v579_v58 }
 0x13b   :  { %2283 = vmatmul.msk.bf16.gmra.mxu1 %vm208_vm0, %v2201_v55 }
 0x13c   :  { %v583_v62 = vmul.f32 1.442695, %v581_v60 }
 0x13d   :  { %v475_v63 = vpop.f32.mrf.mxu2 }
 0x13e   :  { %2388 = vpow2.f32 %v583_v62  ;;  %v476_v0 = vadd.f32 %v475_v63, %v398_v61 }
 0x140   :  { %v580_v2 = vadd.f32 %v576_v1, %v476_v0 }
 0x142   :  { %v582_v3 = vsub.f32 0.0, %v580_v2 }
 0x144   :  { %v2389_v4 = vpop.eup %2388  ;;  %v585_v5 = vmul.f32 1.442695, %v582_v3 }
 0x145   :  { %v587_v6 = vadd.f32 1.0, %v2389_v4 }
 0x146   :  { %2390 = vpow2.f32 %v585_v5 }
 0x147   :  { %2392 = vrcp.f32 %v587_v6 }
 0x14c   :  { %v2391_v7 = vpop.eup %2390 }
 0x14d   :  { %v588_v8 = vadd.f32 1.0, %v2391_v7  ;;  %v2393_v10 = vpop.eup %2392 }
 0x14e   :  { %v591_v12 = vmul.f32 0.0, %v2393_v10  ;;  %v651_v40 = vsub.f32 1.0, %v2393_v10 }
 0x14f   :  { %2394 = vrcp.f32 %v588_v8 }
 0x150   :  { %v595_v15 = vrot.slane %v591_v12, 6  ;;  %v599_v17 = vrot.slane %v591_v12, 2  ;;  %v593_v25 = vmul.f32 0.3333333, %v591_v12 }
 0x155   :  { %v2395_v13 = vpop.eup %2394 }
 0x156   :  { %v592_v14 = vmul.f32 0.0, %v2395_v13  ;;  %v652_v46 = vsub.f32 1.0, %v2395_v13 }
 0x158   :  { %v596_v16 = vrot.slane %v592_v14, 6  ;;  %v600_v18 = vrot.slane %v592_v14, 2  ;;  %v594_v26 = vmul.f32 0.3333333, %v592_v14 }
 0x15a   :  { %v597_v19 = vsel %vm543_vm2, %v595_v15, %v596_v16  ;;  %v598_v20 = vsel %vm543_vm2, %v596_v16, %v595_v15  ;;  %v601_v21 = vsel %vm544_vm3, %v599_v17, %v600_v18  ;;  %v602_v22 = vsel %vm544_vm3, %v600_v18, %v599_v17 }
 0x15b   :  { %v603_v23 = vadd.f32 %v601_v21, %v598_v20  ;;  %v604_v24 = vadd.f32 %v602_v22, %v597_v19 }
 0x15d   :  { %v605_v27 = vmul.f32 0.3333333, %v603_v23  ;;  %v606_v28 = vmul.f32 0.3333333, %v604_v24 }
 0x15f   :  { %v607_v29 = vadd.f32 %v605_v27, %v593_v25  ;;  %v608_v30 = vadd.f32 %v606_v28, %v594_v26  ;;  %v399_v25 = vld [vmem:[#allocation2 + $0x10] sm:$0xff] }
 0x161   :  { %v609_v31 = vpack.c.bf16 %v608_v30, %v607_v29  ;;  %v400_v30 = vld [vmem:[#allocation2 + $0x18] sm:$0xff] }
 0x163   :  { %2326 = vmatmul.msk.bf16.vlgmr.msrb.gmra.mxu3 %vm561_vm4, %v609_v31 }
 0x164   :  { %758 = vmatpush.bf16.msrb.mxu3 %v2758_v57 }
 0x168   :  { %759 = vmatpush.bf16.msrb.mxu3 %v2765_v59 }
 0x1b5   :  { %v259_v8 = vpop.f32.mrf.mxu0 }
 0x1b8   :  { %v328_v9 = vpop.f32.mrf.mxu1 }
 0x1b9   :  { %v329_v10 = vadd.f32 %v328_v9, %v259_v8 }
 0x1c0   :  { %v330_v13 = vpop.f32.mrf.mxu1 }
 0x1e6   :  { %v634_v32 = vpop.f32.mrf.mxu3 }
 0x1e7   :  { %641 = vrot.lane.b32.xlu0 %v634_v32, %s2600_s22 }
 0x1ee   :  { %v636_v33 = vpop.f32.mrf.mxu3 }
 0x1ef   :  { %643 = vrot.lane.b32.xlu0 %v636_v33, %s2600_s22 }
 0x259   :  { %v642_v34 = vpop.permute.xlu0 %641 }
 0x25a   :  { %v647_v35 = vadd.f32 %v642_v34, %v2753_v56 }
 0x25c   :  { %2396 = vtanh.f32 %v647_v35 }
 0x261   :  { %v644_v36 = vpop.permute.xlu0 %643 }
 0x262   :  { %v2397_v37 = vpop.eup %2396  ;;  %v648_v38 = vadd.f32 %v644_v36, %v476_v0 }
 0x263   :  { %655 = vrot.lane.b32.xlu1 %v2397_v37, %s2601_s23 }
 0x264   :  { %2398 = vtanh.f32 %v648_v38 }
 0x26a   :  { %v2399_v39 = vpop.eup %2398 }
 0x26b   :  { %657 = vrot.lane.b32.xlu1 %v2399_v39, %s2601_s23 }
 0x2d5   :  { %v656_v41 = vpop.permute.xlu1 %655 }
 0x2d6   :  { %v661_v44 = vmul.f32 %v656_v41, %v651_v40 }
 0x2d8   :  { %v2796_v45 = vadd.f32 %v661_v44, %v591_v12  ;;  %v261_v12 = vpop.f32.mrf.mxu0 }
 0x2da   :  { %669 = vrot.lane.b32.xlu2 %v2796_v45, %s2601_s23  ;;  %v665_v16 = vmul.f32 0.3333333, %v2796_v45 }
 0x2dd   :  { %v658_v47 = vpop.permute.xlu1 %657 }
 0x2de   :  { %v662_v48 = vmul.f32 %v658_v47, %v652_v46 }
 0x2e0   :  { %v2800_v49 = vadd.f32 %v662_v48, %v592_v14  ;;  %v331_v14 = vadd.f32 %v330_v13, %v261_v12 }
 0x2e2   :  { %671 = vrot.lane.b32.xlu2 %v2800_v49, %s2601_s23  ;;  %v386_v15 = vpack.c.bf16 %v331_v14, %v329_v10  ;;  %v666_v17 = vmul.f32 0.3333333, %v2800_v49 }
 0x2e4   :  { %2299 = vmatmul.msk.bf16.gmra.mxu2 %vm427_vm1, %v386_v15 }
 0x334   :  { %v670_v56 = vpop.permute.xlu2 %669 }
 0x335   :  { %v675_v60 = vrot.slane %v670_v56, 6  ;;  %v679_v61 = vrot.slane %v670_v56, 2 }
 0x33c   :  { %v672_v58 = vpop.permute.xlu2 %671 }
 0x33d   :  { %v676_v62 = vrot.slane %v672_v58, 6  ;;  %v680_v63 = vrot.slane %v672_v58, 2 }
 0x33f   :  { %v678_v0 = vsel %vm543_vm2, %v676_v62, %v675_v60  ;;  %v681_v1 = vsel %vm544_vm3, %v679_v61, %v680_v63  ;;  %v677_v2 = vsel %vm543_vm2, %v675_v60, %v676_v62  ;;  %v682_v3 = vsel %vm544_vm3, %v680_v63, %v679_v61 }
 0x340   :  { %v683_v4 = vadd.f32 %v681_v1, %v678_v0  ;;  %v684_v5 = vadd.f32 %v682_v3, %v677_v2 }
 0x342   :  { %v685_v6 = vmul.f32 0.3333333, %v683_v4  ;;  %v686_v7 = vmul.f32 0.3333333, %v684_v5 }
 0x344   :  { %689 = vrot.lane.b32.xlu0 %v685_v6, %s2602_s9  ;;  %691 = vrot.lane.b32.xlu1 %v686_v7, %s2602_s9 }
 0x367   :  { %v478_v24 = vpop.f32.mrf.mxu2 }
 0x368   :  { %v479_v26 = vadd.f32 %v478_v24, %v399_v25  ;;  %v2355_v24 = vld [vmem:[%s3486_s1 + $0x24] sm:$0xf0]  ;;  %v2354_v25 = vld [vmem:[%s3486_s1 + $0x24] sm:$0xf] }
 0x36f   :  { %v480_v31 = vpop.f32.mrf.mxu2 }
 0x370   :  { %v481_v33 = vadd.f32 %v480_v31, %v400_v30 }
 0x3b6   :  { %v690_v18 = vpop.permute.xlu0 %689  ;;  %v692_v19 = vpop.permute.xlu1 %691 }
 0x3b7   :  { %v695_v20 = vadd.f32 %v690_v18, %v665_v16  ;;  %v696_v21 = vadd.f32 %v692_v19, %v666_v17 }
 0x3b9   :  { %v697_v22 = vpack.c.bf16 %v696_v21, %v695_v20 }
 0x3bb   :  { %699 = vrot.lane.b32.xlu2 %v697_v22, %s2601_s23 }
 0x415   :  { %v700_v23 = vpop.permute.xlu2 %699 }
 0x416   :  { %2327 = vmatmul.msk.bf16.vlgmr.msra.gmra.mxu3 %vm561_vm4, %v700_v23 }
 0x417   :  { %839 = vmatpush.bf16.msra.mxu3 %v2734_v42 }
 0x41b   :  { %840 = vmatpush.bf16.msra.mxu3 %v2741_v43 }
 0x499   :  { %v713_v27 = vpop.f32.mrf.mxu3 }
 0x49a   :  { %v718_v28 = vadd.f32 %v713_v27, %v479_v26 }
 0x49c   :  { %v720_v29 = vsub.f32 0.0, %v718_v28 }
 0x49e   :  { %v722_v32 = vmul.f32 1.442695, %v720_v29 }
 0x4a0   :  { %2400 = vpow2.f32 %v722_v32 }
 0x4a1   :  { %v715_v34 = vpop.f32.mrf.mxu3 }
 0x4a2   :  { %v719_v35 = vadd.f32 %v715_v34, %v481_v33 }
 0x4a4   :  { %v721_v36 = vsub.f32 0.0, %v719_v35 }
 0x4a6   :  { %v2401_v37 = vpop.eup %2400  ;;  %v724_v38 = vmul.f32 1.442695, %v721_v36 }
 0x4a7   :  { %v726_v39 = vadd.f32 1.0, %v2401_v37 }
 0x4a8   :  { %2402 = vpow2.f32 %v724_v38 }
 0x4a9   :  { %2404 = vrcp.f32 %v726_v39 }
 0x4ae   :  { %v2403_v40 = vpop.eup %2402 }
 0x4af   :  { %v727_v41 = vadd.f32 1.0, %v2403_v40  ;;  %v2405_v44 = vpop.eup %2404 }
 0x4b0   :  { %v730_v46 = vmul.f32 %v2405_v44, %v670_v56  ;;  %v780_v14 = vsub.f32 1.0, %v2405_v44  ;;  %v778_v16 = vmul.f32 %v2405_v44, %v2796_v45  ;;  %v2204_v45 = vld [vmem:[%s3486_s1 + $0x20] sm:$0xf] }
 0x4b1   :  { %2406 = vrcp.f32 %v727_v41 }
 0x4b2   :  { %v734_v50 = vrot.slane %v730_v46, 6  ;;  %v738_v52 = vrot.slane %v730_v46, 2  ;;  %v732_v63 = vmul.f32 0.3333333, %v730_v46 }
 0x4b7   :  { %v2407_v47 = vpop.eup %2406 }
 0x4b8   :  { %v731_v48 = vmul.f32 %v2407_v47, %v672_v58  ;;  %v781_v19 = vsub.f32 1.0, %v2407_v47  ;;  %v779_v21 = vmul.f32 %v2407_v47, %v2800_v49  ;;  %v2206_v49 = vld [vmem:[%s3486_s1 + $0x28] sm:$0xf0] }
 0x4b9   :  { %v2209_v27 = vor.u32 %v2354_v25, %v2206_v49 }
 0x4ba   :  { %v735_v51 = vrot.slane %v731_v48, 6  ;;  %v739_v53 = vrot.slane %v731_v48, 2  ;;  %v733_v58 = vmul.f32 0.3333333, %v731_v48 }
 0x4bb   :  { %2284 = vmatmul.msk.bf16.gmra.mxu1 %vm208_vm0, %v2209_v27 }
 0x4bc   :  { %v736_v54 = vsel %vm543_vm2, %v734_v50, %v735_v51  ;;  %v737_v55 = vsel %vm543_vm2, %v735_v51, %v734_v50  ;;  %v740_v60 = vsel %vm544_vm3, %v738_v52, %v739_v53  ;;  %v741_v61 = vsel %vm544_vm3, %v739_v53, %v738_v52 }
 0x4bd   :  { %v742_v62 = vadd.f32 %v740_v60, %v737_v55  ;;  %v743_v56 = vadd.f32 %v741_v61, %v736_v54 }
 0x4bf   :  { %v744_v0 = vmul.f32 0.3333333, %v742_v62  ;;  %v745_v1 = vmul.f32 0.3333333, %v743_v56 }
 0x4c1   :  { %v746_v2 = vadd.f32 %v744_v0, %v732_v63  ;;  %v747_v3 = vadd.f32 %v745_v1, %v733_v58  ;;  %v401_v0 = vld [vmem:[#allocation2 + $0x20] sm:$0xff] }
 0x4c3   :  { %v748_v4 = vpack.c.bf16 %v747_v3, %v746_v2 }
 0x4c5   :  { %2328 = vmatmul.msk.bf16.vlgmr.msrb.gmra.mxu3 %vm561_vm4, %v748_v4 }
 0x4c6   :  { %887 = vmatpush.bf16.msrb.mxu3 %v2758_v57 }
 0x4ca   :  { %888 = vmatpush.bf16.msrb.mxu3 %v2765_v59 }
 0x538   :  { %v333_v46 = vpop.f32.mrf.mxu1 }
 0x540   :  { %v335_v50 = vpop.f32.mrf.mxu1 }
 0x548   :  { %v761_v5 = vpop.f32.mrf.mxu3 }
 0x549   :  { %768 = vrot.lane.b32.xlu0 %v761_v5, %s2600_s22  ;;  %v402_v5 = vld [vmem:[#allocation2 + $0x28] sm:$0xff] }
 0x550   :  { %v763_v6 = vpop.f32.mrf.mxu3 }
 0x551   :  { %770 = vrot.lane.b32.xlu1 %v763_v6, %s2600_s22 }
 0x5bb   :  { %v769_v7 = vpop.permute.xlu0 %768 }
 0x5bc   :  { %v774_v8 = vadd.f32 %v769_v7, %v479_v26  ;;  %v2205_v26 = vor.u32 %v2355_v24, %v2204_v45 }
 0x5be   :  { %2408 = vtanh.f32 %v774_v8  ;;  %263 = vmatmul.bf16.gmra.mxu0 %v2205_v26 }
 0x5c3   :  { %v771_v9 = vpop.permute.xlu1 %770 }
 0x5c4   :  { %v2409_v10 = vpop.eup %2408  ;;  %v775_v12 = vadd.f32 %v771_v9, %v481_v33 }
 0x5c5   :  { %784 = vrot.lane.b32.xlu2 %v2409_v10, %s2601_s23 }
 0x5c6   :  { %2410 = vtanh.f32 %v775_v12 }
 0x5cc   :  { %v2411_v13 = vpop.eup %2410 }
 0x5cd   :  { %786 = vrot.lane.b32.xlu0 %v2411_v13, %s2601_s23 }
 0x61f   :  { %v785_v15 = vpop.permute.xlu2 %784 }
 0x620   :  { %v790_v17 = vmul.f32 %v785_v15, %v780_v14 }
 0x622   :  { %v2850_v18 = vadd.f32 %v790_v17, %v778_v16 }
 0x624   :  { %798 = vrot.lane.b32.xlu1 %v2850_v18, %s2601_s23  ;;  %v794_v53 = vmul.f32 0.3333333, %v2850_v18 }
 0x63b   :  { %v264_v44 = vpop.f32.mrf.mxu0 }
 0x63c   :  { %v334_v47 = vadd.f32 %v333_v46, %v264_v44 }
 0x63f   :  { %v787_v20 = vpop.permute.xlu0 %786 }
 0x640   :  { %v791_v22 = vmul.f32 %v787_v20, %v781_v19 }
 0x642   :  { %v2855_v23 = vadd.f32 %v791_v22, %v779_v21 }
 0x643   :  { %v266_v48 = vpop.f32.mrf.mxu0 }
 0x644   :  { %800 = vrot.lane.b32.xlu2 %v2855_v23, %s2601_s23  ;;  %v336_v51 = vadd.f32 %v335_v50, %v266_v48  ;;  %v795_v54 = vmul.f32 0.3333333, %v2855_v23 }
 0x646   :  { %v387_v52 = vpack.c.bf16 %v336_v51, %v334_v47 }
 0x648   :  { %2300 = vmatmul.msk.bf16.gmra.mxu2 %vm427_vm1, %v387_v52 }
 0x696   :  { %v799_v28 = vpop.permute.xlu1 %798 }
 0x697   :  { %v804_v30 = vrot.slane %v799_v28, 6  ;;  %v808_v31 = vrot.slane %v799_v28, 2 }
 0x69e   :  { %v801_v29 = vpop.permute.xlu2 %800 }
 0x69f   :  { %v805_v32 = vrot.slane %v801_v29, 6  ;;  %v809_v33 = vrot.slane %v801_v29, 2 }
 0x6a1   :  { %v807_v34 = vsel %vm543_vm2, %v805_v32, %v804_v30  ;;  %v810_v35 = vsel %vm544_vm3, %v808_v31, %v809_v33  ;;  %v806_v36 = vsel %vm543_vm2, %v804_v30, %v805_v32  ;;  %v811_v37 = vsel %vm544_vm3, %v809_v33, %v808_v31 }
 0x6a2   :  { %v812_v38 = vadd.f32 %v810_v35, %v807_v34  ;;  %v813_v39 = vadd.f32 %v811_v37, %v806_v36 }
 0x6a4   :  { %v814_v40 = vmul.f32 0.3333333, %v812_v38  ;;  %v815_v41 = vmul.f32 0.3333333, %v813_v39 }
 0x6a6   :  { %818 = vrot.lane.b32.xlu0 %v814_v40, %s2602_s9  ;;  %820 = vrot.lane.b32.xlu1 %v815_v41, %s2602_s9 }
 0x6cb   :  { %v483_v58 = vpop.f32.mrf.mxu2 }
 0x6cc   :  { %v484_v1 = vadd.f32 %v483_v58, %v401_v0  ;;  %v2357_v58 = vld [vmem:[%s3486_s1 + $0x34] sm:$0xf0]  ;;  %v2356_v0 = vld [vmem:[%s3486_s1 + $0x34] sm:$0xf] }
 0x6d3   :  { %v485_v6 = vpop.f32.mrf.mxu2 }
 0x6d4   :  { %v486_v8 = vadd.f32 %v485_v6, %v402_v5 }
 0x718   :  { %v819_v55 = vpop.permute.xlu0 %818  ;;  %v821_v60 = vpop.permute.xlu1 %820 }
 0x719   :  { %v824_v61 = vadd.f32 %v819_v55, %v794_v53  ;;  %v825_v62 = vadd.f32 %v821_v60, %v795_v54 }
 0x71b   :  { %v826_v56 = vpack.c.bf16 %v825_v62, %v824_v61 }
 0x71d   :  { %828 = vrot.lane.b32.xlu2 %v826_v56, %s2601_s23 }
 0x777   :  { %v829_v63 = vpop.permute.xlu2 %828 }
 0x778   :  { %2329 = vmatmul.msk.bf16.vlgmr.msra.gmra.mxu3 %vm561_vm4, %v829_v63 }
 0x779   :  { %968 = vmatpush.bf16.msra.mxu3 %v2734_v42 }
 0x77d   :  { %969 = vmatpush.bf16.msra.mxu3 %v2741_v43 }
 0x7fb   :  { %v842_v2 = vpop.f32.mrf.mxu3 }
 0x7fc   :  { %v847_v3 = vadd.f32 %v842_v2, %v484_v1 }
 0x7fe   :  { %v849_v4 = vsub.f32 0.0, %v847_v3 }
 0x800   :  { %v851_v7 = vmul.f32 1.442695, %v849_v4 }
 0x802   :  { %2412 = vpow2.f32 %v851_v7 }
 0x803   :  { %v844_v9 = vpop.f32.mrf.mxu3 }
 0x804   :  { %v848_v10 = vadd.f32 %v844_v9, %v486_v8 }
 0x806   :  { %v850_v12 = vsub.f32 0.0, %v848_v10 }
 0x808   :  { %v2413_v13 = vpop.eup %2412  ;;  %v853_v14 = vmul.f32 1.442695, %v850_v12 }
 0x809   :  { %v855_v15 = vadd.f32 1.0, %v2413_v13 }
 0x80a   :  { %2414 = vpow2.f32 %v853_v14 }
 0x80b   :  { %2416 = vrcp.f32 %v855_v15 }
 0x810   :  { %v2415_v16 = vpop.eup %2414 }
 0x811   :  { %v856_v17 = vadd.f32 1.0, %v2415_v16  ;;  %v2417_v19 = vpop.eup %2416 }
 0x812   :  { %v859_v20 = vmul.f32 %v2417_v19, %v799_v28  ;;  %v909_v51 = vsub.f32 1.0, %v2417_v19  ;;  %v907_v53 = vmul.f32 %v2417_v19, %v2850_v18  ;;  %v2212_v18 = vld [vmem:[%s3486_s1 + $0x30] sm:$0xf] }
 0x813   :  { %2418 = vrcp.f32 %v856_v17 }
 0x814   :  { %v863_v45 = vrot.slane %v859_v20, 6  ;;  %v867_v25 = vrot.slane %v859_v20, 2  ;;  %v861_v33 = vmul.f32 0.3333333, %v859_v20 }
 0x819   :  { %v2419_v21 = vpop.eup %2418 }
 0x81a   :  { %v860_v22 = vmul.f32 %v2419_v21, %v801_v29  ;;  %v910_v60 = vsub.f32 1.0, %v2419_v21  ;;  %v908_v62 = vmul.f32 %v2419_v21, %v2855_v23  ;;  %v2214_v23 = vld [vmem:[%s3486_s1 + $0x38] sm:$0xf0] }
 0x81b   :  { %v2217_v2 = vor.u32 %v2356_v0, %v2214_v23 }
 0x81c   :  { %v864_v24 = vrot.slane %v860_v22, 6  ;;  %v868_v26 = vrot.slane %v860_v22, 2  ;;  %v862_v29 = vmul.f32 0.3333333, %v860_v22 }
 0x81d   :  { %2285 = vmatmul.msk.bf16.gmra.mxu1 %vm208_vm0, %v2217_v2 }
 0x81e   :  { %v865_v49 = vsel %vm543_vm2, %v863_v45, %v864_v24  ;;  %v866_v27 = vsel %vm543_vm2, %v864_v24, %v863_v45  ;;  %v869_v30 = vsel %vm544_vm3, %v867_v25, %v868_v26  ;;  %v870_v31 = vsel %vm544_vm3, %v868_v26, %v867_v25 }
 0x81f   :  { %v871_v32 = vadd.f32 %v869_v30, %v866_v27  ;;  %v872_v28 = vadd.f32 %v870_v31, %v865_v49 }
 0x821   :  { %v873_v34 = vmul.f32 0.3333333, %v871_v32  ;;  %v874_v35 = vmul.f32 0.3333333, %v872_v28 }
 0x823   :  { %v875_v36 = vadd.f32 %v873_v34, %v861_v33  ;;  %v876_v37 = vadd.f32 %v874_v35, %v862_v29  ;;  %v403_v34 = vld [vmem:[#allocation2 + $0x30] sm:$0xff] }
 0x825   :  { %v877_v38 = vpack.c.bf16 %v876_v37, %v875_v36 }
 0x827   :  { %2330 = vmatmul.msk.bf16.vlgmr.msrb.gmra.mxu3 %vm561_vm4, %v877_v38 }
 0x828   :  { %1016 = vmatpush.bf16.msrb.mxu3 %v2758_v57 }
 0x82c   :  { %1017 = vmatpush.bf16.msrb.mxu3 %v2765_v59 }
 0x89a   :  { %v338_v20 = vpop.f32.mrf.mxu1 }
 0x8a2   :  { %v340_v45 = vpop.f32.mrf.mxu1 }
 0x8aa   :  { %v890_v39 = vpop.f32.mrf.mxu3 }
 0x8ab   :  { %897 = vrot.lane.b32.xlu0 %v890_v39, %s2600_s22  ;;  %v404_v39 = vld [vmem:[#allocation2 + $0x38] sm:$0xff] }
 0x8b2   :  { %v892_v40 = vpop.f32.mrf.mxu3 }
 0x8b3   :  { %899 = vrot.lane.b32.xlu1 %v892_v40, %s2600_s22 }
 0x91d   :  { %v898_v41 = vpop.permute.xlu0 %897 }
 0x91e   :  { %v903_v44 = vadd.f32 %v898_v41, %v484_v1  ;;  %v2213_v1 = vor.u32 %v2357_v58, %v2212_v18 }
 0x920   :  { %2420 = vtanh.f32 %v903_v44  ;;  %268 = vmatmul.bf16.gmra.mxu0 %v2213_v1 }
 0x925   :  { %v900_v46 = vpop.permute.xlu1 %899 }
 0x926   :  { %v2421_v47 = vpop.eup %2420  ;;  %v904_v48 = vadd.f32 %v900_v46, %v486_v8 }
 0x927   :  { %913 = vrot.lane.b32.xlu2 %v2421_v47, %s2601_s23 }
 0x928   :  { %2422 = vtanh.f32 %v904_v48 }
 0x92e   :  { %v2423_v50 = vpop.eup %2422 }
 0x92f   :  { %915 = vrot.lane.b32.xlu0 %v2423_v50, %s2601_s23 }
 0x981   :  { %v914_v52 = vpop.permute.xlu2 %913 }
 0x982   :  { %v919_v54 = vmul.f32 %v914_v52, %v909_v51 }
 0x984   :  { %v2905_v55 = vadd.f32 %v919_v54, %v907_v53 }
 0x986   :  { %927 = vrot.lane.b32.xlu1 %v2905_v55, %s2601_s23  ;;  %v923_v26 = vmul.f32 0.3333333, %v2905_v55 }
 0x99d   :  { %v269_v19 = vpop.f32.mrf.mxu0 }
 0x99e   :  { %v339_v21 = vadd.f32 %v338_v20, %v269_v19 }
 0x9a1   :  { %v916_v61 = vpop.permute.xlu0 %915 }
 0x9a2   :  { %v920_v56 = vmul.f32 %v916_v61, %v910_v60 }
 0x9a4   :  { %v2910_v63 = vadd.f32 %v920_v56, %v908_v62 }
 0x9a5   :  { %v271_v22 = vpop.f32.mrf.mxu0 }
 0x9a6   :  { %929 = vrot.lane.b32.xlu2 %v2910_v63, %s2601_s23  ;;  %v341_v24 = vadd.f32 %v340_v45, %v271_v22  ;;  %v924_v49 = vmul.f32 0.3333333, %v2910_v63 }
 0x9a8   :  { %v388_v25 = vpack.c.bf16 %v341_v24, %v339_v21 }
 0x9aa   :  { %2301 = vmatmul.msk.bf16.gmra.mxu2 %vm427_vm1, %v388_v25 }
 0x9f8   :  { %v928_v3 = vpop.permute.xlu1 %927 }
 0x9f9   :  { %v933_v5 = vrot.slane %v928_v3, 6  ;;  %v937_v6 = vrot.slane %v928_v3, 2 }
 0xa00   :  { %v930_v4 = vpop.permute.xlu2 %929 }
 0xa01   :  { %v934_v7 = vrot.slane %v930_v4, 6  ;;  %v938_v8 = vrot.slane %v930_v4, 2 }
 0xa03   :  { %v936_v9 = vsel %vm543_vm2, %v934_v7, %v933_v5  ;;  %v939_v10 = vsel %vm544_vm3, %v937_v6, %v938_v8  ;;  %v935_v12 = vsel %vm543_vm2, %v933_v5, %v934_v7  ;;  %v940_v13 = vsel %vm544_vm3, %v938_v8, %v937_v6 }
 0xa04   :  { %v941_v14 = vadd.f32 %v939_v10, %v936_v9  ;;  %v942_v15 = vadd.f32 %v940_v13, %v935_v12 }
 0xa06   :  { %v943_v16 = vmul.f32 0.3333333, %v941_v14  ;;  %v944_v17 = vmul.f32 0.3333333, %v942_v15 }
 0xa08   :  { %947 = vrot.lane.b32.xlu0 %v943_v16, %s2602_s9  ;;  %949 = vrot.lane.b32.xlu1 %v944_v17, %s2602_s9 }
 0xa2d   :  { %v488_v29 = vpop.f32.mrf.mxu2 }
 0xa2e   :  { %v489_v35 = vadd.f32 %v488_v29, %v403_v34 }
 0xa35   :  { %v490_v40 = vpop.f32.mrf.mxu2 }
 0xa36   :  { %v491_v44 = vadd.f32 %v490_v40, %v404_v39 }
 0xa7a   :  { %v948_v27 = vpop.permute.xlu0 %947  ;;  %v950_v30 = vpop.permute.xlu1 %949 }
 0xa7b   :  { %v953_v31 = vadd.f32 %v948_v27, %v923_v26  ;;  %v954_v32 = vadd.f32 %v950_v30, %v924_v49 }
 0xa7d   :  { %v955_v28 = vpack.c.bf16 %v954_v32, %v953_v31 }
 0xa7f   :  { %957 = vrot.lane.b32.xlu2 %v955_v28, %s2601_s23  ;;  %v2359_v28 = vld [vmem:[%s3486_s1 + $0x44] sm:$0xf0] }
 0xad9   :  { %v958_v33 = vpop.permute.xlu2 %957 }
 0xada   :  { %2331 = vmatmul.msk.bf16.vlgmr.msra.gmra.mxu3 %vm561_vm4, %v958_v33  ;;  %v2358_v33 = vld [vmem:[%s3486_s1 + $0x44] sm:$0xf] }
 0xadb   :  { %1097 = vmatpush.bf16.msra.mxu3 %v2734_v42 }
 0xadf   :  { %1098 = vmatpush.bf16.msra.mxu3 %v2741_v43 }
 0xb5d   :  { %v971_v36 = vpop.f32.mrf.mxu3 }
 0xb5e   :  { %v976_v37 = vadd.f32 %v971_v36, %v489_v35 }
 0xb60   :  { %v978_v38 = vsub.f32 0.0, %v976_v37 }
 0xb62   :  { %v980_v41 = vmul.f32 1.442695, %v978_v38 }
 0xb64   :  { %2424 = vpow2.f32 %v980_v41 }
 0xb65   :  { %v973_v46 = vpop.f32.mrf.mxu3 }
 0xb66   :  { %v977_v47 = vadd.f32 %v973_v46, %v491_v44 }
 0xb68   :  { %v979_v48 = vsub.f32 0.0, %v977_v47 }
 0xb6a   :  { %v2425_v50 = vpop.eup %2424  ;;  %v982_v51 = vmul.f32 1.442695, %v979_v48 }
 0xb6b   :  { %v984_v52 = vadd.f32 1.0, %v2425_v50 }
 0xb6c   :  { %2426 = vpow2.f32 %v982_v51 }
 0xb6d   :  { %2428 = vrcp.f32 %v984_v52 }
 0xb72   :  { %v2427_v53 = vpop.eup %2426 }
 0xb73   :  { %v985_v54 = vadd.f32 1.0, %v2427_v53  ;;  %v2429_v60 = vpop.eup %2428 }
 0xb74   :  { %v988_v61 = vmul.f32 %v2429_v60, %v928_v3  ;;  %v1036_v24 = vmul.f32 %v2429_v60, %v2905_v55  ;;  %v2220_v55 = vld [vmem:[%s3486_s1 + $0x40] sm:$0xf] }
 0xb75   :  { %2430 = vrcp.f32 %v985_v54  ;;  %v2221_v29 = vor.u32 %v2359_v28, %v2220_v55 }
 0xb76   :  { %v992_v18 = vrot.slane %v988_v61, 6  ;;  %v996_v0 = vrot.slane %v988_v61, 2  ;;  %v990_v8 = vmul.f32 0.3333333, %v988_v61 }
 0xb77   :  { %273 = vmatmul.bf16.gmra.mxu0 %v2221_v29 }
 0xb7b   :  { %v2431_v62 = vpop.eup %2430 }
 0xb7c   :  { %v989_v56 = vmul.f32 %v2431_v62, %v930_v4  ;;  %v1039_v49 = vsub.f32 1.0, %v2431_v62  ;;  %v1037_v30 = vmul.f32 %v2431_v62, %v2910_v63  ;;  %v2222_v63 = vld [vmem:[%s3486_s1 + $0x48] sm:$0xf0] }
 0xb7d   :  { %v2225_v34 = vor.u32 %v2358_v33, %v2222_v63 }
 0xb7e   :  { %v993_v58 = vrot.slane %v989_v56, 6  ;;  %v997_v1 = vrot.slane %v989_v56, 2  ;;  %v991_v4 = vmul.f32 0.3333333, %v989_v56 }
 0xb7f   :  { %2286 = vmatmul.msk.bf16.gmra.mxu1 %vm208_vm0, %v2225_v34 }
 0xb80   :  { %v994_v23 = vsel %vm543_vm2, %v992_v18, %v993_v58  ;;  %v995_v2 = vsel %vm543_vm2, %v993_v58, %v992_v18  ;;  %v998_v5 = vsel %vm544_vm3, %v996_v0, %v997_v1  ;;  %v999_v6 = vsel %vm544_vm3, %v997_v1, %v996_v0 }
 0xb81   :  { %v1000_v7 = vadd.f32 %v998_v5, %v995_v2  ;;  %v1001_v3 = vadd.f32 %v999_v6, %v994_v23 }
 0xb83   :  { %v1002_v9 = vmul.f32 0.3333333, %v1000_v7  ;;  %v1003_v10 = vmul.f32 0.3333333, %v1001_v3 }
 0xb85   :  { %v1004_v12 = vadd.f32 %v1002_v9, %v990_v8  ;;  %v1005_v13 = vadd.f32 %v1003_v10, %v991_v4  ;;  %v405_v8 = vld [vmem:[#allocation2 + $0x40] sm:$0xff] }
 0xb87   :  { %v1006_v14 = vpack.c.bf16 %v1005_v13, %v1004_v12  ;;  %v406_v13 = vld [vmem:[#allocation2 + $0x48] sm:$0xff] }
 0xb89   :  { %2332 = vmatmul.msk.bf16.vlgmr.msrb.gmra.mxu3 %vm561_vm4, %v1006_v14 }
 0xb8a   :  { %1145 = vmatpush.bf16.msrb.mxu3 %v2758_v57  ;;  %v1038_v57 = vsub.f32 1.0, %v2429_v60 }
 0xb8e   :  { %1146 = vmatpush.bf16.msrb.mxu3 %v2765_v59 }
 0xbf4   :  { %v274_v53 = vpop.f32.mrf.mxu0 }
 0xbfc   :  { %v343_v54 = vpop.f32.mrf.mxu1  ;;  %v276_v61 = vpop.f32.mrf.mxu0 }
 0xbfd   :  { %v344_v60 = vadd.f32 %v343_v54, %v274_v53 }
 0xc04   :  { %v345_v62 = vpop.f32.mrf.mxu1 }
 0xc05   :  { %v346_v56 = vadd.f32 %v345_v62, %v276_v61 }
 0xc07   :  { %v389_v18 = vpack.c.bf16 %v346_v56, %v344_v60 }
 0xc09   :  { %2302 = vmatmul.msk.bf16.gmra.mxu2 %vm427_vm1, %v389_v18 }
 0xc0c   :  { %v1019_v15 = vpop.f32.mrf.mxu3 }
 0xc0d   :  { %1026 = vrot.lane.b32.xlu0 %v1019_v15, %s2600_s22 }
 0xc14   :  { %v1021_v16 = vpop.f32.mrf.mxu3 }
 0xc15   :  { %1028 = vrot.lane.b32.xlu1 %v1021_v16, %s2600_s22 }
 0xc7f   :  { %v1027_v17 = vpop.permute.xlu0 %1026 }
 0xc80   :  { %v1032_v19 = vadd.f32 %v1027_v17, %v489_v35 }
 0xc82   :  { %2432 = vtanh.f32 %v1032_v19 }
 0xc87   :  { %v1029_v20 = vpop.permute.xlu1 %1028 }
 0xc88   :  { %v2433_v21 = vpop.eup %2432  ;;  %v1033_v22 = vadd.f32 %v1029_v20, %v491_v44 }
 0xc89   :  { %1042 = vrot.lane.b32.xlu2 %v2433_v21, %s2601_s23 }
 0xc8a   :  { %2434 = vtanh.f32 %v1033_v22 }
 0xc8c   :  { %v493_v3 = vpop.f32.mrf.mxu2 }
 0xc8d   :  { %v494_v4 = vadd.f32 %v493_v3, %v405_v8 }
 0xc90   :  { %v2435_v45 = vpop.eup %2434 }
 0xc91   :  { %1044 = vrot.lane.b32.xlu0 %v2435_v45, %s2601_s23 }
 0xc94   :  { %v495_v14 = vpop.f32.mrf.mxu2 }
 0xc95   :  { %v496_v16 = vadd.f32 %v495_v14, %v406_v13 }
 0xce3   :  { %v1043_v59 = vpop.permute.xlu2 %1042 }
 0xce4   :  { %v1048_v25 = vmul.f32 %v1043_v59, %v1038_v57 }
 0xce6   :  { %v2960_v26 = vadd.f32 %v1048_v25, %v1036_v24 }
 0xce8   :  { %1056 = vrot.lane.b32.xlu1 %v2960_v26, %s2601_s23  ;;  %v1052_v58 = vmul.f32 0.3333333, %v2960_v26 }
 0xd03   :  { %v1045_v27 = vpop.permute.xlu0 %1044 }
 0xd04   :  { %v1049_v31 = vmul.f32 %v1045_v27, %v1039_v49 }
 0xd06   :  { %v2965_v32 = vadd.f32 %v1049_v31, %v1037_v30 }
 0xd08   :  { %1058 = vrot.lane.b32.xlu2 %v2965_v32, %s2601_s23  ;;  %v1053_v0 = vmul.f32 0.3333333, %v2965_v32 }
 0xd5a   :  { %v1057_v35 = vpop.permute.xlu1 %1056 }
 0xd5b   :  { %v1062_v37 = vrot.slane %v1057_v35, 6  ;;  %v1066_v38 = vrot.slane %v1057_v35, 2 }
 0xd62   :  { %v1059_v36 = vpop.permute.xlu2 %1058 }
 0xd63   :  { %v1063_v39 = vrot.slane %v1059_v36, 6  ;;  %v1067_v40 = vrot.slane %v1059_v36, 2 }
 0xd65   :  { %v1065_v41 = vsel %vm543_vm2, %v1063_v39, %v1062_v37  ;;  %v1068_v44 = vsel %vm544_vm3, %v1066_v38, %v1067_v40  ;;  %v1064_v46 = vsel %vm543_vm2, %v1062_v37, %v1063_v39  ;;  %v1069_v47 = vsel %vm544_vm3, %v1067_v40, %v1066_v38 }
 0xd66   :  { %v1070_v48 = vadd.f32 %v1068_v44, %v1065_v41  ;;  %v1071_v50 = vadd.f32 %v1069_v47, %v1064_v46  ;;  %v3011_v44 = vld [vmem:[%s3487_s2 + $0x20] sm:$0xff]  ;;  %v3017_v46 = vld [vmem:[%s3487_s2 + $0x18] sm:$0xff] }
 0xd68   :  { %v1072_v51 = vmul.f32 0.3333333, %v1070_v48  ;;  %v1073_v52 = vmul.f32 0.3333333, %v1071_v50 }
 0xd6a   :  { %1076 = vrot.lane.b32.xlu0 %v1072_v51, %s2602_s9  ;;  %1078 = vrot.lane.b32.xlu1 %v1073_v52, %s2602_s9 }
 0xddc   :  { %v1077_v1 = vpop.permute.xlu0 %1076  ;;  %v1079_v23 = vpop.permute.xlu1 %1078 }
 0xddd   :  { %v1082_v2 = vadd.f32 %v1077_v1, %v1052_v58  ;;  %v1083_v5 = vadd.f32 %v1079_v23, %v1053_v0 }
 0xddf   :  { %v1084_v6 = vpack.c.bf16 %v1083_v5, %v1082_v2 }
 0xde1   :  { %1086 = vrot.lane.b32.xlu2 %v1084_v6, %s2601_s23  ;;  %v2361_v6 = vld [vmem:[%s3486_s1 + $0x54] sm:$0xf0] }
 0xe3b   :  { %v1087_v7 = vpop.permute.xlu2 %1086 }
 0xe3c   :  { %2333 = vmatmul.msk.bf16.vlgmr.msra.gmra.mxu3 %vm561_vm4, %v1087_v7  ;;  %v2360_v7 = vld [vmem:[%s3486_s1 + $0x54] sm:$0xf] }
 0xe3d   :  { %1226 = vmatpush.bf16.msra.mxu3 %v2734_v42 }
 0xe41   :  { %1227 = vmatpush.bf16.msra.mxu3 %v2741_v43 }
 0xebf   :  { %v1100_v9 = vpop.f32.mrf.mxu3 }
 0xec0   :  { %v1105_v10 = vadd.f32 %v1100_v9, %v494_v4 }
 0xec2   :  { %v1107_v12 = vsub.f32 0.0, %v1105_v10 }
 0xec4   :  { %v1109_v15 = vmul.f32 1.442695, %v1107_v12 }
 0xec6   :  { %2436 = vpow2.f32 %v1109_v15 }
 0xec7   :  { %v1102_v17 = vpop.f32.mrf.mxu3 }
 0xec8   :  { %v1106_v19 = vadd.f32 %v1102_v17, %v496_v16 }
 0xeca   :  { %v1108_v20 = vsub.f32 0.0, %v1106_v19 }
 0xecc   :  { %v2437_v21 = vpop.eup %2436  ;;  %v1111_v22 = vmul.f32 1.442695, %v1108_v20 }
 0xecd   :  { %v1113_v42 = vadd.f32 1.0, %v2437_v21 }
 0xece   :  { %2438 = vpow2.f32 %v1111_v22 }
 0xecf   :  { %2440 = vrcp.f32 %v1113_v42 }
 0xed4   :  { %v2439_v43 = vpop.eup %2438 }
 0xed5   :  { %v1114_v45 = vadd.f32 1.0, %v2439_v43  ;;  %v2441_v57 = vpop.eup %2440 }
 0xed6   :  { %v1117_v59 = vmul.f32 %v2441_v57, %v1057_v35  ;;  %v1167_v61 = vsub.f32 1.0, %v2441_v57  ;;  %v1165_v56 = vmul.f32 %v2441_v57, %v2960_v26  ;;  %v2228_v26 = vld [vmem:[%s3486_s1 + $0x50] sm:$0xf] }
 0xed7   :  { %2442 = vrcp.f32 %v1114_v45  ;;  %v2229_v3 = vor.u32 %v2361_v6, %v2228_v26 }
 0xed8   :  { %v1121_v49 = vrot.slane %v1117_v59, 6  ;;  %v1125_v30 = vrot.slane %v1117_v59, 2  ;;  %v1119_v35 = vmul.f32 0.3333333, %v1117_v59 }
 0xed9   :  { %278 = vmatmul.bf16.gmra.mxu0 %v2229_v3 }
 0xedd   :  { %v2443_v24 = vpop.eup %2442 }
 0xede   :  { %v1118_v25 = vmul.f32 %v2443_v24, %v1059_v36  ;;  %v1168_v0 = vsub.f32 1.0, %v2443_v24  ;;  %v1166_v23 = vmul.f32 %v2443_v24, %v2965_v32  ;;  %v2230_v32 = vld [vmem:[%s3486_s1 + $0x58] sm:$0xf0] }
 0xedf   :  { %v2233_v8 = vor.u32 %v2360_v7, %v2230_v32 }
 0xee0   :  { %v1122_v27 = vrot.slane %v1118_v25, 6  ;;  %v1126_v31 = vrot.slane %v1118_v25, 2  ;;  %v1120_v36 = vmul.f32 0.3333333, %v1118_v25 }
 0xee1   :  { %2287 = vmatmul.msk.bf16.gmra.mxu1 %vm208_vm0, %v2233_v8 }
 0xee2   :  { %v1123_v55 = vsel %vm543_vm2, %v1121_v49, %v1122_v27  ;;  %v1124_v28 = vsel %vm543_vm2, %v1122_v27, %v1121_v49  ;;  %v1127_v33 = vsel %vm544_vm3, %v1125_v30, %v1126_v31  ;;  %v1128_v29 = vsel %vm544_vm3, %v1126_v31, %v1125_v30 }
 0xee3   :  { %v1129_v63 = vadd.f32 %v1127_v33, %v1124_v28  ;;  %v1130_v34 = vadd.f32 %v1128_v29, %v1123_v55 }
 0xee5   :  { %v1131_v37 = vmul.f32 0.3333333, %v1129_v63  ;;  %v1132_v38 = vmul.f32 0.3333333, %v1130_v34 }
 0xee7   :  { %v1133_v39 = vadd.f32 %v1131_v37, %v1119_v35  ;;  %v1134_v40 = vadd.f32 %v1132_v38, %v1120_v36  ;;  %v407_v35 = vld [vmem:[#allocation2 + $0x50] sm:$0xff] }
 0xee9   :  { %v1135_v41 = vpack.c.bf16 %v1134_v40, %v1133_v39  ;;  %v408_v40 = vld [vmem:[#allocation2 + $0x58] sm:$0xff] }
 0xeeb   :  { %2334 = vmatmul.msk.bf16.vlgmr.msrb.gmra.mxu3 %vm561_vm4, %v1135_v41 }
 0xeec   :  { %1274 = vmatpush.bf16.msrb.mxu3 %v3011_v44 }
 0xef0   :  { %1275 = vmatpush.bf16.msrb.mxu3 %v3017_v46 }
 0xf56   :  { %v279_v43 = vpop.f32.mrf.mxu0 }
 0xf5e   :  { %v348_v45 = vpop.f32.mrf.mxu1  ;;  %v281_v59 = vpop.f32.mrf.mxu0 }
 0xf5f   :  { %v349_v57 = vadd.f32 %v348_v45, %v279_v43 }
 0xf66   :  { %v350_v24 = vpop.f32.mrf.mxu1 }
 0xf67   :  { %v351_v25 = vadd.f32 %v350_v24, %v281_v59 }
 0xf69   :  { %v390_v49 = vpack.c.bf16 %v351_v25, %v349_v57 }
 0xf6b   :  { %2303 = vmatmul.msk.bf16.gmra.mxu2 %vm427_vm1, %v390_v49 }
 0xf6e   :  { %v1148_v47 = vpop.f32.mrf.mxu3 }
 0xf6f   :  { %1155 = vrot.lane.b32.xlu0 %v1148_v47, %s2600_s22 }
 0xf76   :  { %v1150_v48 = vpop.f32.mrf.mxu3 }
 0xf77   :  { %1157 = vrot.lane.b32.xlu1 %v1150_v48, %s2600_s22 }
 0xfe1   :  { %v1156_v50 = vpop.permute.xlu0 %1155 }
 0xfe2   :  { %v1161_v51 = vadd.f32 %v1156_v50, %v494_v4 }
 0xfe4   :  { %2444 = vtanh.f32 %v1161_v51 }
 0xfe9   :  { %v1158_v52 = vpop.permute.xlu1 %1157 }
 0xfea   :  { %v2445_v53 = vpop.eup %2444  ;;  %v1162_v54 = vadd.f32 %v1158_v52, %v496_v16 }
 0xfeb   :  { %1171 = vrot.lane.b32.xlu2 %v2445_v53, %s2601_s23 }
 0xfec   :  { %2446 = vtanh.f32 %v1162_v54 }
 0xfee   :  { %v498_v34 = vpop.f32.mrf.mxu2 }
 0xfef   :  { %v499_v36 = vadd.f32 %v498_v34, %v407_v35  ;;  %v2244_v34 = vld [vmem:[%s3486_s1 + $0x70] sm:$0xf]  ;;  %v2365_v35 = vld [vmem:[%s3486_s1 + $0x74] sm:$0xf0] }
 0xff2   :  { %v2447_v60 = vpop.eup %2446 }
 0xff3   :  { %1173 = vrot.lane.b32.xlu0 %v2447_v60, %s2601_s23 }
 0xff6   :  { %v500_v41 = vpop.f32.mrf.mxu2 }
 0xff7   :  { %v501_v48 = vadd.f32 %v500_v41, %v408_v40 }
0x1045   :  { %v1172_v62 = vpop.permute.xlu2 %1171 }
0x1046   :  { %v1177_v18 = vmul.f32 %v1172_v62, %v1167_v61 }
0x1048   :  { %v3025_v58 = vadd.f32 %v1177_v18, %v1165_v56 }
0x104a   :  { %1185 = vrot.lane.b32.xlu1 %v3025_v58, %s2601_s23  ;;  %v1181_v27 = vmul.f32 0.3333333, %v3025_v58 }
0x1065   :  { %v1174_v1 = vpop.permute.xlu0 %1173 }
0x1066   :  { %v1178_v2 = vmul.f32 %v1174_v1, %v1168_v0 }
0x1068   :  { %v3030_v5 = vadd.f32 %v1178_v2, %v1166_v23 }
0x106a   :  { %1187 = vrot.lane.b32.xlu2 %v3030_v5, %s2601_s23  ;;  %v1182_v30 = vmul.f32 0.3333333, %v3030_v5 }
0x10bc   :  { %v1186_v4 = vpop.permute.xlu1 %1185 }
0x10bd   :  { %v1191_v10 = vrot.slane %v1186_v4, 6  ;;  %v1195_v12 = vrot.slane %v1186_v4, 2 }
0x10c4   :  { %v1188_v9 = vpop.permute.xlu2 %1187 }
0x10c5   :  { %v1192_v13 = vrot.slane %v1188_v9, 6  ;;  %v1196_v14 = vrot.slane %v1188_v9, 2 }
0x10c7   :  { %v1194_v15 = vsel %vm543_vm2, %v1192_v13, %v1191_v10  ;;  %v1197_v16 = vsel %vm544_vm3, %v1195_v12, %v1196_v14  ;;  %v1193_v17 = vsel %vm543_vm2, %v1191_v10, %v1192_v13  ;;  %v1198_v19 = vsel %vm544_vm3, %v1196_v14, %v1195_v12 }
0x10c8   :  { %v1199_v20 = vadd.f32 %v1197_v16, %v1194_v15  ;;  %v1200_v21 = vadd.f32 %v1198_v19, %v1193_v17  ;;  %v3079_v19 = vld [vmem:[%s3487_s2 + $0x10] sm:$0xff] }
0x10ca   :  { %v1201_v22 = vmul.f32 0.3333333, %v1199_v20  ;;  %v1202_v42 = vmul.f32 0.3333333, %v1200_v21  ;;  %v3085_v20 = vld [vmem:[%s3487_s2 + $0x8] sm:$0xff] }
0x10cc   :  { %1205 = vrot.lane.b32.xlu0 %v1201_v22, %s2602_s9  ;;  %1207 = vrot.lane.b32.xlu1 %v1202_v42, %s2602_s9 }
0x113e   :  { %v1206_v31 = vpop.permute.xlu0 %1205  ;;  %v1208_v55 = vpop.permute.xlu1 %1207 }
0x113f   :  { %v1211_v28 = vadd.f32 %v1206_v31, %v1181_v27  ;;  %v1212_v33 = vadd.f32 %v1208_v55, %v1182_v30  ;;  %v2236_v55 = vld [vmem:[%s3486_s1 + $0x60] sm:$0xf] }
0x1141   :  { %v1213_v29 = vpack.c.bf16 %v1212_v33, %v1211_v28  ;;  %v2363_v28 = vld [vmem:[%s3486_s1 + $0x64] sm:$0xf0]  ;;  %v2362_v33 = vld [vmem:[%s3486_s1 + $0x64] sm:$0xf] }
0x1143   :  { %1215 = vrot.lane.b32.xlu2 %v1213_v29, %s2601_s23  ;;  %v2237_v29 = vor.u32 %v2363_v28, %v2236_v55 }
0x1145   :  { %283 = vmatmul.bf16.gmra.mxu0 %v2237_v29 }
0x119d   :  { %v1216_v63 = vpop.permute.xlu2 %1215 }
0x119e   :  { %2335 = vmatmul.msk.bf16.vlgmr.msra.gmra.mxu3 %vm561_vm4, %v1216_v63 }
0x119f   :  { %1403 = vmatpush.bf16.msra.mxu3 %v3011_v44 }
0x11a3   :  { %1404 = vmatpush.bf16.msra.mxu3 %v3017_v46 }
0x1221   :  { %v1229_v37 = vpop.f32.mrf.mxu3 }
0x1222   :  { %v1234_v38 = vadd.f32 %v1229_v37, %v499_v36  ;;  %v2246_v37 = vld [vmem:[%s3486_s1 + $0x78] sm:$0xf0] }
0x1224   :  { %v1236_v39 = vsub.f32 0.0, %v1234_v38  ;;  %v2245_v38 = vor.u32 %v2365_v35, %v2244_v34 }
0x1226   :  { %v1238_v47 = vmul.f32 1.442695, %v1236_v39  ;;  %288 = vmatmul.bf16.gmra.mxu0 %v2245_v38 }
0x1228   :  { %2448 = vpow2.f32 %v1238_v47 }
0x1229   :  { %v1231_v50 = vpop.f32.mrf.mxu3 }
0x122a   :  { %v1235_v51 = vadd.f32 %v1231_v50, %v501_v48 }
0x122c   :  { %v1237_v52 = vsub.f32 0.0, %v1235_v51  ;;  %v2252_v51 = vld [vmem:[%s3486_s1 + $0x80] sm:$0xf] }
0x122e   :  { %v2449_v53 = vpop.eup %2448  ;;  %v1240_v54 = vmul.f32 1.442695, %v1237_v52  ;;  %v2367_v52 = vld [vmem:[%s3486_s1 + $0x84] sm:$0xf0] }
0x122f   :  { %v1242_v60 = vadd.f32 1.0, %v2449_v53  ;;  %v2366_v53 = vld [vmem:[%s3486_s1 + $0x84] sm:$0xf] }
0x1230   :  { %2450 = vpow2.f32 %v1240_v54  ;;  %v2253_v54 = vor.u32 %v2367_v52, %v2252_v51 }
0x1231   :  { %2452 = vrcp.f32 %v1242_v60 }
0x1236   :  { %v2451_v61 = vpop.eup %2450  ;;  %293 = vmatmul.bf16.gmra.mxu0 %v2253_v54 }
0x1237   :  { %v1243_v62 = vadd.f32 1.0, %v2451_v61  ;;  %v2453_v56 = vpop.eup %2452  ;;  %v2260_v61 = vld [vmem:[%s3486_s1 + $0x90] sm:$0xf] }
0x1238   :  { %v1246_v18 = vmul.f32 %v2453_v56, %v1186_v4  ;;  %v1296_v25 = vsub.f32 1.0, %v2453_v56  ;;  %v1294_v27 = vmul.f32 %v2453_v56, %v3025_v58  ;;  %v2238_v58 = vld [vmem:[%s3486_s1 + $0x68] sm:$0xf0]  ;;  %v2368_v56 = vld [vmem:[%s3486_s1 + $0x94] sm:$0xf] }
0x1239   :  { %2454 = vrcp.f32 %v1243_v62  ;;  %v2241_v63 = vor.u32 %v2362_v33, %v2238_v58  ;;  %v2369_v62 = vld [vmem:[%s3486_s1 + $0x94] sm:$0xf0] }
0x123a   :  { %v1250_v23 = vrot.slane %v1246_v18, 6  ;;  %v1254_v26 = vrot.slane %v1246_v18, 2  ;;  %v1248_v12 = vmul.f32 0.3333333, %v1246_v18  ;;  %v2261_v18 = vor.u32 %v2369_v62, %v2260_v61 }
0x123b   :  { %2288 = vmatmul.msk.bf16.gmra.mxu1 %vm208_vm0, %v2241_v63 }
0x123f   :  { %v3064_v0 = vpop.eup %2454 }
0x1240   :  { %v1247_v1 = vmul.f32 %v3064_v0, %v1188_v9  ;;  %v1297_v40 = vsub.f32 1.0, %v3064_v0  ;;  %v1295_v47 = vmul.f32 %v3064_v0, %v3030_v5  ;;  %v2254_v5 = vld [vmem:[%s3486_s1 + $0x88] sm:$0xf0]  ;;  %v2262_v0 = vld [vmem:[%s3486_s1 + $0x98] sm:$0xf0] }
0x1241   :  { %v2257_v60 = vor.u32 %v2366_v53, %v2254_v5 }
0x1242   :  { %v1251_v2 = vrot.slane %v1247_v1, 6  ;;  %v1255_v6 = vrot.slane %v1247_v1, 2  ;;  %v1249_v9 = vmul.f32 0.3333333, %v1247_v1  ;;  %v2265_v1 = vor.u32 %v2368_v56, %v2262_v0 }
0x1244   :  { %v1252_v7 = vsel %vm543_vm2, %v1250_v23, %v1251_v2  ;;  %v1253_v3 = vsel %vm543_vm2, %v1251_v2, %v1250_v23  ;;  %v1256_v32 = vsel %vm544_vm3, %v1254_v26, %v1255_v6  ;;  %v1257_v8 = vsel %vm544_vm3, %v1255_v6, %v1254_v26  ;;  %v2268_v23 = vld [vmem:[%s3486_s1 + $0xa0] sm:$0xf]  ;;  %v2371_v2 = vld [vmem:[%s3486_s1 + $0xa4] sm:$0xf0]  ;;  %v2370_v26 = vld [vmem:[%s3486_s1 + $0xa4] sm:$0xf] }
0x1245   :  { %v1258_v4 = vadd.f32 %v1256_v32, %v1253_v3  ;;  %v1259_v10 = vadd.f32 %v1257_v8, %v1252_v7  ;;  %v2270_v6 = vld [vmem:[%s3486_s1 + $0xa8] sm:$0xf0]  ;;  %v2269_v7 = vor.u32 %v2371_v2, %v2268_v23 }
0x1246   :  { %298 = vmatmul.bf16.gmra.mxu0 %v2261_v18  ;;  %v2273_v3 = vor.u32 %v2370_v26, %v2270_v6 }
0x1247   :  { %v1260_v13 = vmul.f32 0.3333333, %v1258_v4  ;;  %v1261_v14 = vmul.f32 0.3333333, %v1259_v10 }
0x1249   :  { %v1262_v15 = vadd.f32 %v1260_v13, %v1248_v12  ;;  %v1263_v16 = vadd.f32 %v1261_v14, %v1249_v9 }
0x124b   :  { %v1264_v17 = vpack.c.bf16 %v1263_v16, %v1262_v15 }
0x124d   :  { %2336 = vmatmul.msk.bf16.vlgmr.msrb.gmra.mxu3 %vm561_vm4, %v1264_v17 }
0x124e   :  { %1613 = vmatpush.bf16.msrb.mxu3 %v3079_v19 }
0x1252   :  { %1614 = vmatpush.bf16.msrb.mxu3 %v3085_v20 }
0x1256   :  { %303 = vmatmul.bf16.gmra.mxu0 %v2269_v7 }
0x12d0   :  { %v1277_v21 = vpop.f32.mrf.mxu3 }
0x12d1   :  { %1284 = vrot.lane.b32.xlu0 %v1277_v21, %s2600_s22 }
0x12d8   :  { %v1279_v22 = vpop.f32.mrf.mxu3 }
0x12d9   :  { %1286 = vrot.lane.b32.xlu1 %v1279_v22, %s2600_s22  ;;  %v2276_v22 = vld [vmem:[%s3486_s1 + $0xb0] sm:$0xf] }
0x1343   :  { %v1285_v42 = vpop.permute.xlu0 %1284 }
0x1344   :  { %v1290_v43 = vadd.f32 %v1285_v42, %v499_v36  ;;  %v2364_v36 = vld [vmem:[%s3486_s1 + $0x74] sm:$0xf]  ;;  %v2373_v42 = vld [vmem:[%s3486_s1 + $0xb4] sm:$0xf0] }
0x1345   :  { %v2249_v39 = vor.u32 %v2364_v36, %v2246_v37 }
0x1346   :  { %2456 = vtanh.f32 %v1290_v43  ;;  %v2372_v43 = vld [vmem:[%s3486_s1 + $0xb4] sm:$0xf] }
0x1347   :  { %2289 = vmatmul.msk.bf16.gmra.mxu1 %vm208_vm0, %v2249_v39 }
0x134b   :  { %v1287_v45 = vpop.permute.xlu1 %1286 }
0x134c   :  { %v2457_v57 = vpop.eup %2456  ;;  %v1291_v59 = vadd.f32 %v1287_v45, %v501_v48 }
0x134d   :  { %1300 = vrot.lane.b32.xlu2 %v2457_v57, %s2601_s23 }
0x134e   :  { %2458 = vtanh.f32 %v1291_v59  ;;  %v2278_v59 = vld [vmem:[%s3486_s1 + $0xb8] sm:$0xf0]  ;;  %s2603_s1 = smov 80  }
0x1354   :  { %v2459_v24 = vpop.eup %2458 }
0x1355   :  { %1302 = vrot.lane.b32.xlu0 %v2459_v24, %s2601_s23  ;;  %v284_v24 = vpop.f32.mrf.mxu0 }
0x1357   :  { %2290 = vmatmul.msk.bf16.gmra.mxu1 %vm208_vm0, %v2257_v60 }
0x135d   :  { %v286_v55 = vpop.f32.mrf.mxu0 }
0x1365   :  { %v289_v58 = vpop.f32.mrf.mxu0 }
0x1367   :  { %2291 = vmatmul.msk.bf16.gmra.mxu1 %vm208_vm0, %v2265_v1 }
0x136d   :  { %v291_v35 = vpop.f32.mrf.mxu0 }
0x1375   :  { %v294_v39 = vpop.f32.mrf.mxu0 }
0x1377   :  { %2292 = vmatmul.msk.bf16.gmra.mxu1 %vm208_vm0, %v2273_v3 }
0x13a7   :  { %v1301_v49 = vpop.permute.xlu2 %1300 }
0x13a8   :  { %v1306_v30 = vmul.f32 %v1301_v49, %v1296_v25  ;;  %v353_v25 = vpop.f32.mrf.mxu1  ;;  %v2277_v49 = vor.u32 %v2373_v42, %v2276_v22 }
0x13aa   :  { %v3093_v31 = vadd.f32 %v1306_v30, %v1294_v27  ;;  %v2281_v27 = vor.u32 %v2372_v43, %v2278_v59  ;;  %308 = vmatmul.bf16.gmra.mxu0 %v2277_v49  ;;  %v354_v30 = vadd.f32 %v353_v25, %v284_v24 }
0x13ac   :  { %1314 = vrot.lane.b32.xlu1 %v3093_v31, %s2601_s23  ;;  %2293 = vmatmul.msk.bf16.gmra.mxu1 %vm208_vm0, %v2281_v27  ;;  %v1310_v18 = vmul.f32 0.3333333, %v3093_v31 }
0x13b0   :  { %v355_v28 = vpop.f32.mrf.mxu1 }
0x13b1   :  { %v356_v33 = vadd.f32 %v355_v28, %v286_v55 }
0x13b3   :  { %v391_v29 = vpack.c.bf16 %v356_v33, %v354_v30 }
0x13b5   :  { %2304 = vmatmul.msk.bf16.gmra.mxu2 %vm427_vm1, %v391_v29 }
0x13c4   :  { %v358_v63 = vpop.f32.mrf.mxu1 }
0x13c5   :  { %v359_v34 = vadd.f32 %v358_v63, %v289_v58  ;;  %v409_v58 = vld [vmem:[#allocation2 + $0x60] sm:$0xff] }
0x13c7   :  { %v1303_v41 = vpop.permute.xlu0 %1302 }
0x13c8   :  { %v1307_v48 = vmul.f32 %v1303_v41, %v1297_v40 }
0x13ca   :  { %v3126_v50 = vadd.f32 %v1307_v48, %v1295_v47  ;;  %v296_v47 = vpop.f32.mrf.mxu0 }
0x13cc   :  { %1316 = vrot.lane.b32.xlu2 %v3126_v50, %s2601_s23  ;;  %v360_v36 = vpop.f32.mrf.mxu1  ;;  %v1311_v0 = vmul.f32 0.3333333, %v3126_v50 }
0x13cd   :  { %v361_v37 = vadd.f32 %v360_v36, %v291_v35 }
0x13cf   :  { %v392_v38 = vpack.c.bf16 %v361_v37, %v359_v34  ;;  %v410_v37 = vld [vmem:[#allocation2 + $0x68] sm:$0xff] }
0x13d1   :  { %2305 = vmatmul.msk.bf16.gmra.mxu2 %vm427_vm1, %v392_v38 }
0x13d2   :  { %v299_v53 = vpop.f32.mrf.mxu0 }
0x13d4   :  { %v363_v40 = vpop.f32.mrf.mxu1 }
0x13d5   :  { %v364_v41 = vadd.f32 %v363_v40, %v294_v39 }
0x13da   :  { %v301_v60 = vpop.f32.mrf.mxu0 }
0x13dc   :  { %v365_v48 = vpop.f32.mrf.mxu1 }
0x13dd   :  { %v366_v51 = vadd.f32 %v365_v48, %v296_v47 }
0x13df   :  { %v393_v52 = vpack.c.bf16 %v366_v51, %v364_v41 }
0x13e1   :  { %2306 = vmatmul.msk.bf16.gmra.mxu2 %vm427_vm1, %v393_v52 }
0x13e2   :  { %v304_v7 = vpop.f32.mrf.mxu0 }
0x13e4   :  { %v368_v54 = vpop.f32.mrf.mxu1 }
0x13e5   :  { %v369_v5 = vadd.f32 %v368_v54, %v299_v53 }
0x13ec   :  { %v370_v61 = vpop.f32.mrf.mxu1 }
0x13ed   :  { %v371_v62 = vadd.f32 %v370_v61, %v301_v60 }
0x13ef   :  { %v394_v56 = vpack.c.bf16 %v371_v62, %v369_v5 }
0x13f1   :  { %2307 = vmatmul.msk.bf16.gmra.mxu2 %vm427_vm1, %v394_v56 }
0x13f4   :  { %v373_v3 = vpop.f32.mrf.mxu1 }
0x141e   :  { %v3169_v32 = vpop.permute.xlu1 %1314 }
0x141f   :  { %v1320_v4 = vrot.slane %v3169_v32, 6  ;;  %v1324_v10 = vrot.slane %v3169_v32, 2 }
0x1426   :  { %v3171_v8 = vpop.permute.xlu2 %1316 }
0x1427   :  { %v1321_v12 = vrot.slane %v3171_v8, 6  ;;  %v1325_v9 = vrot.slane %v3171_v8, 2 }
0x1429   :  { %v1323_v13 = vsel %vm543_vm2, %v1321_v12, %v1320_v4  ;;  %v1326_v14 = vsel %vm544_vm3, %v1324_v10, %v1325_v9  ;;  %v1322_v15 = vsel %vm543_vm2, %v1320_v4, %v1321_v12  ;;  %v1327_v16 = vsel %vm544_vm3, %v1325_v9, %v1324_v10  ;;  %v306_v10 = vpop.f32.mrf.mxu0  ;;  %v375_v12 = vpop.f32.mrf.mxu1 }
0x142a   :  { %v1328_v17 = vadd.f32 %v1326_v14, %v1323_v13  ;;  %v1329_v21 = vadd.f32 %v1327_v16, %v1322_v15  ;;  %v374_v4 = vadd.f32 %v373_v3, %v304_v7  ;;  %v376_v9 = vadd.f32 %v375_v12, %v306_v10 }
0x142c   :  { %v1330_v45 = vmul.f32 0.3333333, %v1328_v17  ;;  %v1331_v57 = vmul.f32 0.3333333, %v1329_v21  ;;  %v395_v13 = vpack.c.bf16 %v376_v9, %v374_v4 }
0x142e   :  { %1334 = vrot.lane.b32.xlu0 %v1330_v45, %s2602_s9  ;;  %1336 = vrot.lane.b32.xlu1 %v1331_v57, %s2602_s9 }
0x142f   :  { %2308 = vmatmul.msk.bf16.gmra.mxu2 %vm427_vm1, %v395_v13 }
0x1431   :  { %v309_v14 = vpop.f32.mrf.mxu0  ;;  %v378_v15 = vpop.f32.mrf.mxu1 }
0x1432   :  { %v379_v16 = vadd.f32 %v378_v15, %v309_v14 }
0x1438   :  { %v503_v45 = vpop.f32.mrf.mxu2 }
0x1439   :  { %v311_v17 = vpop.f32.mrf.mxu0  ;;  %v380_v21 = vpop.f32.mrf.mxu1  ;;  %v504_v63 = vadd.f32 %v503_v45, %v409_v58 }
0x143a   :  { %v381_v22 = vadd.f32 %v380_v21, %v311_v17 }
0x143c   :  { %v396_v42 = vpack.c.bf16 %v381_v22, %v379_v16 }
0x143f   :  { %2309 = vmatmul.msk.bf16.gmra.mxu2 %vm427_vm1, %v396_v42 }
0x1440   :  { %v505_v57 = vpop.f32.mrf.mxu2 }
0x1441   :  { %v506_v39 = vadd.f32 %v505_v57, %v410_v37 }
0x1454   :  { %v3212_v59 = vpop.f32.mrf.mxu2 }
0x145c   :  { %v3214_v24 = vpop.f32.mrf.mxu2 }
0x1464   :  { %v3216_v25 = vpop.f32.mrf.mxu2 }
0x146c   :  { %v3218_v49 = vpop.f32.mrf.mxu2 }
0x1474   :  { %v3220_v27 = vpop.f32.mrf.mxu2 }
0x147c   :  { %v3222_v30 = vpop.f32.mrf.mxu2 }
0x14a0   :  { %v1335_v1 = vpop.permute.xlu0 %1334  ;;  %v1337_v23 = vpop.permute.xlu1 %1336 }
0x14a1   :  { %v1340_v2 = vadd.f32 %v1335_v1, %v1310_v18  ;;  %v1341_v26 = vadd.f32 %v1337_v23, %v1311_v0 }
0x14a3   :  { %v1342_v6 = vpack.c.bf16 %v1341_v26, %v1340_v2 }
0x14a5   :  { %1344 = vrot.lane.b32.xlu2 %v1342_v6, %s2601_s23 }
0x14b2   :  { %v3224_v55 = vpop.f32.mrf.mxu2 }
0x14ba   :  { %v3226_v28 = vpop.f32.mrf.mxu2 }
0x14c2   :  { %v3228_v33 = vpop.f32.mrf.mxu2 }
0x14ca   :  { %v3230_v29 = vpop.f32.mrf.mxu2 }
0x14ff   :  { %v1345_v43 = vpop.permute.xlu2 %1344 }
0x1500   :  { %2337 = vmatmul.msk.bf16.vlgmr.msrb.gmra.mxu2 %vm561_vm4, %v1345_v43 }
0x1501   :  { %1790 = vmatpush.bf16.msrb.mxu2 %v3011_v44 }
0x1505   :  { %1791 = vmatpush.bf16.msrb.mxu2 %v3017_v46 }
0x1583   :  { %v1358_v34 = vpop.f32.mrf.mxu2 }
0x1584   :  { %v1363_v35 = vadd.f32 %v1358_v34, %v504_v63 }
0x1586   :  { %v1365_v36 = vsub.f32 0.0, %v1363_v35 }
0x1588   :  { %v1367_v38 = vmul.f32 1.442695, %v1365_v36 }
0x158a   :  { %2460 = vpow2.f32 %v1367_v38 }
0x158b   :  { %v1360_v40 = vpop.f32.mrf.mxu2 }
0x158c   :  { %v1364_v41 = vadd.f32 %v1360_v40, %v506_v39 }
0x158e   :  { %v1366_v47 = vsub.f32 0.0, %v1364_v41 }
0x1590   :  { %v2461_v48 = vpop.eup %2460  ;;  %v1369_v51 = vmul.f32 1.442695, %v1366_v47 }
0x1591   :  { %v1371_v52 = vadd.f32 1.0, %v2461_v48 }
0x1592   :  { %2462 = vpow2.f32 %v1369_v51 }
0x1593   :  { %2464 = vrcp.f32 %v1371_v52 }
0x1598   :  { %v2463_v53 = vpop.eup %2462 }
0x1599   :  { %v1372_v54 = vadd.f32 1.0, %v2463_v53  ;;  %v2465_v5 = vpop.eup %2464 }
0x159a   :  { %v1375_v60 = vmul.f32 %v2465_v5, %v3169_v32  ;;  %v1425_v45 = vsub.f32 1.0, %v2465_v5  ;;  %v1423_v58 = vmul.f32 %v2465_v5, %v3093_v31 }
0x159b   :  { %2466 = vrcp.f32 %v1372_v54 }
0x159c   :  { %v1379_v56 = vrot.slane %v1375_v60, 6  ;;  %v1383_v18 = vrot.slane %v1375_v60, 2  ;;  %v1377_v3 = vmul.f32 0.3333333, %v1375_v60 }
0x15a1   :  { %v2467_v61 = vpop.eup %2466 }
0x15a2   :  { %v1376_v62 = vmul.f32 %v2467_v61, %v3171_v8  ;;  %v1424_v37 = vmul.f32 %v2467_v61, %v3126_v50 }
0x15a4   :  { %v1380_v0 = vrot.slane %v1376_v62, 6  ;;  %v1384_v1 = vrot.slane %v1376_v62, 2  ;;  %v1378_v8 = vmul.f32 0.3333333, %v1376_v62 }
0x15a6   :  { %v1381_v23 = vsel %vm543_vm2, %v1379_v56, %v1380_v0  ;;  %v1382_v2 = vsel %vm543_vm2, %v1380_v0, %v1379_v56  ;;  %v1385_v26 = vsel %vm544_vm3, %v1383_v18, %v1384_v1  ;;  %v1386_v6 = vsel %vm544_vm3, %v1384_v1, %v1383_v18 }
0x15a7   :  { %v1387_v32 = vadd.f32 %v1385_v26, %v1382_v2  ;;  %v1388_v7 = vadd.f32 %v1386_v6, %v1381_v23 }
0x15a9   :  { %v1389_v4 = vmul.f32 0.3333333, %v1387_v32  ;;  %v1390_v10 = vmul.f32 0.3333333, %v1388_v7  ;;  %v411_v32 = vld [vmem:[#allocation2 + $0x70] sm:$0xff] }
0x15aa   :  { %v509_v7 = vadd.f32 %v3212_v59, %v411_v32 }
0x15ab   :  { %v1391_v12 = vadd.f32 %v1389_v4, %v1377_v3  ;;  %v1392_v9 = vadd.f32 %v1390_v10, %v1378_v8  ;;  %v412_v10 = vld [vmem:[#allocation2 + $0x78] sm:$0xff] }
0x15ad   :  { %v1393_v13 = vpack.c.bf16 %v1392_v9, %v1391_v12  ;;  %v511_v9 = vadd.f32 %v3214_v24, %v412_v10 }
0x15af   :  { %2338 = vmatmul.msk.bf16.vlgmr.msra.gmra.mxu3 %vm561_vm4, %v1393_v13 }
0x15b0   :  { %1871 = vmatpush.bf16.msra.mxu3 %v3079_v19 }
0x15b4   :  { %1872 = vmatpush.bf16.msra.mxu3 %v3085_v20 }
0x1632   :  { %v1406_v14 = vpop.f32.mrf.mxu3 }
0x1633   :  { %1413 = vrot.lane.b32.xlu0 %v1406_v14, %s2600_s22 }
0x163a   :  { %v1408_v15 = vpop.f32.mrf.mxu3 }
0x163b   :  { %1415 = vrot.lane.b32.xlu1 %v1408_v15, %s2600_s22 }
0x16a5   :  { %v1414_v16 = vpop.permute.xlu0 %1413 }
0x16a6   :  { %v1419_v17 = vadd.f32 %v1414_v16, %v504_v63  ;;  %v1426_v63 = vsub.f32 1.0, %v2467_v61 }
0x16a8   :  { %2468 = vtanh.f32 %v1419_v17 }
0x16ad   :  { %v1416_v21 = vpop.permute.xlu1 %1415 }
0x16ae   :  { %v2469_v22 = vpop.eup %2468  ;;  %v1420_v42 = vadd.f32 %v1416_v21, %v506_v39 }
0x16af   :  { %1429 = vrot.lane.b32.xlu2 %v2469_v22, %s2601_s23 }
0x16b0   :  { %2470 = vtanh.f32 %v1420_v42 }
0x16b6   :  { %v2471_v43 = vpop.eup %2470 }
0x16b7   :  { %1431 = vrot.lane.b32.xlu0 %v2471_v43, %s2601_s23 }
0x1709   :  { %v1430_v57 = vpop.permute.xlu2 %1429 }
0x170a   :  { %v1435_v34 = vmul.f32 %v1430_v57, %v1425_v45 }
0x170c   :  { %v3250_v35 = vadd.f32 %v1435_v34, %v1423_v58 }
0x170e   :  { %1443 = vrot.lane.b32.xlu1 %v3250_v35, %s2601_s23  ;;  %v1439_v56 = vmul.f32 0.3333333, %v3250_v35 }
0x1729   :  { %v1432_v36 = vpop.permute.xlu0 %1431 }
0x172a   :  { %v1436_v38 = vmul.f32 %v1432_v36, %v1426_v63 }
0x172c   :  { %v3255_v39 = vadd.f32 %v1436_v38, %v1424_v37 }
0x172e   :  { %1445 = vrot.lane.b32.xlu2 %v3255_v39, %s2601_s23  ;;  %v1440_v18 = vmul.f32 0.3333333, %v3255_v39 }
0x1780   :  { %v1444_v40 = vpop.permute.xlu1 %1443 }
0x1781   :  { %v1449_v47 = vrot.slane %v1444_v40, 6  ;;  %v1453_v31 = vrot.slane %v1444_v40, 2 }
0x1788   :  { %v1446_v41 = vpop.permute.xlu2 %1445 }
0x1789   :  { %v1450_v48 = vrot.slane %v1446_v41, 6  ;;  %v1454_v51 = vrot.slane %v1446_v41, 2 }
0x178b   :  { %v1452_v52 = vsel %vm543_vm2, %v1450_v48, %v1449_v47  ;;  %v1455_v53 = vsel %vm544_vm3, %v1453_v31, %v1454_v51  ;;  %v1451_v50 = vsel %vm543_vm2, %v1449_v47, %v1450_v48  ;;  %v1456_v54 = vsel %vm544_vm3, %v1454_v51, %v1453_v31 }
0x178c   :  { %v1457_v5 = vadd.f32 %v1455_v53, %v1452_v52  ;;  %v1458_v60 = vadd.f32 %v1456_v54, %v1451_v50 }
0x178e   :  { %v1459_v61 = vmul.f32 0.3333333, %v1457_v5  ;;  %v1460_v62 = vmul.f32 0.3333333, %v1458_v60 }
0x1790   :  { %1463 = vrot.lane.b32.xlu0 %v1459_v61, %s2602_s9  ;;  %1465 = vrot.lane.b32.xlu1 %v1460_v62, %s2602_s9 }
0x1802   :  { %v1464_v0 = vpop.permute.xlu0 %1463  ;;  %v1466_v1 = vpop.permute.xlu1 %1465 }
0x1803   :  { %v1469_v23 = vadd.f32 %v1464_v0, %v1439_v56  ;;  %v1470_v2 = vadd.f32 %v1466_v1, %v1440_v18 }
0x1805   :  { %v1471_v26 = vpack.c.bf16 %v1470_v2, %v1469_v23 }
0x1807   :  { %1473 = vrot.lane.b32.xlu2 %v1471_v26, %s2601_s23 }
0x1861   :  { %v1474_v6 = vpop.permute.xlu2 %1473 }
0x1862   :  { %2339 = vmatmul.msk.bf16.vlgmr.msrb.gmra.mxu1 %vm561_vm4, %v1474_v6 }
0x1863   :  { %2000 = vmatpush.bf16.msrb.mxu1 %v3079_v19 }
0x1867   :  { %2001 = vmatpush.bf16.msrb.mxu1 %v3085_v20 }
0x18df   :  { %v1487_v3 = vpop.f32.mrf.mxu1 }
0x18e0   :  { %v1492_v8 = vadd.f32 %v1487_v3, %v509_v7 }
0x18e2   :  { %v1494_v4 = vsub.f32 0.0, %v1492_v8 }
0x18e4   :  { %v1496_v12 = vmul.f32 1.442695, %v1494_v4 }
0x18e6   :  { %2472 = vpow2.f32 %v1496_v12 }
0x18e7   :  { %v1489_v13 = vpop.f32.mrf.mxu1 }
0x18e8   :  { %v1493_v14 = vadd.f32 %v1489_v13, %v511_v9 }
0x18ea   :  { %v1495_v15 = vsub.f32 0.0, %v1493_v14 }
0x18ec   :  { %v2473_v16 = vpop.eup %2472  ;;  %v1498_v17 = vmul.f32 1.442695, %v1495_v15 }
0x18ed   :  { %v1500_v19 = vadd.f32 1.0, %v2473_v16 }
0x18ee   :  { %2474 = vpow2.f32 %v1498_v17 }
0x18ef   :  { %2476 = vrcp.f32 %v1500_v19 }
0x18f4   :  { %v2475_v20 = vpop.eup %2474 }
0x18f5   :  { %v1501_v21 = vadd.f32 1.0, %v2475_v20  ;;  %v2477_v59 = vpop.eup %2476 }
0x18f6   :  { %v1504_v22 = vmul.f32 %v2477_v59, %v1444_v40  ;;  %v1552_v0 = vmul.f32 %v2477_v59, %v3250_v35 }
0x18f7   :  { %2478 = vrcp.f32 %v1501_v21 }
0x18f8   :  { %v1508_v45 = vrot.slane %v1504_v22, 6  ;;  %v1512_v57 = vrot.slane %v1504_v22, 2  ;;  %v1506_v47 = vmul.f32 0.3333333, %v1504_v22 }
0x18fd   :  { %v2479_v42 = vpop.eup %2478 }
0x18fe   :  { %v1505_v43 = vmul.f32 %v2479_v42, %v1446_v41  ;;  %v1555_v2 = vsub.f32 1.0, %v2479_v42  ;;  %v1553_v6 = vmul.f32 %v2479_v42, %v3255_v39 }
0x1900   :  { %v1509_v58 = vrot.slane %v1505_v43, 6  ;;  %v1513_v24 = vrot.slane %v1505_v43, 2  ;;  %v1507_v41 = vmul.f32 0.3333333, %v1505_v43 }
0x1902   :  { %v1510_v34 = vsel %vm543_vm2, %v1508_v45, %v1509_v58  ;;  %v1511_v63 = vsel %vm543_vm2, %v1509_v58, %v1508_v45  ;;  %v1514_v36 = vsel %vm544_vm3, %v1512_v57, %v1513_v24  ;;  %v1515_v37 = vsel %vm544_vm3, %v1513_v24, %v1512_v57  ;;  %v413_v58 = vld [vmem:[#allocation2 + $0x80] sm:$0xff] }
0x1903   :  { %v1516_v38 = vadd.f32 %v1514_v36, %v1511_v63  ;;  %v1517_v40 = vadd.f32 %v1515_v37, %v1510_v34  ;;  %v514_v24 = vadd.f32 %v3216_v25, %v413_v58  ;;  %v414_v37 = vld [vmem:[#allocation2 + $0x88] sm:$0xff] }
0x1905   :  { %v1518_v31 = vmul.f32 0.3333333, %v1516_v38  ;;  %v1519_v48 = vmul.f32 0.3333333, %v1517_v40  ;;  %v516_v40 = vadd.f32 %v3218_v49, %v414_v37 }
0x1907   :  { %v1520_v51 = vadd.f32 %v1518_v31, %v1506_v47  ;;  %v1521_v52 = vadd.f32 %v1519_v48, %v1507_v41 }
0x1909   :  { %v1522_v53 = vpack.c.bf16 %v1521_v52, %v1520_v51 }
0x190b   :  { %2340 = vmatmul.msk.bf16.vlgmr.msra.gmra.mxu2 %vm561_vm4, %v1522_v53 }
0x190c   :  { %2048 = vmatpush.bf16.msra.mxu2 %v3011_v44  ;;  %v1554_v44 = vsub.f32 1.0, %v2477_v59 }
0x1910   :  { %2049 = vmatpush.bf16.msra.mxu2 %v3017_v46 }
0x198e   :  { %v1535_v50 = vpop.f32.mrf.mxu2 }
0x198f   :  { %1542 = vrot.lane.b32.xlu0 %v1535_v50, %s2600_s22 }
0x1996   :  { %v1537_v54 = vpop.f32.mrf.mxu2 }
0x1997   :  { %1544 = vrot.lane.b32.xlu1 %v1537_v54, %s2600_s22 }
0x1a01   :  { %v1543_v5 = vpop.permute.xlu0 %1542 }
0x1a02   :  { %v1548_v60 = vadd.f32 %v1543_v5, %v509_v7 }
0x1a04   :  { %2480 = vtanh.f32 %v1548_v60 }
0x1a09   :  { %v1545_v61 = vpop.permute.xlu1 %1544 }
0x1a0a   :  { %v2481_v62 = vpop.eup %2480  ;;  %v1549_v56 = vadd.f32 %v1545_v61, %v511_v9 }
0x1a0b   :  { %1558 = vrot.lane.b32.xlu2 %v2481_v62, %s2601_s23 }
0x1a0c   :  { %2482 = vtanh.f32 %v1549_v56 }
0x1a12   :  { %v2483_v18 = vpop.eup %2482 }
0x1a13   :  { %1560 = vrot.lane.b32.xlu0 %v2483_v18, %s2601_s23 }
0x1a65   :  { %v1559_v46 = vpop.permute.xlu2 %1558 }
0x1a66   :  { %v1564_v1 = vmul.f32 %v1559_v46, %v1554_v44 }
0x1a68   :  { %v3293_v23 = vadd.f32 %v1564_v1, %v1552_v0 }
0x1a6a   :  { %1572 = vrot.lane.b32.xlu1 %v3293_v23, %s2601_s23  ;;  %v1568_v20 = vmul.f32 0.3333333, %v3293_v23 }
0x1a85   :  { %v1561_v26 = vpop.permute.xlu0 %1560 }
0x1a86   :  { %v1565_v32 = vmul.f32 %v1561_v26, %v1555_v2 }
0x1a88   :  { %v3298_v7 = vadd.f32 %v1565_v32, %v1553_v6 }
0x1a8a   :  { %1574 = vrot.lane.b32.xlu2 %v3298_v7, %s2601_s23  ;;  %v1569_v21 = vmul.f32 0.3333333, %v3298_v7 }
0x1adc   :  { %v1573_v3 = vpop.permute.xlu1 %1572 }
0x1add   :  { %v1578_v4 = vrot.slane %v1573_v3, 6  ;;  %v1582_v35 = vrot.slane %v1573_v3, 2 }
0x1ae4   :  { %v1575_v8 = vpop.permute.xlu2 %1574 }
0x1ae5   :  { %v1579_v10 = vrot.slane %v1575_v8, 6  ;;  %v1583_v12 = vrot.slane %v1575_v8, 2 }
0x1ae7   :  { %v1581_v9 = vsel %vm543_vm2, %v1579_v10, %v1578_v4  ;;  %v1584_v13 = vsel %vm544_vm3, %v1582_v35, %v1583_v12  ;;  %v1580_v39 = vsel %vm543_vm2, %v1578_v4, %v1579_v10  ;;  %v1585_v14 = vsel %vm544_vm3, %v1583_v12, %v1582_v35 }
0x1ae8   :  { %v1586_v15 = vadd.f32 %v1584_v13, %v1581_v9  ;;  %v1587_v16 = vadd.f32 %v1585_v14, %v1580_v39 }
0x1aea   :  { %v1588_v17 = vmul.f32 0.3333333, %v1586_v15  ;;  %v1589_v19 = vmul.f32 0.3333333, %v1587_v16 }
0x1aec   :  { %1592 = vrot.lane.b32.xlu0 %v1588_v17, %s2602_s9  ;;  %1594 = vrot.lane.b32.xlu1 %v1589_v19, %s2602_s9 }
0x1b5e   :  { %v1593_v59 = vpop.permute.xlu0 %1592  ;;  %v1595_v22 = vpop.permute.xlu1 %1594 }
0x1b5f   :  { %v1598_v42 = vadd.f32 %v1593_v59, %v1568_v20  ;;  %v1599_v43 = vadd.f32 %v1595_v22, %v1569_v21 }
0x1b61   :  { %v1600_v45 = vpack.c.bf16 %v1599_v43, %v1598_v42 }
0x1b63   :  { %1602 = vrot.lane.b32.xlu2 %v1600_v45, %s2601_s23 }
0x1bbd   :  { %v1603_v57 = vpop.permute.xlu2 %1602 }
0x1bbe   :  { %2341 = vmatmul.msk.bf16.vlgmr.msrb.gmra.mxu3 %vm561_vm4, %v1603_v57 }
0x1c41   :  { %v1616_v34 = vpop.f32.mrf.mxu3 }
0x1c42   :  { %v1621_v63 = vadd.f32 %v1616_v34, %v514_v24 }
0x1c44   :  { %v1623_v36 = vsub.f32 0.0, %v1621_v63 }
0x1c46   :  { %v1625_v38 = vmul.f32 1.442695, %v1623_v36 }
0x1c48   :  { %2484 = vpow2.f32 %v1625_v38 }
0x1c49   :  { %v1618_v47 = vpop.f32.mrf.mxu3 }
0x1c4a   :  { %v1622_v41 = vadd.f32 %v1618_v47, %v516_v40 }
0x1c4c   :  { %v1624_v31 = vsub.f32 0.0, %v1622_v41 }
0x1c4e   :  { %v2485_v48 = vpop.eup %2484  ;;  %v1627_v51 = vmul.f32 1.442695, %v1624_v31 }
0x1c4f   :  { %v1629_v52 = vadd.f32 1.0, %v2485_v48 }
0x1c50   :  { %2486 = vpow2.f32 %v1627_v51 }
0x1c51   :  { %2488 = vrcp.f32 %v1629_v52 }
0x1c56   :  { %v2487_v53 = vpop.eup %2486 }
0x1c57   :  { %v1630_v50 = vadd.f32 1.0, %v2487_v53  ;;  %v2489_v25 = vpop.eup %2488 }
0x1c58   :  { %v1633_v54 = vmul.f32 %v2489_v25, %v1573_v3  ;;  %v1683_v17 = vsub.f32 1.0, %v2489_v25  ;;  %v1681_v20 = vmul.f32 %v2489_v25, %v3293_v23 }
0x1c59   :  { %2490 = vrcp.f32 %v1630_v50 }
0x1c5a   :  { %v1637_v61 = vrot.slane %v1633_v54, 6  ;;  %v1641_v56 = vrot.slane %v1633_v54, 2  ;;  %v1635_v26 = vmul.f32 0.3333333, %v1633_v54 }
0x1c5f   :  { %v2491_v5 = vpop.eup %2490 }
0x1c60   :  { %v1634_v60 = vmul.f32 %v2491_v5, %v1575_v8  ;;  %v1684_v22 = vsub.f32 1.0, %v2491_v5  ;;  %v1682_v43 = vmul.f32 %v2491_v5, %v3298_v7 }
0x1c62   :  { %v1638_v62 = vrot.slane %v1634_v60, 6  ;;  %v1642_v49 = vrot.slane %v1634_v60, 2  ;;  %v1636_v6 = vmul.f32 0.3333333, %v1634_v60 }
0x1c64   :  { %v1639_v18 = vsel %vm543_vm2, %v1637_v61, %v1638_v62  ;;  %v1640_v44 = vsel %vm543_vm2, %v1638_v62, %v1637_v61  ;;  %v1643_v46 = vsel %vm544_vm3, %v1641_v56, %v1642_v49  ;;  %v1644_v0 = vsel %vm544_vm3, %v1642_v49, %v1641_v56  ;;  %v415_v61 = vld [vmem:[#allocation2 + $0x90] sm:$0xff] }
0x1c65   :  { %v1645_v1 = vadd.f32 %v1643_v46, %v1640_v44  ;;  %v1646_v2 = vadd.f32 %v1644_v0, %v1639_v18  ;;  %v519_v62 = vadd.f32 %v3220_v27, %v415_v61  ;;  %v416_v44 = vld [vmem:[#allocation2 + $0x98] sm:$0xff] }
0x1c66   :  { %v521_v0 = vadd.f32 %v3222_v30, %v416_v44 }
0x1c67   :  { %v1647_v32 = vmul.f32 0.3333333, %v1645_v1  ;;  %v1648_v3 = vmul.f32 0.3333333, %v1646_v2 }
0x1c69   :  { %v1649_v8 = vadd.f32 %v1647_v32, %v1635_v26  ;;  %v1650_v4 = vadd.f32 %v1648_v3, %v1636_v6 }
0x1c6b   :  { %v1651_v35 = vpack.c.bf16 %v1650_v4, %v1649_v8 }
0x1c6d   :  { %2342 = vmatmul.msk.bf16.vlgmr.msrb.gmra.mxu0 %vm561_vm4, %v1651_v35 }
0x1cea   :  { %v1664_v10 = vpop.f32.mrf.mxu0 }
0x1ceb   :  { %1671 = vrot.lane.b32.xlu0 %v1664_v10, %s2600_s22 }
0x1cf2   :  { %v1666_v12 = vpop.f32.mrf.mxu0 }
0x1cf3   :  { %1673 = vrot.lane.b32.xlu1 %v1666_v12, %s2600_s22 }
0x1d5d   :  { %v1672_v9 = vpop.permute.xlu0 %1671 }
0x1d5e   :  { %v1677_v13 = vadd.f32 %v1672_v9, %v514_v24 }
0x1d60   :  { %2492 = vtanh.f32 %v1677_v13 }
0x1d65   :  { %v1674_v39 = vpop.permute.xlu1 %1673 }
0x1d66   :  { %v2493_v14 = vpop.eup %2492  ;;  %v1678_v15 = vadd.f32 %v1674_v39, %v516_v40 }
0x1d67   :  { %1687 = vrot.lane.b32.xlu2 %v2493_v14, %s2601_s23 }
0x1d68   :  { %2494 = vtanh.f32 %v1678_v15 }
0x1d6e   :  { %v2495_v16 = vpop.eup %2494 }
0x1d6f   :  { %1689 = vrot.lane.b32.xlu0 %v2495_v16, %s2601_s23 }
0x1dc1   :  { %v1688_v19 = vpop.permute.xlu2 %1687 }
0x1dc2   :  { %v1693_v21 = vmul.f32 %v1688_v19, %v1683_v17 }
0x1dc4   :  { %v3332_v59 = vadd.f32 %v1693_v21, %v1681_v20 }
0x1dc6   :  { %1701 = vrot.lane.b32.xlu1 %v3332_v59, %s2601_s23  ;;  %v1697_v51 = vmul.f32 0.3333333, %v3332_v59 }
0x1de1   :  { %v1690_v42 = vpop.permute.xlu0 %1689 }
0x1de2   :  { %v1694_v45 = vmul.f32 %v1690_v42, %v1684_v22 }
0x1de4   :  { %v3337_v57 = vadd.f32 %v1694_v45, %v1682_v43 }
0x1de6   :  { %1703 = vrot.lane.b32.xlu2 %v3337_v57, %s2601_s23  ;;  %v1698_v52 = vmul.f32 0.3333333, %v3337_v57 }
0x1e38   :  { %v1702_v58 = vpop.permute.xlu1 %1701 }
0x1e39   :  { %v1707_v34 = vrot.slane %v1702_v58, 6  ;;  %v1711_v23 = vrot.slane %v1702_v58, 2 }
0x1e40   :  { %v1704_v24 = vpop.permute.xlu2 %1703 }
0x1e41   :  { %v1708_v63 = vrot.slane %v1704_v24, 6  ;;  %v1712_v36 = vrot.slane %v1704_v24, 2 }
0x1e43   :  { %v1710_v37 = vsel %vm543_vm2, %v1708_v63, %v1707_v34  ;;  %v1713_v38 = vsel %vm544_vm3, %v1711_v23, %v1712_v36  ;;  %v1709_v7 = vsel %vm543_vm2, %v1707_v34, %v1708_v63  ;;  %v1714_v40 = vsel %vm544_vm3, %v1712_v36, %v1711_v23 }
0x1e44   :  { %v1715_v47 = vadd.f32 %v1713_v38, %v1710_v37  ;;  %v1716_v41 = vadd.f32 %v1714_v40, %v1709_v7 }
0x1e46   :  { %v1717_v31 = vmul.f32 0.3333333, %v1715_v47  ;;  %v1718_v48 = vmul.f32 0.3333333, %v1716_v41 }
0x1e48   :  { %1721 = vrot.lane.b32.xlu0 %v1717_v31, %s2602_s9  ;;  %1723 = vrot.lane.b32.xlu1 %v1718_v48, %s2602_s9 }
0x1eba   :  { %v1722_v53 = vpop.permute.xlu0 %1721  ;;  %v1724_v50 = vpop.permute.xlu1 %1723 }
0x1ebb   :  { %v1727_v25 = vadd.f32 %v1722_v53, %v1697_v51  ;;  %v1728_v54 = vadd.f32 %v1724_v50, %v1698_v52 }
0x1ebd   :  { %v1729_v5 = vpack.c.bf16 %v1728_v54, %v1727_v25 }
0x1ebf   :  { %1731 = vrot.lane.b32.xlu2 %v1729_v5, %s2601_s23 }
0x1f19   :  { %v1732_v60 = vpop.permute.xlu2 %1731 }
0x1f1a   :  { %2343 = vmatmul.msk.bf16.vlgmr.msra.gmra.mxu1 %vm561_vm4, %v1732_v60 }
0x1f97   :  { %v1745_v56 = vpop.f32.mrf.mxu1 }
0x1f98   :  { %v1750_v49 = vadd.f32 %v1745_v56, %v519_v62 }
0x1f9a   :  { %v1752_v18 = vsub.f32 0.0, %v1750_v49 }
0x1f9c   :  { %v1754_v46 = vmul.f32 1.442695, %v1752_v18 }
0x1f9e   :  { %2496 = vpow2.f32 %v1754_v46 }
0x1f9f   :  { %v1747_v1 = vpop.f32.mrf.mxu1 }
0x1fa0   :  { %v1751_v2 = vadd.f32 %v1747_v1, %v521_v0 }
0x1fa2   :  { %v1753_v26 = vsub.f32 0.0, %v1751_v2 }
0x1fa4   :  { %v2497_v6 = vpop.eup %2496  ;;  %v1756_v32 = vmul.f32 1.442695, %v1753_v26 }
0x1fa5   :  { %v1758_v3 = vadd.f32 1.0, %v2497_v6 }
0x1fa6   :  { %2498 = vpow2.f32 %v1756_v32 }
0x1fa7   :  { %2500 = vrcp.f32 %v1758_v3 }
0x1fac   :  { %v2499_v8 = vpop.eup %2498 }
0x1fad   :  { %v1759_v4 = vadd.f32 1.0, %v2499_v8  ;;  %v2501_v27 = vpop.eup %2500 }
0x1fae   :  { %v1762_v35 = vmul.f32 %v2501_v27, %v1702_v58  ;;  %v1812_v47 = vsub.f32 1.0, %v2501_v27  ;;  %v1810_v31 = vmul.f32 %v2501_v27, %v3332_v59 }
0x1faf   :  { %2502 = vrcp.f32 %v1759_v4 }
0x1fb0   :  { %v1766_v9 = vrot.slane %v1762_v35, 6  ;;  %v1770_v13 = vrot.slane %v1762_v35, 2  ;;  %v1764_v21 = vmul.f32 0.3333333, %v1762_v35 }
0x1fb5   :  { %v2503_v10 = vpop.eup %2502 }
0x1fb6   :  { %v1763_v12 = vmul.f32 %v2503_v10, %v1704_v24  ;;  %v1813_v52 = vsub.f32 1.0, %v2503_v10  ;;  %v1811_v50 = vmul.f32 %v2503_v10, %v3337_v57  ;;  %v417_v10 = vld [vmem:[#allocation2 + $0xa0] sm:$0xff] }
0x1fb8   :  { %v1767_v39 = vrot.slane %v1763_v12, 6  ;;  %v1771_v30 = vrot.slane %v1763_v12, 2  ;;  %v1765_v22 = vmul.f32 0.3333333, %v1763_v12  ;;  %v524_v12 = vadd.f32 %v3224_v55, %v417_v10 }
0x1fba   :  { %v1768_v14 = vsel %vm543_vm2, %v1766_v9, %v1767_v39  ;;  %v1769_v15 = vsel %vm543_vm2, %v1767_v39, %v1766_v9  ;;  %v1772_v16 = vsel %vm544_vm3, %v1770_v13, %v1771_v30  ;;  %v1773_v17 = vsel %vm544_vm3, %v1771_v30, %v1770_v13  ;;  %v418_v30 = vld [vmem:[#allocation2 + $0xa8] sm:$0xff] }
0x1fbb   :  { %v1774_v19 = vadd.f32 %v1772_v16, %v1769_v15  ;;  %v1775_v20 = vadd.f32 %v1773_v17, %v1768_v14  ;;  %v526_v15 = vadd.f32 %v3226_v28, %v418_v30 }
0x1fbd   :  { %v1776_v42 = vmul.f32 0.3333333, %v1774_v19  ;;  %v1777_v43 = vmul.f32 0.3333333, %v1775_v20 }
0x1fbf   :  { %v1778_v45 = vadd.f32 %v1776_v42, %v1764_v21  ;;  %v1779_v58 = vadd.f32 %v1777_v43, %v1765_v22 }
0x1fc1   :  { %v1780_v24 = vpack.c.bf16 %v1779_v58, %v1778_v45 }
0x1fc3   :  { %2344 = vmatmul.msk.bf16.vlgmr.msrb.gmra.mxu2 %vm561_vm4, %v1780_v24 }
0x2046   :  { %v1793_v34 = vpop.f32.mrf.mxu2 }
0x2047   :  { %1800 = vrot.lane.b32.xlu0 %v1793_v34, %s2600_s22 }
0x204e   :  { %v1795_v23 = vpop.f32.mrf.mxu2 }
0x204f   :  { %1802 = vrot.lane.b32.xlu1 %v1795_v23, %s2600_s22 }
0x20b9   :  { %v1801_v63 = vpop.permute.xlu0 %1800 }
0x20ba   :  { %v1806_v36 = vadd.f32 %v1801_v63, %v519_v62 }
0x20bc   :  { %2504 = vtanh.f32 %v1806_v36 }
0x20c1   :  { %v1803_v37 = vpop.permute.xlu1 %1802 }
0x20c2   :  { %v2505_v38 = vpop.eup %2504  ;;  %v1807_v7 = vadd.f32 %v1803_v37, %v521_v0 }
0x20c3   :  { %1816 = vrot.lane.b32.xlu2 %v2505_v38, %s2601_s23 }
0x20c4   :  { %2506 = vtanh.f32 %v1807_v7 }
0x20ca   :  { %v2507_v40 = vpop.eup %2506 }
0x20cb   :  { %1818 = vrot.lane.b32.xlu0 %v2507_v40, %s2601_s23 }
0x211d   :  { %v1817_v41 = vpop.permute.xlu2 %1816 }
0x211e   :  { %v1822_v48 = vmul.f32 %v1817_v41, %v1812_v47 }
0x2120   :  { %v3371_v51 = vadd.f32 %v1822_v48, %v1810_v31 }
0x2122   :  { %1830 = vrot.lane.b32.xlu1 %v3371_v51, %s2601_s23  ;;  %v1826_v26 = vmul.f32 0.3333333, %v3371_v51 }
0x213d   :  { %v1819_v53 = vpop.permute.xlu0 %1818 }
0x213e   :  { %v1823_v25 = vmul.f32 %v1819_v53, %v1813_v52 }
0x2140   :  { %v3376_v54 = vadd.f32 %v1823_v25, %v1811_v50 }
0x2142   :  { %1832 = vrot.lane.b32.xlu2 %v3376_v54, %s2601_s23  ;;  %v1827_v6 = vmul.f32 0.3333333, %v3376_v54 }
0x2194   :  { %v1831_v5 = vpop.permute.xlu1 %1830 }
0x2195   :  { %v1836_v61 = vrot.slane %v1831_v5, 6  ;;  %v1840_v59 = vrot.slane %v1831_v5, 2 }
0x219c   :  { %v1833_v60 = vpop.permute.xlu2 %1832 }
0x219d   :  { %v1837_v62 = vrot.slane %v1833_v60, 6  ;;  %v1841_v56 = vrot.slane %v1833_v60, 2 }
0x219f   :  { %v1839_v49 = vsel %vm543_vm2, %v1837_v62, %v1836_v61  ;;  %v1842_v18 = vsel %vm544_vm3, %v1840_v59, %v1841_v56  ;;  %v1838_v57 = vsel %vm543_vm2, %v1836_v61, %v1837_v62  ;;  %v1843_v44 = vsel %vm544_vm3, %v1841_v56, %v1840_v59 }
0x21a0   :  { %v1844_v46 = vadd.f32 %v1842_v18, %v1839_v49  ;;  %v1845_v0 = vadd.f32 %v1843_v44, %v1838_v57 }
0x21a2   :  { %v1846_v1 = vmul.f32 0.3333333, %v1844_v46  ;;  %v1847_v2 = vmul.f32 0.3333333, %v1845_v0 }
0x21a4   :  { %1850 = vrot.lane.b32.xlu0 %v1846_v1, %s2602_s9  ;;  %1852 = vrot.lane.b32.xlu1 %v1847_v2, %s2602_s9 }
0x2216   :  { %v1851_v32 = vpop.permute.xlu0 %1850  ;;  %v1853_v3 = vpop.permute.xlu1 %1852 }
0x2217   :  { %v1856_v8 = vadd.f32 %v1851_v32, %v1826_v26  ;;  %v1857_v4 = vadd.f32 %v1853_v3, %v1827_v6 }
0x2219   :  { %v1858_v27 = vpack.c.bf16 %v1857_v4, %v1856_v8 }
0x221b   :  { %1860 = vrot.lane.b32.xlu2 %v1858_v27, %s2601_s23 }
0x2275   :  { %v1861_v35 = vpop.permute.xlu2 %1860 }
0x2276   :  { %2345 = vmatmul.msk.bf16.vlgmr.msra.gmra.mxu3 %vm561_vm4, %v1861_v35 }
0x22f9   :  { %v1874_v9 = vpop.f32.mrf.mxu3 }
0x22fa   :  { %v1879_v13 = vadd.f32 %v1874_v9, %v524_v12 }
0x22fc   :  { %v1881_v39 = vsub.f32 0.0, %v1879_v13 }
0x22fe   :  { %v1883_v14 = vmul.f32 1.442695, %v1881_v39 }
0x2300   :  { %2508 = vpow2.f32 %v1883_v14 }
0x2301   :  { %v1876_v16 = vpop.f32.mrf.mxu3 }
0x2302   :  { %v1880_v17 = vadd.f32 %v1876_v16, %v526_v15 }
0x2304   :  { %v1882_v19 = vsub.f32 0.0, %v1880_v17 }
0x2306   :  { %v2509_v20 = vpop.eup %2508  ;;  %v1885_v21 = vmul.f32 1.442695, %v1882_v19 }
0x2307   :  { %v1887_v22 = vadd.f32 1.0, %v2509_v20 }
0x2308   :  { %2510 = vpow2.f32 %v1885_v21 }
0x2309   :  { %2512 = vrcp.f32 %v1887_v22 }
0x230e   :  { %v2511_v42 = vpop.eup %2510 }
0x230f   :  { %v1888_v43 = vadd.f32 1.0, %v2511_v42  ;;  %v2513_v55 = vpop.eup %2512 }
0x2310   :  { %v1891_v45 = vmul.f32 %v2513_v55, %v1831_v5  ;;  %v1941_v57 = vsub.f32 1.0, %v2513_v55  ;;  %v1939_v46 = vmul.f32 %v2513_v55, %v3371_v51  ;;  %v419_v55 = vld [vmem:[#allocation2 + $0xb0] sm:$0xff] }
0x2311   :  { %2514 = vrcp.f32 %v1888_v43 }
0x2312   :  { %v1895_v34 = vrot.slane %v1891_v45, 6  ;;  %v1899_v23 = vrot.slane %v1891_v45, 2  ;;  %v1893_v41 = vmul.f32 0.3333333, %v1891_v45  ;;  %v529_v45 = vadd.f32 %v3228_v33, %v419_v55 }
0x2317   :  { %v2515_v58 = vpop.eup %2514 }
0x2318   :  { %v1892_v24 = vmul.f32 %v2515_v58, %v1833_v60  ;;  %v1942_v2 = vsub.f32 1.0, %v2515_v58  ;;  %v1940_v6 = vmul.f32 %v2515_v58, %v3376_v54 }
0x231a   :  { %v1896_v63 = vrot.slane %v1892_v24, 6  ;;  %v1900_v28 = vrot.slane %v1892_v24, 2  ;;  %v1894_v31 = vmul.f32 0.3333333, %v1892_v24 }
0x231c   :  { %v1897_v36 = vsel %vm543_vm2, %v1895_v34, %v1896_v63  ;;  %v1898_v37 = vsel %vm543_vm2, %v1896_v63, %v1895_v34  ;;  %v1901_v38 = vsel %vm544_vm3, %v1899_v23, %v1900_v28  ;;  %v1902_v7 = vsel %vm544_vm3, %v1900_v28, %v1899_v23  ;;  %v420_v23 = vld [vmem:[#allocation2 + $0xb8] sm:$0xff] }
0x231d   :  { %v1903_v40 = vadd.f32 %v1901_v38, %v1898_v37  ;;  %v1904_v47 = vadd.f32 %v1902_v7, %v1897_v36  ;;  %v531_v28 = vadd.f32 %v3230_v29, %v420_v23 }
0x231f   :  { %v1905_v48 = vmul.f32 0.3333333, %v1903_v40  ;;  %v1906_v52 = vmul.f32 0.3333333, %v1904_v47 }
0x2321   :  { %v1907_v53 = vadd.f32 %v1905_v48, %v1893_v41  ;;  %v1908_v50 = vadd.f32 %v1906_v52, %v1894_v31 }
0x2323   :  { %v1909_v25 = vpack.c.bf16 %v1908_v50, %v1907_v53 }
0x2325   :  { %2346 = vmatmul.msk.bf16.vlgmr.msra.gmra.mxu0 %vm561_vm4, %v1909_v25 }
0x23a2   :  { %v1922_v5 = vpop.f32.mrf.mxu0 }
0x23a3   :  { %1929 = vrot.lane.b32.xlu0 %v1922_v5, %s2600_s22 }
0x23aa   :  { %v1924_v60 = vpop.f32.mrf.mxu0 }
0x23ab   :  { %1931 = vrot.lane.b32.xlu1 %v1924_v60, %s2600_s22 }
0x2415   :  { %v1930_v61 = vpop.permute.xlu0 %1929 }
0x2416   :  { %v1935_v59 = vadd.f32 %v1930_v61, %v524_v12 }
0x2418   :  { %2516 = vtanh.f32 %v1935_v59 }
0x241d   :  { %v1932_v62 = vpop.permute.xlu1 %1931 }
0x241e   :  { %v2517_v56 = vpop.eup %2516  ;;  %v1936_v49 = vadd.f32 %v1932_v62, %v526_v15 }
0x241f   :  { %1945 = vrot.lane.b32.xlu2 %v2517_v56, %s2601_s23 }
0x2420   :  { %2518 = vtanh.f32 %v1936_v49 }
0x2426   :  { %v2519_v18 = vpop.eup %2518 }
0x2427   :  { %1947 = vrot.lane.b32.xlu0 %v2519_v18, %s2601_s23 }
0x2479   :  { %v1946_v44 = vpop.permute.xlu2 %1945 }
0x247a   :  { %v1951_v0 = vmul.f32 %v1946_v44, %v1941_v57 }
0x247c   :  { %v3410_v1 = vadd.f32 %v1951_v0, %v1939_v46 }
0x247e   :  { %1959 = vrot.lane.b32.xlu1 %v3410_v1, %s2601_s23  ;;  %v1955_v16 = vmul.f32 0.3333333, %v3410_v1 }
0x2499   :  { %v1948_v26 = vpop.permute.xlu0 %1947 }
0x249a   :  { %v1952_v32 = vmul.f32 %v1948_v26, %v1942_v2 }
0x249c   :  { %v3415_v3 = vadd.f32 %v1952_v32, %v1940_v6 }
0x249e   :  { %1961 = vrot.lane.b32.xlu2 %v3415_v3, %s2601_s23  ;;  %v1956_v17 = vmul.f32 0.3333333, %v3415_v3 }
0x24f0   :  { %v1960_v8 = vpop.permute.xlu1 %1959 }
0x24f1   :  { %v1965_v27 = vrot.slane %v1960_v8, 6  ;;  %v1969_v51 = vrot.slane %v1960_v8, 2 }
0x24f8   :  { %v1962_v4 = vpop.permute.xlu2 %1961 }
0x24f9   :  { %v1966_v35 = vrot.slane %v1962_v4, 6  ;;  %v1970_v10 = vrot.slane %v1962_v4, 2 }
0x24fb   :  { %v1968_v12 = vsel %vm543_vm2, %v1966_v35, %v1965_v27  ;;  %v1971_v9 = vsel %vm544_vm3, %v1969_v51, %v1970_v10  ;;  %v1967_v54 = vsel %vm543_vm2, %v1965_v27, %v1966_v35  ;;  %v1972_v13 = vsel %vm544_vm3, %v1970_v10, %v1969_v51 }
0x24fc   :  { %v1973_v39 = vadd.f32 %v1971_v9, %v1968_v12  ;;  %v1974_v30 = vadd.f32 %v1972_v13, %v1967_v54 }
0x24fe   :  { %v1975_v14 = vmul.f32 0.3333333, %v1973_v39  ;;  %v1976_v15 = vmul.f32 0.3333333, %v1974_v30 }
0x2500   :  { %1979 = vrot.lane.b32.xlu0 %v1975_v14, %s2602_s9  ;;  %1981 = vrot.lane.b32.xlu1 %v1976_v15, %s2602_s9 }
0x2572   :  { %v1980_v19 = vpop.permute.xlu0 %1979  ;;  %v1982_v20 = vpop.permute.xlu1 %1981 }
0x2573   :  { %v1985_v21 = vadd.f32 %v1980_v19, %v1955_v16  ;;  %v1986_v22 = vadd.f32 %v1982_v20, %v1956_v17 }
0x2575   :  { %v1987_v42 = vpack.c.bf16 %v1986_v22, %v1985_v21 }
0x2577   :  { %1989 = vrot.lane.b32.xlu2 %v1987_v42, %s2601_s23 }
0x25d1   :  { %v1990_v43 = vpop.permute.xlu2 %1989 }
0x25d2   :  { %2347 = vmatmul.msk.bf16.vlgmr.msrb.gmra.mxu1 %vm561_vm4, %v1990_v43 }
0x264f   :  { %v2003_v58 = vpop.f32.mrf.mxu1 }
0x2650   :  { %v2008_v24 = vadd.f32 %v2003_v58, %v529_v45 }
0x2652   :  { %v2010_v34 = vsub.f32 0.0, %v2008_v24 }
0x2654   :  { %v2012_v63 = vmul.f32 1.442695, %v2010_v34 }
0x2656   :  { %2520 = vpow2.f32 %v2012_v63 }
0x2657   :  { %v2005_v36 = vpop.f32.mrf.mxu1 }
0x2658   :  { %v2009_v37 = vadd.f32 %v2005_v36, %v531_v28 }
0x265a   :  { %v2011_v38 = vsub.f32 0.0, %v2009_v37 }
0x265c   :  { %v2521_v7 = vpop.eup %2520  ;;  %v2014_v40 = vmul.f32 1.442695, %v2011_v38  ;;  %v2094_v38 = vld [vmem:[%s3489_s4] sm:$0xff] }
0x265d   :  { %v2016_v47 = vadd.f32 1.0, %v2521_v7 }
0x265e   :  { %2522 = vpow2.f32 %v2014_v40  ;;  %v2095_v40 = vld [vmem:[%s3489_s4 + $0x8] sm:$0xff] }
0x265f   :  { %2524 = vrcp.f32 %v2016_v47 }
0x2664   :  { %v2523_v41 = vpop.eup %2522 }
0x2665   :  { %v2017_v31 = vadd.f32 1.0, %v2523_v41  ;;  %v2525_v33 = vpop.eup %2524 }
0x2666   :  { %v2020_v48 = vmul.f32 %v2525_v33, %v1960_v8  ;;  %v2070_v10 = vsub.f32 1.0, %v2525_v33  ;;  %v2068_v9 = vmul.f32 %v2525_v33, %v3410_v1  ;;  %v2097_v33 = vld [vmem:[%s3489_s4 + $0x18] sm:$0xff] }
0x2667   :  { %2526 = vrcp.f32 %v2017_v31  ;;  %v2096_v31 = vld [vmem:[%s3489_s4 + $0x10] sm:$0xff] }
0x2668   :  { %v2024_v50 = vrot.slane %v2020_v48, 6  ;;  %v2028_v25 = vrot.slane %v2020_v48, 2  ;;  %v2022_v18 = vmul.f32 0.3333333, %v2020_v48  ;;  %v2099_v48 = vpack.c.bf16 %v2097_v33, %v2096_v31 }
0x266a   :  { %2153 = vmatpush.bf16.msrb.mxu3 %v2099_v48 }
0x266d   :  { %v2527_v52 = vpop.eup %2526 }
0x266e   :  { %v2021_v53 = vmul.f32 %v2527_v52, %v1962_v4  ;;  %v2071_v22 = vsub.f32 1.0, %v2527_v52  ;;  %v2069_v43 = vmul.f32 %v2527_v52, %v3415_v3 }
0x2670   :  { %v2025_v5 = vrot.slane %v2021_v53, 6  ;;  %v2029_v29 = vrot.slane %v2021_v53, 2  ;;  %v2023_v57 = vmul.f32 0.3333333, %v2021_v53 }
0x2672   :  { %v2026_v60 = vsel %vm543_vm2, %v2024_v50, %v2025_v5  ;;  %v2027_v61 = vsel %vm543_vm2, %v2025_v5, %v2024_v50  ;;  %v2030_v59 = vsel %vm544_vm3, %v2028_v25, %v2029_v29  ;;  %v2031_v62 = vsel %vm544_vm3, %v2029_v29, %v2028_v25 }
0x2673   :  { %v2032_v56 = vadd.f32 %v2030_v59, %v2027_v61  ;;  %v2033_v49 = vadd.f32 %v2031_v62, %v2026_v60  ;;  %v2098_v59 = vld [vmem:[%s3489_s4 + $0x20] sm:$0xff] }
0x2674   :  { %v2139_v62 = vperm.slane %v2098_v59, 0 }
0x2675   :  { %v2034_v44 = vmul.f32 0.3333333, %v2032_v56  ;;  %v2035_v46 = vmul.f32 0.3333333, %v2033_v49 }
0x2677   :  { %v2036_v0 = vadd.f32 %v2034_v44, %v2022_v18  ;;  %v2037_v2 = vadd.f32 %v2035_v46, %v2023_v57 }
0x2679   :  { %v2038_v26 = vpack.c.bf16 %v2037_v2, %v2036_v0 }
0x267b   :  { %2348 = vmatmul.msk.bf16.vlgmr.msra.gmra.mxu2 %vm561_vm4, %v2038_v26 }
0x26fe   :  { %v2051_v6 = vpop.f32.mrf.mxu2 }
0x26ff   :  { %2058 = vrot.lane.b32.xlu0 %v2051_v6, %s2600_s22 }
0x2706   :  { %v2053_v32 = vpop.f32.mrf.mxu2 }
0x2707   :  { %2060 = vrot.lane.b32.xlu1 %v2053_v32, %s2600_s22 }
0x2771   :  { %v2059_v8 = vpop.permute.xlu0 %2058 }
0x2772   :  { %v2064_v11 = vadd.f32 %v2059_v8, %v529_v45 }
0x2774   :  { %2528 = vtanh.f32 %v2064_v11 }
0x2779   :  { %v2061_v4 = vpop.permute.xlu1 %2060 }
0x277a   :  { %v2529_v27 = vpop.eup %2528  ;;  %v2065_v51 = vadd.f32 %v2061_v4, %v531_v28 }
0x277b   :  { %2074 = vrot.lane.b32.xlu2 %v2529_v27, %s2601_s23 }
0x277c   :  { %2530 = vtanh.f32 %v2065_v51 }
0x2782   :  { %v2531_v35 = vpop.eup %2530 }
0x2783   :  { %2076 = vrot.lane.b32.xlu0 %v2531_v35, %s2601_s23 }
0x27d5   :  { %v2075_v12 = vpop.permute.xlu2 %2074 }
0x27d6   :  { %v2080_v54 = vmul.f32 %v2075_v12, %v2070_v10 }
0x27d8   :  { %v2082_v13 = vadd.f32 %v2080_v54, %v2068_v9 }
0x27da   :  { %v2102_v39 = vand.u32 2147483647, %v2082_v13  ;;  %v2100_v19 = vmax.f32 %v2082_v13, 0.0 }
0x27dc   :  { %v2104_v30 = vsub.f32 0.0, %v2102_v39 }
0x27de   :  { %v2106_v14 = vmul.f32 1.442695, %v2104_v30 }
0x27e0   :  { %2532 = vpow2.f32 %v2106_v14 }
0x27e6   :  { %v2533_v15 = vpop.eup %2532 }
0x27e7   :  { %v2110_v16 = vadd.f32 1.0, %v2533_v15 }
0x27e9   :  { %2534 = vlog2.f32 %v2110_v16 }
0x27ef   :  { %v2535_v17 = vpop.eup %2534 }
0x27f0   :  { %v2113_v20 = vmul.f32 0.6931472, %v2535_v17 }
0x27f2   :  { %v2116_v21 = vadd.f32 %v2113_v20, %v2100_v19 }
0x27f4   :  { %2120 = vrot.lane.b32.xlu1 %v2116_v21, %s2603_s1 }
0x27f5   :  { %v2077_v42 = vpop.permute.xlu0 %2076 }
0x27f6   :  { %v2081_v1 = vmul.f32 %v2077_v42, %v2071_v22 }
0x27f8   :  { %v2083_v55 = vadd.f32 %v2081_v1, %v2069_v43 }
0x27fa   :  { %v2103_v45 = vand.u32 2147483647, %v2083_v55  ;;  %v2101_v28 = vmax.f32 %v2083_v55, 0.0 }
0x27fc   :  { %v2105_v58 = vsub.f32 0.0, %v2103_v45 }
0x27fe   :  { %v2108_v24 = vmul.f32 1.442695, %v2105_v58 }
0x2800   :  { %2536 = vpow2.f32 %v2108_v24 }
0x2806   :  { %v2537_v34 = vpop.eup %2536 }
0x2807   :  { %v2111_v23 = vadd.f32 1.0, %v2537_v34 }
0x2809   :  { %2538 = vlog2.f32 %v2111_v23 }
0x280f   :  { %v2539_v63 = vpop.eup %2538 }
0x2810   :  { %v2115_v36 = vmul.f32 0.6931472, %v2539_v63 }
0x2812   :  { %v2117_v37 = vadd.f32 %v2115_v36, %v2101_v28 }
0x2814   :  { %2122 = vrot.lane.b32.xlu2 %v2117_v37, %s2603_s1 }
0x2866   :  { %v2121_v7 = vpop.permute.xlu1 %2120 }
0x2867   :  { %v2126_v3 = vmul.f32 %v2121_v7, %v2094_v38 }
0x2869   :  { %2130 = vrot.lane.b32.xlu0 %v2126_v3, %s2602_s9 }
0x286e   :  { %v2123_v47 = vpop.permute.xlu2 %2122 }
0x286f   :  { %v2127_v41 = vmul.f32 %v2123_v47, %v2095_v40 }
0x2871   :  { %2132 = vrot.lane.b32.xlu1 %v2127_v41, %s2602_s9  ;;  %2086 = vrot.lane.b32.xlu0 %v2082_v13, %s2601_s23  ;;  %s2604_s9 = smov [#allocation5]  }
0x2872   :  { %s2167_s17 = sshll.u32 %s2604_s9, 4  ;;  %s2168_s17 = int_to_ptr.vmem [resolvable:$true] %s2167_s17 }
0x2879   :  { %2088 = vrot.lane.b32.xlu1 %v2083_v55, %s2601_s23 }
0x28db   :  { %v2131_v52 = vpop.permute.xlu0 %2130 }
0x28dc   :  { %v2136_v25 = vadd.f32 %v2131_v52, %v2082_v13 }
0x28e3   :  { %v2087_v53 = vpop.permute.xlu0 %2086  ;;  %v2133_v50 = vpop.permute.xlu1 %2132 }
0x28e4   :  { %2092 = vst.msk [vmem:[#allocation5] sm:$0xff] %vm561_vm4, %v2087_v53  ;;  %v2137_v5 = vadd.f32 %v2133_v50, %v2083_v55 }
0x28e6   :  { %v2138_v29 = vpack.c.bf16 %v2137_v5, %v2136_v25 }
0x28e8   :  { %2141 = vrot.lane.b32.xlu2 %v2138_v29, %s2601_s23 }
0x28eb   :  { %v2089_v60 = vpop.permute.xlu1 %2088 }
0x28ec   :  { %2093 = vst.msk [vmem:[#allocation5 + $0x8] sm:$0xff] %vm561_vm4, %v2089_v60 }
0x28ed   :  { %2175 = dma.vmem_to_hbm [thread:$0]  %s2168_s17, 256, %s2170_s20, [#allocation4], %s2597_s26, %s2597_s26, %s2598_s27  }
0x2942   :  { %v2142_v61 = vpop.permute.xlu2 %2141 }
0x2943   :  { %2349 = vmatmul.msk.bf16.vlgmr.msrb.gmra.mxu3 %vm427_vm1, %v2142_v61 }
0x29c6   :  { %v2155_v56 = vpop.f32.mrf.mxu3 }
0x29c7   :  { %v2156_v49 = vadd.f32 %v2155_v56, %v2139_v62 }
0x29c9   :  { %2161 = vst.msk [vmem:[%s3491_s6] sm:$0xff] %vm2160_vm5, %v2156_v49 }
0x29ce   :  { %v2157_v18 = vpop.f32.mrf.mxu3 }
0x29cf   :  { %v2158_v57 = vadd.f32 %v2157_v18, %v2139_v62 }
0x29d1   :  { %2162 = vst.msk [vmem:[%s3491_s6 + $0x8] sm:$0xff] %vm2160_vm5, %v2158_v57 }
0x29d2   :  { %2594 = dma.done.wait [#allocation4], 256  }
0x29d3   :  { %2595 = vsyncadd [#allocation4], 4294967040 }
0x29d4   :  { %2184 = vsyncpa [#allocation3], 1 }
0x29d5   :  { %2185 = vsyncpa [#allocation4], 1 }

// kernel: tpu_custom_call.1
= control target key start
LH: loop header
LB: loop body
LE: loop exit
PB: predicated region body
PF: predicated region fallthrough
CT: control target
= control target key end

     0   :  { %12 = vsyncpa [#allocation3], 0  ;;  %s3289_s0 = inlined_call_operand.vmem [shape: f32[192,16], index: 0, kind: input, shape index: {}]   ;;  %s3290_s1 = inlined_call_operand.vmem [shape: bf16[192,192], index: 1, kind: input, shape index: {}]   ;;  %s3291_s2 = inlined_call_operand.vmem [shape: bf16[96,96], index: 2, kind: input, shape index: {}]   ;;  %s3292_s3 = inlined_call_operand.hbm [shape: f32[192,96], index: 3, kind: input, shape index: {}]   ;;  %s3293_s4 = inlined_call_operand.vmem [shape: f32[40,16], index: 4, kind: input, shape index: {}]   ;;  %s3294_s5 = inlined_call_operand.hbm [shape: f32[16,32], index: 5, kind: output, shape index: {0}]   ;;  %s3295_s6 = inlined_call_operand.vmem [shape: f32[16,3], index: 6, kind: output, shape index: {1}]  }
   0x1   :  { %13 = vsyncpa [#allocation4], 0  ;;  %s24_s23 = sshll.u32 %s3292_s3, 4  ;;  %s2545_s24 = smov [#allocation2]   ;;  %s25_s23 = int_to_ptr.hbm [resolvable:$true] %s24_s23 }
   0x2   :  { %s26_s25 = sshll.u32 %s2545_s24, 4  ;;  %s2546_s26 = smov 128   ;;  %s27_s25 = int_to_ptr.vmem [resolvable:$true] %s26_s25 }
   0x3   :  { %s2547_s27 = smov 8  }
   0x4   :  { %32 = dma.hbm_to_vmem [thread:$0]  %s25_s23, 3072, %s27_s25, [#allocation3], %s2546_s26, %s2546_s26, %s2547_s27  }
   0x5   :  { %2541 = dma.done.wait [#allocation3], 3072  }
   0x6   :  { %2542 = vsyncadd [#allocation3], 4294964224  ;;  %v2548_v0 = vmov 0   ;;  %v78_v1 = vld [vmem:[%s3289_s0 + $0x70] sm:$0xff]  ;;  %v79_v2 = vld [vmem:[%s3289_s0 + $0x78] sm:$0xff]  ;;  %vm427_vm0 = vcmask 130048  }
   0x7   :  { %558 = vmatpush.bf16.msra.mxu3 %v2548_v0  ;;  %v76_v3 = vld [vmem:[%s3289_s0 + $0x60] sm:$0xff]  ;;  %v95_v4 = vpack.c.bf16 %v79_v2, %v78_v1  ;;  %v77_v5 = vld [vmem:[%s3289_s0 + $0x68] sm:$0xff]  ;;  %v86_v6 = vld [vmem:[%s3289_s0 + $0xb0] sm:$0xff]  ;;  %vm208_vm1 = vcmask 523264   ;;  %vm578_vm2 = vcmask 261120   ;;  %s2549_s24 = smov 64  }
   0x8   :  { %v87_v7 = vld [vmem:[%s3289_s0 + $0xb8] sm:$0xff]  ;;  %v94_v8 = vpack.c.bf16 %v77_v5, %v76_v3  ;;  %v84_v10 = vld [vmem:[%s3289_s0 + $0xa0] sm:$0xff]  ;;  %v85_v11 = vld [vmem:[%s3289_s0 + $0xa8] sm:$0xff]  ;;  %s2550_s25 = smov 96   ;;  %s2552_s15 = smov 32   ;;  %vm2077_vm3 = vcmask 23552  }
   0x9   :  { %245 = vmatpush.bf16.msra.mxu0 %v95_v4  ;;  %v99_v9 = vpack.c.bf16 %v87_v7, %v86_v6  ;;  %v74_v12 = vld [vmem:[%s3289_s0 + $0x50] sm:$0xff]  ;;  %v75_v13 = vld [vmem:[%s3289_s0 + $0x58] sm:$0xff]  ;;  %v2628_v14 = vld [vmem:[%s3291_s2 + $0x28] sm:$0xff]  ;;  %v98_v15 = vpack.c.bf16 %v85_v11, %v84_v10  ;;  %s2553_s21 = smov [#allocation5]   ;;  %s2086_s28 = sshll.u32 %s3294_s5, 4  ;;  %s2087_s28 = int_to_ptr.hbm [resolvable:$true] %s2086_s28 }
   0xa   :  { %2231 = vmatmul.msk.bf16.vlgmr.msra.gmra.mxu3 %vm427_vm0, %v2628_v14  ;;  %v82_v16 = vld [vmem:[%s3289_s0 + $0x90] sm:$0xff]  ;;  %v83_v17 = vld [vmem:[%s3289_s0 + $0x98] sm:$0xff]  ;;  %v93_v18 = vpack.c.bf16 %v75_v13, %v74_v12  ;;  %v72_v19 = vld [vmem:[%s3289_s0 + $0x40] sm:$0xff]  ;;  %s2084_s22 = sshll.u32 %s2553_s21, 4  ;;  %s2085_s22 = int_to_ptr.vmem [resolvable:$true] %s2084_s22 }
   0xb   :  { %318 = vmatpush.bf16.msra.mxu1 %v99_v9  ;;  %v73_v20 = vld [vmem:[%s3289_s0 + $0x48] sm:$0xff]  ;;  %v97_v21 = vpack.c.bf16 %v83_v17, %v82_v16  ;;  %v80_v22 = vld [vmem:[%s3289_s0 + $0x80] sm:$0xff]  ;;  %v70_v25 = vld [vmem:[%s3289_s0 + $0x30] sm:$0xff] }
   0xc   :  { %v81_v23 = vld [vmem:[%s3289_s0 + $0x88] sm:$0xff]  ;;  %v92_v24 = vpack.c.bf16 %v73_v20, %v72_v19  ;;  %v71_v26 = vld [vmem:[%s3289_s0 + $0x38] sm:$0xff]  ;;  %v2296_v28 = vld [vmem:[%s3290_s1 + $0x4] sm:$0xf] }
   0xd   :  { %246 = vmatpush.bf16.msra.mxu0 %v94_v8  ;;  %v96_v27 = vpack.c.bf16 %v81_v23, %v80_v22  ;;  %v2107_v29 = vld [vmem:[%s3290_s1 + $0x8] sm:$0xf0]  ;;  %v91_v30 = vpack.c.bf16 %v71_v26, %v70_v25  ;;  %v68_v31 = vld [vmem:[%s3289_s0 + $0x20] sm:$0xff]  ;;  %v66_v35 = vld [vmem:[%s3289_s0 + $0x10] sm:$0xff] }
   0xe   :  { %v69_v32 = vld [vmem:[%s3289_s0 + $0x28] sm:$0xff]  ;;  %v2110_v33 = vor.u32 %v2296_v28, %v2107_v29  ;;  %v67_v36 = vld [vmem:[%s3289_s0 + $0x18] sm:$0xff]  ;;  %v64_v38 = vld [vmem:[%s3289_s0] sm:$0xff] }
   0xf   :  { %319 = vmatpush.bf16.msra.mxu1 %v98_v15  ;;  %v90_v34 = vpack.c.bf16 %v69_v32, %v68_v31  ;;  %v89_v37 = vpack.c.bf16 %v67_v36, %v66_v35  ;;  %v65_v39 = vld [vmem:[%s3289_s0 + $0x8] sm:$0xff]  ;;  %v2105_v41 = vld [vmem:[%s3290_s1] sm:$0xf]  ;;  %v2690_v44 = vld [vmem:[%s3291_s2 + $0x10] sm:$0xff] }
  0x10   :  { %v88_v40 = vpack.c.bf16 %v65_v39, %v64_v38  ;;  %v2297_v42 = vld [vmem:[%s3290_s1 + $0x4] sm:$0xf0]  ;;  %588 = vmatpush.bf16.msrb.mxu3 %v2690_v44  ;;  %v2320_v46 = vld [vmem:[%s3291_s2] sm:$0xff]  ;;  %v2299_v31 = vld [vmem:[%s3290_s1 + $0x14] sm:$0xf0] }
  0x11   :  { %247 = vmatpush.bf16.msra.mxu0 %v93_v18  ;;  %v2106_v43 = vor.u32 %v2297_v42, %v2105_v41  ;;  %v2696_v45 = vld [vmem:[%s3291_s2 + $0x8] sm:$0xff]  ;;  %471 = vmatpush.bf16.msra.mxu2 %v2320_v46  ;;  %v397_v57 = vld [vmem:[#allocation2] sm:$0xff]  ;;  %v2719_v18 = vld [vmem:[%s3291_s2 + $0x18] sm:$0xff] }
  0x12   :  { %v398_v63 = vld [vmem:[#allocation2 + $0x8] sm:$0xff]  ;;  %v2713_v17 = vld [vmem:[%s3291_s2 + $0x20] sm:$0xff]  ;;  %v2298_v32 = vld [vmem:[%s3290_s1 + $0x14] sm:$0xf] }
  0x13   :  { %320 = vmatpush.bf16.msra.mxu1 %v97_v21 }
  0x14   :  { %589 = vmatpush.bf16.msrb.mxu3 %v2696_v45 }
  0x15   :  { %248 = vmatpush.bf16.msra.mxu0 %v92_v24 }
  0x17   :  { %321 = vmatpush.bf16.msra.mxu1 %v96_v27 }
  0x19   :  { %249 = vmatpush.bf16.msra.mxu0 %v91_v30  ;;  %v2113_v30 = vld [vmem:[%s3290_s1 + $0x10] sm:$0xf] }
  0x1a   :  { %2199 = vmatmul.msk.bf16.vlgmr.msra.gmra.mxu1 %vm208_vm1, %v2110_v33  ;;  %v2114_v33 = vor.u32 %v2299_v31, %v2113_v30 }
  0x1d   :  { %250 = vmatpush.bf16.msra.mxu0 %v90_v34  ;;  %v2115_v34 = vld [vmem:[%s3290_s1 + $0x18] sm:$0xf0] }
  0x1e   :  { %v2118_v35 = vor.u32 %v2298_v32, %v2115_v34  ;;  %v2301_v34 = vld [vmem:[%s3290_s1 + $0x24] sm:$0xf0] }
  0x21   :  { %251 = vmatpush.bf16.msra.mxu0 %v89_v37 }
  0x25   :  { %252 = vmatpush.bf16.msra.mxu0 %v88_v40 }
  0x28   :  { %253 = vmatmul.bf16.vlgmr.msra.gmra.mxu0 %v2106_v43 }
  0x29   :  { %1070 = vmatpush.bf16.msrb.mxu0 %v2690_v44 }
  0x2a   :  { %2200 = vmatmul.msk.bf16.gmra.mxu1 %vm208_vm1, %v2118_v35  ;;  %v2300_v35 = vld [vmem:[%s3290_s1 + $0x24] sm:$0xf] }
  0x2d   :  { %1071 = vmatpush.bf16.msrb.mxu0 %v2696_v45 }
  0x31   :  { %1190 = vmatpush.bf16.msra.mxu0 %v2690_v44 }
  0x35   :  { %1191 = vmatpush.bf16.msra.mxu0 %v2696_v45 }
  0x38   :  { %258 = vmatmul.bf16.gmra.mxu0 %v2114_v33  ;;  %v2121_v33 = vld [vmem:[%s3290_s1 + $0x20] sm:$0xf] }
  0x8d   :  { %v560_v47 = vpop.f32.mrf.mxu3 }
  0x95   :  { %v562_v48 = vpop.f32.mrf.mxu3 }
  0x96   :  { %v565_v49 = vpack.c.bf16 %v562_v48, %v560_v47 }
  0x97   :  { %v323_v50 = vpop.f32.mrf.mxu1 }
  0x98   :  { %2240 = vmatmul.msk.bf16.vlgmr.msrb.gmra.mxu3 %vm578_vm2, %v565_v49 }
  0x9f   :  { %v325_v52 = vpop.f32.mrf.mxu1 }
  0xa5   :  { %v254_v51 = vpop.f32.mrf.mxu0 }
  0xa6   :  { %v324_v54 = vadd.f32 %v323_v50, %v254_v51 }
  0xa7   :  { %v328_v49 = vpop.f32.mrf.mxu1 }
  0xad   :  { %v256_v53 = vpop.f32.mrf.mxu0 }
  0xae   :  { %v326_v55 = vadd.f32 %v325_v52, %v256_v53 }
  0xaf   :  { %v330_v52 = vpop.f32.mrf.mxu1 }
  0xb0   :  { %v385_v56 = vpack.c.bf16 %v326_v55, %v324_v54 }
  0xb2   :  { %2215 = vmatmul.msk.bf16.vlgmr.msra.gmra.mxu2 %vm427_vm0, %v385_v56 }
  0xb5   :  { %v259_v48 = vpop.f32.mrf.mxu0 }
  0xb6   :  { %v329_v50 = vadd.f32 %v328_v49, %v259_v48 }
  0xbd   :  { %v261_v51 = vpop.f32.mrf.mxu0 }
  0xbe   :  { %v331_v53 = vadd.f32 %v330_v52, %v261_v51 }
  0xc0   :  { %v386_v54 = vpack.c.bf16 %v331_v53, %v329_v50 }
  0xc2   :  { %2216 = vmatmul.msk.bf16.gmra.mxu2 %vm427_vm0, %v386_v54 }
 0x11b   :  { %v591_v58 = vpop.f32.mrf.mxu3 }
 0x123   :  { %v593_v3 = vpop.f32.mrf.mxu3 }
 0x135   :  { %v473_v59 = vpop.f32.mrf.mxu2 }
 0x136   :  { %v474_v60 = vadd.f32 %v473_v59, %v397_v57  ;;  %v399_v59 = vld [vmem:[#allocation2 + $0x10] sm:$0xff] }
 0x138   :  { %v596_v61 = vadd.f32 %v591_v58, %v474_v60 }
 0x13a   :  { %v598_v62 = vsub.f32 0.0, %v596_v61 }
 0x13c   :  { %v600_v0 = vmul.f32 1.442695, %v598_v62 }
 0x13d   :  { %v475_v1 = vpop.f32.mrf.mxu2 }
 0x13e   :  { %v476_v2 = vadd.f32 %v475_v1, %v398_v63  ;;  %2335 = vpow2.f32 %v600_v0  ;;  %v400_v0 = vld [vmem:[#allocation2 + $0x18] sm:$0xff] }
 0x140   :  { %v597_v4 = vadd.f32 %v593_v3, %v476_v2 }
 0x142   :  { %v599_v5 = vsub.f32 0.0, %v597_v4 }
 0x144   :  { %v602_v6 = vmul.f32 1.442695, %v599_v5  ;;  %v2336_v7 = vpop.eup %2335 }
 0x145   :  { %v604_v8 = vadd.f32 1.0, %v2336_v7  ;;  %v478_v58 = vpop.f32.mrf.mxu2 }
 0x146   :  { %2337 = vpow2.f32 %v602_v6 }
 0x147   :  { %2339 = vrcp.f32 %v604_v8 }
 0x14c   :  { %v2338_v9 = vpop.eup %2337 }
 0x14d   :  { %v605_v10 = vadd.f32 1.0, %v2338_v9  ;;  %v2340_v11 = vpop.eup %2339  ;;  %v480_v1 = vpop.f32.mrf.mxu2 }
 0x14e   :  { %v608_v13 = vmul.f32 0.0, %v2340_v11  ;;  %v667_v37 = vsub.f32 1.0, %v2340_v11  ;;  %v481_v3 = vadd.f32 %v480_v1, %v400_v0  ;;  %v401_v0 = vld [vmem:[#allocation2 + $0x20] sm:$0xff] }
 0x14f   :  { %2341 = vrcp.f32 %v605_v10 }
 0x155   :  { %v2342_v12 = vpop.eup %2341 }
 0x156   :  { %v609_v15 = vmul.f32 0.0, %v2342_v12  ;;  %v668_v39 = vsub.f32 1.0, %v2342_v12 }
 0x158   :  { %v610_v16 = vpack.c.bf16 %v609_v15, %v608_v13 }
 0x15a   :  { %618 = vmatpush.bf16.msra.mxu3 %v610_v16 }
 0x15d   :  { %2241 = vmatmul.msk.bf16.vlgmr.msra.gmra.mxu3 %vm427_vm0, %v2628_v14 }
 0x15e   :  { %647 = vmatpush.bf16.msrb.mxu3 %v2713_v17 }
 0x162   :  { %648 = vmatpush.bf16.msrb.mxu3 %v2719_v18 }
 0x1e0   :  { %v620_v19 = vpop.f32.mrf.mxu3 }
 0x1e8   :  { %v622_v20 = vpop.f32.mrf.mxu3 }
 0x1e9   :  { %v625_v21 = vpack.c.bf16 %v622_v20, %v620_v19 }
 0x1eb   :  { %2250 = vmatmul.msk.bf16.vlgmr.msrb.gmra.mxu3 %vm578_vm2, %v625_v21 }
 0x26e   :  { %v650_v22 = vpop.f32.mrf.mxu3 }
 0x26f   :  { %657 = vrot.lane.b32.xlu0 %v650_v22, %s2549_s24 }
 0x276   :  { %v652_v23 = vpop.f32.mrf.mxu3 }
 0x277   :  { %659 = vrot.lane.b32.xlu0 %v652_v23, %s2549_s24 }
 0x2e1   :  { %v658_v24 = vpop.permute.xlu0 %657 }
 0x2e2   :  { %v663_v25 = vadd.f32 %v658_v24, %v474_v60  ;;  %v479_v60 = vadd.f32 %v478_v58, %v399_v59 }
 0x2e4   :  { %2343 = vtanh.f32 %v663_v25 }
 0x2e9   :  { %v660_v26 = vpop.permute.xlu0 %659 }
 0x2ea   :  { %v2344_v27 = vpop.eup %2343  ;;  %v664_v28 = vadd.f32 %v660_v26, %v476_v2 }
 0x2eb   :  { %671 = vrot.lane.b32.xlu1 %v2344_v27, %s2550_s25 }
 0x2ec   :  { %2345 = vtanh.f32 %v664_v28 }
 0x2f2   :  { %v2346_v29 = vpop.eup %2345 }
 0x2f3   :  { %673 = vrot.lane.b32.xlu1 %v2346_v29, %s2550_s25 }
 0x35d   :  { %v672_v36 = vpop.permute.xlu1 %671 }
 0x35e   :  { %v677_v38 = vmul.f32 %v672_v36, %v667_v37  ;;  %v2122_v36 = vor.u32 %v2301_v34, %v2121_v33  ;;  %v2123_v37 = vld [vmem:[%s3290_s1 + $0x28] sm:$0xf0]  ;;  %v2137_v34 = vld [vmem:[%s3290_s1 + $0x40] sm:$0xf] }
 0x360   :  { %v2740_v42 = vadd.f32 %v677_v38, %v608_v13  ;;  %v2126_v38 = vor.u32 %v2300_v35, %v2123_v37  ;;  %263 = vmatmul.bf16.gmra.mxu0 %v2122_v36  ;;  %v2305_v35 = vld [vmem:[%s3290_s1 + $0x44] sm:$0xf0]  ;;  %v2304_v36 = vld [vmem:[%s3290_s1 + $0x44] sm:$0xf]  ;;  %v2139_v37 = vld [vmem:[%s3290_s1 + $0x48] sm:$0xf0] }
 0x362   :  { %2201 = vmatmul.msk.bf16.gmra.mxu1 %vm208_vm1, %v2126_v38  ;;  %v2138_v38 = vor.u32 %v2305_v35, %v2137_v34 }
 0x365   :  { %v674_v40 = vpop.permute.xlu1 %673 }
 0x366   :  { %v678_v41 = vmul.f32 %v674_v40, %v668_v39 }
 0x368   :  { %v2742_v43 = vadd.f32 %v678_v41, %v609_v15 }
 0x36a   :  { %734 = vrot.lane.b32.xlu0 %v2742_v43, %s2550_s25  ;;  %v681_v46 = vpack.c.bf16 %v2742_v43, %v2740_v42 }
 0x36c   :  { %683 = vrot.lane.b32.xlu2 %v681_v46, %s2550_s25 }
 0x374   :  { %732 = vrot.lane.b32.xlu2 %v2740_v42, %s2550_s25 }
 0x3c6   :  { %v684_v47 = vpop.permute.xlu2 %683 }
 0x3c7   :  { %693 = vmatpush.bf16.msra.mxu3 %v684_v47 }
 0x3ca   :  { %2251 = vmatmul.msk.bf16.vlgmr.msra.gmra.mxu3 %vm427_vm0, %v2628_v14 }
 0x3cb   :  { %710 = vmatpush.bf16.msrb.mxu3 %v2690_v44 }
 0x3ce   :  { %v733_v15 = vpop.permute.xlu2 %732 }
 0x3cf   :  { %711 = vmatpush.bf16.msrb.mxu3 %v2696_v45 }
 0x3dc   :  { %v735_v16 = vpop.permute.xlu0 %734 }
 0x3dd   :  { %v264_v54 = vpop.f32.mrf.mxu0 }
 0x44d   :  { %v695_v55 = vpop.f32.mrf.mxu3 }
 0x455   :  { %v697_v56 = vpop.f32.mrf.mxu3 }
 0x456   :  { %v700_v57 = vpack.c.bf16 %v697_v56, %v695_v55  ;;  %v266_v56 = vpop.f32.mrf.mxu0 }
 0x458   :  { %2252 = vmatmul.msk.bf16.vlgmr.msrb.gmra.mxu3 %vm578_vm2, %v700_v57 }
 0x4db   :  { %v713_v61 = vpop.f32.mrf.mxu3 }
 0x4dc   :  { %v718_v62 = vadd.f32 %v713_v61, %v479_v60 }
 0x4de   :  { %v720_v63 = vsub.f32 0.0, %v718_v62 }
 0x4e0   :  { %v722_v2 = vmul.f32 1.442695, %v720_v63 }
 0x4e2   :  { %2347 = vpow2.f32 %v722_v2 }
 0x4e3   :  { %v715_v4 = vpop.f32.mrf.mxu3 }
 0x4e4   :  { %v719_v5 = vadd.f32 %v715_v4, %v481_v3 }
 0x4e6   :  { %v721_v6 = vsub.f32 0.0, %v719_v5  ;;  %v402_v5 = vld [vmem:[#allocation2 + $0x28] sm:$0xff] }
 0x4e8   :  { %v724_v7 = vmul.f32 1.442695, %v721_v6  ;;  %v2348_v8 = vpop.eup %2347 }
 0x4e9   :  { %v726_v9 = vadd.f32 1.0, %v2348_v8 }
 0x4ea   :  { %2349 = vpow2.f32 %v724_v7 }
 0x4eb   :  { %2351 = vrcp.f32 %v726_v9 }
 0x4f0   :  { %v2350_v10 = vpop.eup %2349 }
 0x4f1   :  { %v727_v11 = vadd.f32 1.0, %v2350_v10  ;;  %v2352_v12 = vpop.eup %2351 }
 0x4f2   :  { %v738_v19 = vmul.f32 %v2352_v12, %v733_v15  ;;  %v787_v48 = vsub.f32 1.0, %v2352_v12  ;;  %v785_v50 = vmul.f32 %v2352_v12, %v2740_v42  ;;  %v333_v42 = vpop.f32.mrf.mxu1 }
 0x4f3   :  { %2353 = vrcp.f32 %v727_v11  ;;  %v334_v55 = vadd.f32 %v333_v42, %v264_v54  ;;  %v2309_v54 = vld [vmem:[%s3290_s1 + $0x64] sm:$0xf0]  ;;  %v2308_v42 = vld [vmem:[%s3290_s1 + $0x64] sm:$0xf] }
 0x4f9   :  { %v2354_v13 = vpop.eup %2353 }
 0x4fa   :  { %v739_v20 = vmul.f32 %v2354_v13, %v735_v16  ;;  %v788_v39 = vsub.f32 1.0, %v2354_v13  ;;  %v786_v41 = vmul.f32 %v2354_v13, %v2742_v43  ;;  %v335_v57 = vpop.f32.mrf.mxu1 }
 0x4fb   :  { %v336_v58 = vadd.f32 %v335_v57, %v266_v56  ;;  %v2155_v56 = vld [vmem:[%s3290_s1 + $0x68] sm:$0xf0] }
 0x4fc   :  { %v740_v21 = vpack.c.bf16 %v739_v20, %v738_v19  ;;  %v2158_v57 = vor.u32 %v2308_v42, %v2155_v56 }
 0x4fd   :  { %v387_v59 = vpack.c.bf16 %v336_v58, %v334_v55  ;;  %v2161_v58 = vld [vmem:[%s3290_s1 + $0x70] sm:$0xf] }
 0x4fe   :  { %748 = vmatpush.bf16.msra.mxu3 %v740_v21 }
 0x4ff   :  { %2217 = vmatmul.msk.bf16.gmra.mxu2 %vm427_vm0, %v387_v59  ;;  %v2311_v59 = vld [vmem:[%s3290_s1 + $0x74] sm:$0xf0] }
 0x501   :  { %2253 = vmatmul.msk.bf16.vlgmr.msra.gmra.mxu3 %vm427_vm0, %v2628_v14 }
 0x502   :  { %765 = vmatpush.bf16.msrb.mxu3 %v2713_v17 }
 0x506   :  { %766 = vmatpush.bf16.msrb.mxu3 %v2719_v18 }
 0x582   :  { %v483_v63 = vpop.f32.mrf.mxu2 }
 0x583   :  { %v2798_v1 = vadd.f32 %v483_v63, %v401_v0 }
 0x584   :  { %v750_v22 = vpop.f32.mrf.mxu3 }
 0x58a   :  { %v485_v6 = vpop.f32.mrf.mxu2 }
 0x58b   :  { %v2801_v8 = vadd.f32 %v485_v6, %v402_v5  ;;  %v2312_v5 = vld [vmem:[%s3290_s1 + $0x84] sm:$0xf] }
 0x58c   :  { %v752_v23 = vpop.f32.mrf.mxu3 }
 0x58d   :  { %v755_v24 = vpack.c.bf16 %v752_v23, %v750_v22 }
 0x58f   :  { %2254 = vmatmul.msk.bf16.vlgmr.msrb.gmra.mxu3 %vm578_vm2, %v755_v24 }
 0x612   :  { %v768_v25 = vpop.f32.mrf.mxu3 }
 0x613   :  { %775 = vrot.lane.b32.xlu1 %v768_v25, %s2549_s24 }
 0x61a   :  { %v770_v26 = vpop.f32.mrf.mxu3 }
 0x61b   :  { %777 = vrot.lane.b32.xlu2 %v770_v26, %s2549_s24 }
 0x675   :  { %v778_v27 = vpop.permute.xlu2 %777 }
 0x676   :  { %v782_v28 = vadd.f32 %v778_v27, %v481_v3 }
 0x678   :  { %2355 = vtanh.f32 %v782_v28 }
 0x67e   :  { %v2356_v29 = vpop.eup %2355 }
 0x67f   :  { %793 = vrot.lane.b32.xlu1 %v2356_v29, %s2550_s25 }
 0x685   :  { %v776_v30 = vpop.permute.xlu1 %775 }
 0x686   :  { %v781_v31 = vadd.f32 %v776_v30, %v479_v60  ;;  %v2129_v30 = vld [vmem:[%s3290_s1 + $0x30] sm:$0xf] }
 0x688   :  { %2357 = vtanh.f32 %v781_v31  ;;  %v2303_v31 = vld [vmem:[%s3290_s1 + $0x34] sm:$0xf0] }
 0x68e   :  { %v2358_v32 = vpop.eup %2357 }
 0x68f   :  { %791 = vrot.lane.b32.xlu0 %v2358_v32, %s2550_s25  ;;  %v2302_v32 = vld [vmem:[%s3290_s1 + $0x34] sm:$0xf] }
 0x6f1   :  { %v794_v40 = vpop.permute.xlu1 %793 }
 0x6f2   :  { %v798_v46 = vmul.f32 %v794_v40, %v788_v39  ;;  %v2142_v39 = vor.u32 %v2304_v36, %v2139_v37 }
 0x6f4   :  { %v2780_v47 = vadd.f32 %v798_v46, %v786_v41  ;;  %v2145_v41 = vld [vmem:[%s3290_s1 + $0x50] sm:$0xf]  ;;  %v2307_v46 = vld [vmem:[%s3290_s1 + $0x54] sm:$0xf0] }
 0x6f6   :  { %854 = vrot.lane.b32.xlu1 %v2780_v47, %s2550_s25 }
 0x701   :  { %v792_v49 = vpop.permute.xlu0 %791 }
 0x702   :  { %v797_v51 = vmul.f32 %v792_v49, %v787_v48  ;;  %v2306_v48 = vld [vmem:[%s3290_s1 + $0x54] sm:$0xf]  ;;  %v2147_v49 = vld [vmem:[%s3290_s1 + $0x58] sm:$0xf0] }
 0x704   :  { %v2785_v52 = vadd.f32 %v797_v51, %v785_v50  ;;  %v2146_v51 = vor.u32 %v2307_v46, %v2145_v41  ;;  %v2319_v46 = vld [vmem:[%s3290_s1 + $0xb4] sm:$0xf0] }
 0x706   :  { %852 = vrot.lane.b32.xlu0 %v2785_v52, %s2550_s25  ;;  %v801_v53 = vpack.c.bf16 %v2780_v47, %v2785_v52 }
 0x708   :  { %803 = vrot.lane.b32.xlu2 %v801_v53, %s2550_s25  ;;  %v2150_v53 = vor.u32 %v2306_v48, %v2147_v49 }
 0x762   :  { %v804_v43 = vpop.permute.xlu2 %803 }
 0x763   :  { %813 = vmatpush.bf16.msra.mxu3 %v804_v43  ;;  %v2153_v43 = vld [vmem:[%s3290_s1 + $0x60] sm:$0xf] }
 0x764   :  { %v2154_v55 = vor.u32 %v2309_v54, %v2153_v43 }
 0x766   :  { %2255 = vmatmul.msk.bf16.vlgmr.msra.gmra.mxu3 %vm427_vm0, %v2628_v14 }
 0x767   :  { %830 = vmatpush.bf16.msrb.mxu3 %v2690_v44 }
 0x768   :  { %v855_v22 = vpop.permute.xlu1 %854 }
 0x76b   :  { %831 = vmatpush.bf16.msrb.mxu3 %v2696_v45 }
 0x778   :  { %v853_v23 = vpop.permute.xlu0 %852 }
 0x7e9   :  { %v815_v60 = vpop.f32.mrf.mxu3 }
 0x7f1   :  { %v817_v61 = vpop.f32.mrf.mxu3 }
 0x7f2   :  { %v820_v62 = vpack.c.bf16 %v817_v61, %v815_v60  ;;  %v2310_v60 = vld [vmem:[%s3290_s1 + $0x74] sm:$0xf]  ;;  %v2163_v61 = vld [vmem:[%s3290_s1 + $0x78] sm:$0xf0] }
 0x7f3   :  { %v2166_v63 = vor.u32 %v2310_v60, %v2163_v61 }
 0x7f4   :  { %2256 = vmatmul.msk.bf16.vlgmr.msrb.gmra.mxu3 %vm578_vm2, %v820_v62  ;;  %v2162_v62 = vor.u32 %v2311_v59, %v2161_v58 }
 0x877   :  { %v833_v2 = vpop.f32.mrf.mxu3 }
 0x878   :  { %v838_v3 = vadd.f32 %v833_v2, %v2798_v1 }
 0x87a   :  { %v840_v4 = vsub.f32 0.0, %v838_v3  ;;  %v2169_v3 = vld [vmem:[%s3290_s1 + $0x80] sm:$0xf] }
 0x87c   :  { %v842_v7 = vmul.f32 1.442695, %v840_v4  ;;  %v2313_v4 = vld [vmem:[%s3290_s1 + $0x84] sm:$0xf0] }
 0x87d   :  { %v2170_v6 = vor.u32 %v2313_v4, %v2169_v3 }
 0x87e   :  { %2359 = vpow2.f32 %v842_v7  ;;  %v2171_v7 = vld [vmem:[%s3290_s1 + $0x88] sm:$0xf0] }
 0x87f   :  { %v835_v9 = vpop.f32.mrf.mxu3 }
 0x880   :  { %v839_v10 = vadd.f32 %v835_v9, %v2801_v8  ;;  %v2174_v9 = vor.u32 %v2312_v5, %v2171_v7 }
 0x882   :  { %v841_v11 = vsub.f32 0.0, %v839_v10 }
 0x884   :  { %v844_v12 = vmul.f32 1.442695, %v841_v11  ;;  %v2360_v13 = vpop.eup %2359  ;;  %v2177_v11 = vld [vmem:[%s3290_s1 + $0x90] sm:$0xf] }
 0x885   :  { %v846_v15 = vadd.f32 1.0, %v2360_v13 }
 0x886   :  { %2361 = vpow2.f32 %v844_v12  ;;  %v2315_v12 = vld [vmem:[%s3290_s1 + $0x94] sm:$0xf0] }
 0x887   :  { %2363 = vrcp.f32 %v846_v15  ;;  %v2314_v15 = vld [vmem:[%s3290_s1 + $0x94] sm:$0xf] }
 0x88c   :  { %v2362_v16 = vpop.eup %2361 }
 0x88d   :  { %v847_v19 = vadd.f32 1.0, %v2362_v16  ;;  %v2804_v20 = vpop.eup %2363  ;;  %v2179_v16 = vld [vmem:[%s3290_s1 + $0x98] sm:$0xf0] }
 0x88e   :  { %v858_v24 = vmul.f32 %v2804_v20, %v853_v23  ;;  %v907_v4 = vsub.f32 1.0, %v2804_v20 }
 0x88f   :  { %2365 = vrcp.f32 %v847_v19  ;;  %v2178_v19 = vor.u32 %v2315_v12, %v2177_v11 }
 0x895   :  { %v2806_v21 = vpop.eup %2365 }
 0x896   :  { %v859_v25 = vmul.f32 %v2806_v21, %v855_v22  ;;  %v2182_v22 = vor.u32 %v2314_v15, %v2179_v16  ;;  %v908_v15 = vsub.f32 1.0, %v2806_v21 }
 0x898   :  { %v860_v26 = vpack.c.bf16 %v859_v25, %v858_v24 }
 0x89a   :  { %868 = vmatpush.bf16.msra.mxu3 %v860_v26 }
 0x89d   :  { %2257 = vmatmul.msk.bf16.vlgmr.msra.gmra.mxu3 %vm427_vm0, %v2628_v14 }
 0x89e   :  { %885 = vmatpush.bf16.msrb.mxu3 %v2713_v17 }
 0x8a2   :  { %886 = vmatpush.bf16.msrb.mxu3 %v2719_v18 }
 0x8a6   :  { %950 = vmatpush.bf16.msra.mxu3 %v2690_v44  ;;  %v2130_v44 = vor.u32 %v2303_v31, %v2129_v30 }
 0x8a8   :  { %268 = vmatmul.bf16.gmra.mxu0 %v2130_v44  ;;  %v2316_v44 = vld [vmem:[%s3290_s1 + $0xa4] sm:$0xf] }
 0x8aa   :  { %951 = vmatpush.bf16.msra.mxu3 %v2696_v45  ;;  %v2131_v45 = vld [vmem:[%s3290_s1 + $0x38] sm:$0xf0] }
 0x8ab   :  { %v2134_v33 = vor.u32 %v2302_v32, %v2131_v45  ;;  %v2187_v45 = vld [vmem:[%s3290_s1 + $0xa8] sm:$0xf0] }
 0x8ac   :  { %v2190_v35 = vor.u32 %v2316_v44, %v2187_v45 }
 0x8ad   :  { %2202 = vmatmul.msk.bf16.gmra.mxu1 %vm208_vm1, %v2134_v33 }
 0x8b8   :  { %273 = vmatmul.bf16.gmra.mxu0 %v2138_v38 }
 0x8bd   :  { %2203 = vmatmul.msk.bf16.gmra.mxu1 %vm208_vm1, %v2142_v39 }
 0x8c8   :  { %278 = vmatmul.bf16.gmra.mxu0 %v2146_v51  ;;  %v2195_v51 = vld [vmem:[%s3290_s1 + $0xb8] sm:$0xf0] }
 0x8cd   :  { %2204 = vmatmul.msk.bf16.gmra.mxu1 %vm208_vm1, %v2150_v53 }
 0x8d8   :  { %283 = vmatmul.bf16.gmra.mxu0 %v2154_v55 }
 0x8dd   :  { %2205 = vmatmul.msk.bf16.gmra.mxu1 %vm208_vm1, %v2158_v57 }
 0x8e8   :  { %288 = vmatmul.bf16.gmra.mxu0 %v2162_v62 }
 0x8ed   :  { %2206 = vmatmul.msk.bf16.gmra.mxu1 %vm208_vm1, %v2166_v63 }
 0x8f8   :  { %293 = vmatmul.bf16.gmra.mxu0 %v2170_v6 }
 0x8fd   :  { %2207 = vmatmul.msk.bf16.gmra.mxu1 %vm208_vm1, %v2174_v9 }
 0x908   :  { %298 = vmatmul.bf16.gmra.mxu0 %v2178_v19 }
 0x90d   :  { %2208 = vmatmul.msk.bf16.gmra.mxu1 %vm208_vm1, %v2182_v22 }
 0x91d   :  { %2209 = vmatmul.msk.bf16.gmra.mxu1 %vm208_vm1, %v2190_v35 }
 0x920   :  { %v870_v27 = vpop.f32.mrf.mxu3 }
 0x925   :  { %v269_v10 = vpop.f32.mrf.mxu0 }
 0x928   :  { %v872_v28 = vpop.f32.mrf.mxu3 }
 0x929   :  { %v875_v29 = vpack.c.bf16 %v872_v28, %v870_v27  ;;  %v2185_v28 = vld [vmem:[%s3290_s1 + $0xa0] sm:$0xf] }
 0x92a   :  { %v338_v13 = vpop.f32.mrf.mxu1 }
 0x92b   :  { %2258 = vmatmul.msk.bf16.vlgmr.msrb.gmra.mxu3 %vm578_vm2, %v875_v29  ;;  %v339_v23 = vadd.f32 %v338_v13, %v269_v10  ;;  %v2317_v29 = vld [vmem:[%s3290_s1 + $0xa4] sm:$0xf0] }
 0x92c   :  { %v2186_v34 = vor.u32 %v2317_v29, %v2185_v28 }
 0x92d   :  { %v271_v24 = vpop.f32.mrf.mxu0 }
 0x92e   :  { %303 = vmatmul.bf16.gmra.mxu0 %v2186_v34 }
 0x932   :  { %v340_v25 = vpop.f32.mrf.mxu1 }
 0x933   :  { %v341_v26 = vadd.f32 %v340_v25, %v271_v24 }
 0x935   :  { %v388_v27 = vpack.c.bf16 %v341_v26, %v339_v23  ;;  %v274_v30 = vpop.f32.mrf.mxu0  ;;  %v906_v23 = vmul.f32 %v2806_v21, %v2780_v47 }
 0x937   :  { %2218 = vmatmul.msk.bf16.gmra.mxu2 %vm427_vm0, %v388_v27 }
 0x93a   :  { %v343_v31 = vpop.f32.mrf.mxu1 }
 0x93b   :  { %v344_v36 = vadd.f32 %v343_v31, %v274_v30 }
 0x93d   :  { %v276_v37 = vpop.f32.mrf.mxu0 }
 0x942   :  { %v345_v38 = vpop.f32.mrf.mxu1 }
 0x943   :  { %v346_v39 = vadd.f32 %v345_v38, %v276_v37 }
 0x945   :  { %v389_v41 = vpack.c.bf16 %v346_v39, %v344_v36  ;;  %v279_v48 = vpop.f32.mrf.mxu0 }
 0x947   :  { %2219 = vmatmul.msk.bf16.gmra.mxu2 %vm427_vm0, %v389_v41 }
 0x94a   :  { %v348_v49 = vpop.f32.mrf.mxu1 }
 0x94b   :  { %v349_v54 = vadd.f32 %v348_v49, %v279_v48 }
 0x94d   :  { %v281_v42 = vpop.f32.mrf.mxu0 }
 0x952   :  { %v350_v55 = vpop.f32.mrf.mxu1 }
 0x953   :  { %v351_v56 = vadd.f32 %v350_v55, %v281_v42 }
 0x955   :  { %v390_v57 = vpack.c.bf16 %v351_v56, %v349_v54  ;;  %v284_v58 = vpop.f32.mrf.mxu0 }
 0x957   :  { %2220 = vmatmul.msk.bf16.gmra.mxu2 %vm427_vm0, %v390_v57 }
 0x95a   :  { %v353_v59 = vpop.f32.mrf.mxu1 }
 0x95b   :  { %v354_v60 = vadd.f32 %v353_v59, %v284_v58 }
 0x95d   :  { %v286_v61 = vpop.f32.mrf.mxu0 }
 0x962   :  { %v355_v62 = vpop.f32.mrf.mxu1 }
 0x963   :  { %v356_v63 = vadd.f32 %v355_v62, %v286_v61 }
 0x96a   :  { %v358_v3 = vpop.f32.mrf.mxu1 }
 0x972   :  { %v360_v9 = vpop.f32.mrf.mxu1 }
 0x97a   :  { %v363_v22 = vpop.f32.mrf.mxu1 }
 0x982   :  { %v365_v27 = vpop.f32.mrf.mxu1 }
 0x98a   :  { %v368_v47 = vpop.f32.mrf.mxu1 }
 0x9ae   :  { %v888_v40 = vpop.f32.mrf.mxu3 }
 0x9af   :  { %895 = vrot.lane.b32.xlu2 %v888_v40, %s2549_s24 }
 0x9b6   :  { %v890_v50 = vpop.f32.mrf.mxu3 }
 0x9b7   :  { %897 = vrot.lane.b32.xlu0 %v890_v50, %s2549_s24  ;;  %v2318_v50 = vld [vmem:[%s3290_s1 + $0xb4] sm:$0xf] }
 0x9b8   :  { %v2198_v43 = vor.u32 %v2318_v50, %v2195_v51 }
 0x9ba   :  { %2210 = vmatmul.msk.bf16.gmra.mxu1 %vm208_vm1, %v2198_v43  ;;  %v488_v51 = vpop.f32.mrf.mxu2 }
 0xa09   :  { %v896_v0 = vpop.permute.xlu2 %895 }
 0xa0a   :  { %v901_v2 = vadd.f32 %v896_v0, %v2798_v1  ;;  %v391_v0 = vpack.c.bf16 %v356_v63, %v354_v60 }
 0xa0c   :  { %2367 = vtanh.f32 %v901_v2  ;;  %2221 = vmatmul.msk.bf16.gmra.mxu2 %vm427_vm0, %v391_v0  ;;  %v289_v2 = vpop.f32.mrf.mxu0 }
 0xa0d   :  { %v359_v5 = vadd.f32 %v358_v3, %v289_v2 }
 0xa12   :  { %v2368_v1 = vpop.eup %2367 }
 0xa13   :  { %911 = vrot.lane.b32.xlu1 %v2368_v1, %s2550_s25  ;;  %v905_v1 = vmul.f32 %v2804_v20, %v2785_v52 }
 0xa14   :  { %v291_v6 = vpop.f32.mrf.mxu0 }
 0xa15   :  { %v361_v11 = vadd.f32 %v360_v9, %v291_v6  ;;  %v403_v9 = vld [vmem:[#allocation2 + $0x30] sm:$0xff] }
 0xa17   :  { %v392_v13 = vpack.c.bf16 %v361_v11, %v359_v5 }
 0xa1c   :  { %2222 = vmatmul.msk.bf16.gmra.mxu2 %vm427_vm0, %v392_v13  ;;  %v294_v16 = vpop.f32.mrf.mxu0 }
 0xa1d   :  { %v364_v25 = vadd.f32 %v363_v22, %v294_v16 }
 0xa24   :  { %v296_v26 = vpop.f32.mrf.mxu0 }
 0xa25   :  { %v366_v28 = vadd.f32 %v365_v27, %v296_v26 }
 0xa27   :  { %v393_v29 = vpack.c.bf16 %v366_v28, %v364_v25 }
 0xa29   :  { %v898_v32 = vpop.permute.xlu0 %897 }
 0xa2a   :  { %v902_v33 = vadd.f32 %v898_v32, %v2801_v8  ;;  %v2193_v8 = vld [vmem:[%s3290_s1 + $0xb0] sm:$0xf]  ;;  %v370_v32 = vpop.f32.mrf.mxu1 }
 0xa2b   :  { %v2194_v53 = vor.u32 %v2319_v46, %v2193_v8 }
 0xa2c   :  { %2369 = vtanh.f32 %v902_v33  ;;  %2223 = vmatmul.msk.bf16.gmra.mxu2 %vm427_vm0, %v393_v29  ;;  %v299_v30 = vpop.f32.mrf.mxu0 }
 0xa2d   :  { %308 = vmatmul.bf16.gmra.mxu0 %v2194_v53  ;;  %v369_v21 = vadd.f32 %v368_v47, %v299_v30  ;;  %v490_v53 = vpop.f32.mrf.mxu2 }
 0xa32   :  { %v2370_v40 = vpop.eup %2369  ;;  %v373_v34 = vpop.f32.mrf.mxu1 }
 0xa33   :  { %913 = vrot.lane.b32.xlu2 %v2370_v40, %s2550_s25 }
 0xa34   :  { %v301_v31 = vpop.f32.mrf.mxu0 }
 0xa35   :  { %v371_v44 = vadd.f32 %v370_v32, %v301_v31  ;;  %v2966_v43 = vpop.f32.mrf.mxu2 }
 0xa37   :  { %v394_v45 = vpack.c.bf16 %v371_v44, %v369_v21 }
 0xa3a   :  { %v375_v37 = vpop.f32.mrf.mxu1 }
 0xa3c   :  { %2224 = vmatmul.msk.bf16.gmra.mxu2 %vm427_vm0, %v394_v45  ;;  %v304_v33 = vpop.f32.mrf.mxu0  ;;  %v3008_v45 = vld [vmem:[%s3291_s2 + $0x28] sm:$0xff] }
 0xa3d   :  { %v374_v35 = vadd.f32 %v373_v34, %v304_v33  ;;  %v2968_v54 = vpop.f32.mrf.mxu2 }
 0xa42   :  { %v378_v41 = vpop.f32.mrf.mxu1 }
 0xa44   :  { %v306_v36 = vpop.f32.mrf.mxu0 }
 0xa45   :  { %v376_v38 = vadd.f32 %v375_v37, %v306_v36  ;;  %v2970_v42 = vpop.f32.mrf.mxu2 }
 0xa47   :  { %v395_v39 = vpack.c.bf16 %v376_v38, %v374_v35 }
 0xa4a   :  { %v380_v48 = vpop.f32.mrf.mxu1 }
 0xa4c   :  { %2225 = vmatmul.msk.bf16.gmra.mxu2 %vm427_vm0, %v395_v39 }
 0xa4d   :  { %v2976_v56 = vpop.f32.mrf.mxu2 }
 0xa85   :  { %v912_v7 = vpop.permute.xlu1 %911 }
 0xa86   :  { %v917_v10 = vmul.f32 %v912_v7, %v907_v4 }
 0xa88   :  { %v2947_v12 = vadd.f32 %v917_v10, %v905_v1  ;;  %v489_v1 = vadd.f32 %v488_v51, %v403_v9 }
 0xa8a   :  { %972 = vrot.lane.b32.xlu1 %v2947_v12, %s2550_s25 }
 0xa8d   :  { %v914_v19 = vpop.permute.xlu2 %913 }
 0xa8e   :  { %v918_v24 = vmul.f32 %v914_v19, %v908_v15  ;;  %v404_v15 = vld [vmem:[#allocation2 + $0x38] sm:$0xff] }
 0xa8f   :  { %v2980_v57 = vpop.f32.mrf.mxu2  ;;  %v491_v19 = vadd.f32 %v490_v53, %v404_v15  ;;  %v3044_v15 = vld [vmem:[%s3291_s2 + $0x8] sm:$0xff] }
 0xa90   :  { %v2955_v52 = vadd.f32 %v918_v24, %v906_v23 }
 0xa92   :  { %974 = vrot.lane.b32.xlu2 %v2955_v52, %s2550_s25  ;;  %v921_v20 = vpack.c.bf16 %v2955_v52, %v2947_v12 }
 0xa94   :  { %923 = vrot.lane.b32.xlu0 %v921_v20, %s2550_s25 }
 0xa97   :  { %v2982_v58 = vpop.f32.mrf.mxu2 }
 0xa9f   :  { %v2984_v59 = vpop.f32.mrf.mxu2 }
 0xaa7   :  { %v2986_v60 = vpop.f32.mrf.mxu2 }
 0xaaa   :  { %v309_v40 = vpop.f32.mrf.mxu0 }
 0xaab   :  { %v379_v8 = vadd.f32 %v378_v41, %v309_v40 }
 0xaaf   :  { %v2988_v61 = vpop.f32.mrf.mxu2 }
 0xab2   :  { %v311_v46 = vpop.f32.mrf.mxu0 }
 0xab3   :  { %v381_v49 = vadd.f32 %v380_v48, %v311_v46 }
 0xab5   :  { %v396_v50 = vpack.c.bf16 %v381_v49, %v379_v8 }
 0xab7   :  { %2226 = vmatmul.msk.bf16.gmra.mxu2 %vm427_vm0, %v396_v50  ;;  %v2990_v62 = vpop.f32.mrf.mxu2 }
 0xaec   :  { %v975_v47 = vpop.permute.xlu2 %974 }
 0xafc   :  { %v973_v21 = vpop.permute.xlu1 %972 }
 0xb06   :  { %v924_v55 = vpop.permute.xlu0 %923 }
 0xb07   :  { %933 = vmatpush.bf16.msrb.mxu2 %v924_v55 }
 0xb0a   :  { %2259 = vmatmul.msk.bf16.vlgmr.msrb.gmra.mxu2 %vm427_vm0, %v2628_v14  ;;  %v2992_v14 = vpop.f32.mrf.mxu2 }
 0xb0b   :  { %1005 = vmatpush.bf16.msra.mxu2 %v2713_v17 }
 0xb0f   :  { %1006 = vmatpush.bf16.msra.mxu2 %v2719_v18 }
 0xb12   :  { %v2994_v63 = vpop.f32.mrf.mxu2 }
 0xb13   :  { %1125 = vmatpush.bf16.msrb.mxu2 %v2713_v17 }
 0xb17   :  { %1126 = vmatpush.bf16.msrb.mxu2 %v2719_v18 }
 0xb1a   :  { %v2996_v0 = vpop.f32.mrf.mxu2 }
 0xb22   :  { %v2998_v2 = vpop.f32.mrf.mxu2 }
 0xb3a   :  { %v3000_v3 = vpop.f32.mrf.mxu2 }
 0xb42   :  { %v3002_v4 = vpop.f32.mrf.mxu2 }
 0xb8d   :  { %v935_v5 = vpop.f32.mrf.mxu2 }
 0xb95   :  { %v937_v6 = vpop.f32.mrf.mxu2 }
 0xb96   :  { %v940_v7 = vpack.c.bf16 %v937_v6, %v935_v5 }
 0xb98   :  { %2260 = vmatmul.msk.bf16.vlgmr.msra.gmra.mxu3 %vm578_vm2, %v940_v7 }
 0xc1b   :  { %v953_v10 = vpop.f32.mrf.mxu3 }
 0xc1c   :  { %v958_v11 = vadd.f32 %v953_v10, %v489_v1 }
 0xc1e   :  { %v960_v13 = vsub.f32 0.0, %v958_v11 }
 0xc20   :  { %v962_v16 = vmul.f32 1.442695, %v960_v13 }
 0xc22   :  { %2371 = vpow2.f32 %v962_v16  ;;  %v405_v16 = vld [vmem:[#allocation2 + $0x40] sm:$0xff] }
 0xc23   :  { %v955_v22 = vpop.f32.mrf.mxu3 }
 0xc24   :  { %v959_v23 = vadd.f32 %v955_v22, %v491_v19 }
 0xc26   :  { %v961_v24 = vsub.f32 0.0, %v959_v23 }
 0xc28   :  { %v964_v20 = vmul.f32 1.442695, %v961_v24  ;;  %v2372_v25 = vpop.eup %2371 }
 0xc29   :  { %v966_v26 = vadd.f32 1.0, %v2372_v25 }
 0xc2a   :  { %2373 = vpow2.f32 %v964_v20  ;;  %v406_v20 = vld [vmem:[#allocation2 + $0x48] sm:$0xff] }
 0xc2b   :  { %2375 = vrcp.f32 %v966_v26  ;;  %v496_v26 = vadd.f32 %v2968_v54, %v406_v20 }
 0xc30   :  { %v2374_v27 = vpop.eup %2373 }
 0xc31   :  { %v967_v28 = vadd.f32 1.0, %v2374_v27  ;;  %v2376_v29 = vpop.eup %2375 }
 0xc32   :  { %v978_v31 = vmul.f32 %v2376_v29, %v973_v21  ;;  %v1027_v48 = vsub.f32 1.0, %v2376_v29  ;;  %v1025_v50 = vmul.f32 %v2376_v29, %v2947_v12 }
 0xc33   :  { %2377 = vrcp.f32 %v967_v28 }
 0xc39   :  { %v2378_v30 = vpop.eup %2377 }
 0xc3a   :  { %v979_v32 = vmul.f32 %v2378_v30, %v975_v47  ;;  %v1028_v55 = vsub.f32 1.0, %v2378_v30  ;;  %v1026_v6 = vmul.f32 %v2378_v30, %v2955_v52  ;;  %v3038_v52 = vld [vmem:[%s3291_s2 + $0x10] sm:$0xff] }
 0xc3c   :  { %v980_v44 = vpack.c.bf16 %v979_v32, %v978_v31 }
 0xc3e   :  { %988 = vmatpush.bf16.msrb.mxu1 %v980_v44 }
 0xc41   :  { %2261 = vmatmul.msk.bf16.vlgmr.msrb.gmra.mxu1 %vm427_vm0, %v3008_v45 }
 0xcbe   :  { %v990_v33 = vpop.f32.mrf.mxu1 }
 0xcc6   :  { %v992_v34 = vpop.f32.mrf.mxu1 }
 0xcc7   :  { %v995_v35 = vpack.c.bf16 %v992_v34, %v990_v33 }
 0xcc9   :  { %2262 = vmatmul.msk.bf16.vlgmr.msra.gmra.mxu2 %vm578_vm2, %v995_v35 }
 0xcca   :  { %1245 = vmatpush.bf16.msra.mxu2 %v2713_v17 }
 0xcce   :  { %1246 = vmatpush.bf16.msra.mxu2 %v2719_v18 }
 0xd4c   :  { %v1008_v36 = vpop.f32.mrf.mxu2 }
 0xd4d   :  { %1015 = vrot.lane.b32.xlu0 %v1008_v36, %s2549_s24 }
 0xd54   :  { %v1010_v37 = vpop.f32.mrf.mxu2 }
 0xd55   :  { %1017 = vrot.lane.b32.xlu1 %v1010_v37, %s2549_s24 }
 0xdbf   :  { %v1016_v38 = vpop.permute.xlu0 %1015 }
 0xdc0   :  { %v1021_v39 = vadd.f32 %v1016_v38, %v489_v1 }
 0xdc2   :  { %2379 = vtanh.f32 %v1021_v39 }
 0xdc7   :  { %v1018_v40 = vpop.permute.xlu1 %1017 }
 0xdc8   :  { %v2380_v41 = vpop.eup %2379  ;;  %v1022_v8 = vadd.f32 %v1018_v40, %v491_v19  ;;  %v494_v19 = vadd.f32 %v2966_v43, %v405_v16 }
 0xdc9   :  { %1031 = vrot.lane.b32.xlu2 %v2380_v41, %s2550_s25 }
 0xdca   :  { %2381 = vtanh.f32 %v1022_v8 }
 0xdd0   :  { %v2382_v46 = vpop.eup %2381 }
 0xdd1   :  { %1033 = vrot.lane.b32.xlu0 %v2382_v46, %s2550_s25 }
 0xe23   :  { %v1032_v49 = vpop.permute.xlu2 %1031 }
 0xe24   :  { %v1037_v51 = vmul.f32 %v1032_v49, %v1027_v48 }
 0xe26   :  { %v3020_v53 = vadd.f32 %v1037_v51, %v1025_v50 }
 0xe28   :  { %1092 = vrot.lane.b32.xlu2 %v3020_v53, %s2550_s25 }
 0xe43   :  { %v1034_v5 = vpop.permute.xlu0 %1033 }
 0xe44   :  { %v1038_v7 = vmul.f32 %v1034_v5, %v1028_v55 }
 0xe46   :  { %v3025_v9 = vadd.f32 %v1038_v7, %v1026_v6 }
 0xe48   :  { %1094 = vrot.lane.b32.xlu0 %v3025_v9, %s2550_s25  ;;  %v1041_v1 = vpack.c.bf16 %v3025_v9, %v3020_v53 }
 0xe4a   :  { %1043 = vrot.lane.b32.xlu1 %v1041_v1, %s2550_s25 }
 0xe82   :  { %v1093_v33 = vpop.permute.xlu2 %1092 }
 0xeba   :  { %v1095_v34 = vpop.permute.xlu0 %1094 }
 0xebc   :  { %v1044_v12 = vpop.permute.xlu1 %1043 }
 0xebd   :  { %1053 = vmatpush.bf16.msrb.mxu3 %v1044_v12 }
 0xec0   :  { %2263 = vmatmul.msk.bf16.vlgmr.msrb.gmra.mxu3 %vm427_vm0, %v3008_v45 }
 0xf43   :  { %v1055_v10 = vpop.f32.mrf.mxu3 }
 0xf4b   :  { %v1057_v11 = vpop.f32.mrf.mxu3 }
 0xf4c   :  { %v1060_v13 = vpack.c.bf16 %v1057_v11, %v1055_v10 }
 0xf4e   :  { %2264 = vmatmul.msk.bf16.vlgmr.msrb.gmra.mxu0 %vm578_vm2, %v1060_v13 }
 0xf4f   :  { %1310 = vmatpush.bf16.msrb.mxu0 %v3038_v52 }
 0xf53   :  { %1311 = vmatpush.bf16.msrb.mxu0 %v3044_v15 }
 0xfcb   :  { %v1073_v22 = vpop.f32.mrf.mxu0 }
 0xfcc   :  { %v1078_v23 = vadd.f32 %v1073_v22, %v494_v19 }
 0xfce   :  { %v1080_v24 = vsub.f32 0.0, %v1078_v23 }
 0xfd0   :  { %v1082_v25 = vmul.f32 1.442695, %v1080_v24 }
 0xfd2   :  { %2383 = vpow2.f32 %v1082_v25 }
 0xfd3   :  { %v1075_v27 = vpop.f32.mrf.mxu0 }
 0xfd4   :  { %v1079_v28 = vadd.f32 %v1075_v27, %v496_v26 }
 0xfd6   :  { %v1081_v29 = vsub.f32 0.0, %v1079_v28 }
 0xfd8   :  { %v1084_v30 = vmul.f32 1.442695, %v1081_v29  ;;  %v2384_v47 = vpop.eup %2383 }
 0xfd9   :  { %v1086_v21 = vadd.f32 1.0, %v2384_v47 }
 0xfda   :  { %2385 = vpow2.f32 %v1084_v30 }
 0xfdb   :  { %2387 = vrcp.f32 %v1086_v21 }
 0xfe0   :  { %v2386_v31 = vpop.eup %2385 }
 0xfe1   :  { %v1087_v32 = vadd.f32 1.0, %v2386_v31  ;;  %v2388_v43 = vpop.eup %2387 }
 0xfe2   :  { %v1098_v35 = vmul.f32 %v2388_v43, %v1093_v33  ;;  %v1147_v7 = vsub.f32 1.0, %v2388_v43  ;;  %v1145_v12 = vmul.f32 %v2388_v43, %v3020_v53  ;;  %v407_v53 = vld [vmem:[#allocation2 + $0x50] sm:$0xff] }
 0xfe3   :  { %2389 = vrcp.f32 %v1087_v32  ;;  %v499_v23 = vadd.f32 %v2970_v42, %v407_v53 }
 0xfe9   :  { %v2390_v44 = vpop.eup %2389 }
 0xfea   :  { %v1099_v36 = vmul.f32 %v2390_v44, %v1095_v34  ;;  %v1146_v55 = vmul.f32 %v2390_v44, %v3025_v9 }
 0xfec   :  { %v1100_v37 = vpack.c.bf16 %v1099_v36, %v1098_v35 }
 0xfee   :  { %1108 = vmatpush.bf16.msra.mxu1 %v1100_v37 }
 0xff1   :  { %2265 = vmatmul.msk.bf16.vlgmr.msra.gmra.mxu1 %vm427_vm0, %v3008_v45 }
0x106e   :  { %v1110_v54 = vpop.f32.mrf.mxu1 }
0x1076   :  { %v1112_v38 = vpop.f32.mrf.mxu1 }
0x1077   :  { %v1115_v39 = vpack.c.bf16 %v1112_v38, %v1110_v54 }
0x1079   :  { %2266 = vmatmul.msk.bf16.vlgmr.msrb.gmra.mxu2 %vm578_vm2, %v1115_v39 }
0x107a   :  { %1365 = vmatpush.bf16.msrb.mxu2 %v2713_v17  ;;  %v1148_v17 = vsub.f32 1.0, %v2390_v44 }
0x107e   :  { %1366 = vmatpush.bf16.msrb.mxu2 %v2719_v18 }
0x10fc   :  { %v1128_v40 = vpop.f32.mrf.mxu2 }
0x10fd   :  { %1135 = vrot.lane.b32.xlu1 %v1128_v40, %s2549_s24  ;;  %v3084_v40 = vld [vmem:[%s3291_s2 + $0x20] sm:$0xff] }
0x1104   :  { %v1130_v41 = vpop.f32.mrf.mxu2 }
0x1105   :  { %1137 = vrot.lane.b32.xlu2 %v1130_v41, %s2549_s24  ;;  %v3090_v41 = vld [vmem:[%s3291_s2 + $0x18] sm:$0xff] }
0x115f   :  { %v1138_v8 = vpop.permute.xlu2 %1137 }
0x1160   :  { %v1142_v46 = vadd.f32 %v1138_v8, %v496_v26  ;;  %v408_v26 = vld [vmem:[#allocation2 + $0x58] sm:$0xff] }
0x1161   :  { %v501_v28 = vadd.f32 %v2976_v56, %v408_v26 }
0x1162   :  { %2391 = vtanh.f32 %v1142_v46 }
0x1168   :  { %v2392_v48 = vpop.eup %2391 }
0x1169   :  { %1153 = vrot.lane.b32.xlu1 %v2392_v48, %s2550_s25 }
0x116f   :  { %v1136_v49 = vpop.permute.xlu1 %1135 }
0x1170   :  { %v1141_v50 = vadd.f32 %v1136_v49, %v494_v19 }
0x1172   :  { %2393 = vtanh.f32 %v1141_v50 }
0x1178   :  { %v2394_v51 = vpop.eup %2393 }
0x1179   :  { %1151 = vrot.lane.b32.xlu0 %v2394_v51, %s2550_s25 }
0x11db   :  { %v1154_v18 = vpop.permute.xlu1 %1153 }
0x11dc   :  { %v1158_v5 = vmul.f32 %v1154_v18, %v1148_v17 }
0x11de   :  { %v3059_v6 = vadd.f32 %v1158_v5, %v1146_v55 }
0x11e0   :  { %1214 = vrot.lane.b32.xlu1 %v3059_v6, %s2550_s25 }
0x11eb   :  { %v1152_v1 = vpop.permute.xlu0 %1151 }
0x11ec   :  { %v1157_v10 = vmul.f32 %v1152_v1, %v1147_v7 }
0x11ee   :  { %v3064_v11 = vadd.f32 %v1157_v10, %v1145_v12 }
0x11f0   :  { %1212 = vrot.lane.b32.xlu0 %v3064_v11, %s2550_s25  ;;  %v1161_v13 = vpack.c.bf16 %v3059_v6, %v3064_v11 }
0x11f2   :  { %1163 = vrot.lane.b32.xlu2 %v1161_v13, %s2550_s25 }
0x124c   :  { %v1164_v9 = vpop.permute.xlu2 %1163 }
0x124d   :  { %1173 = vmatpush.bf16.msra.mxu3 %v1164_v9 }
0x1250   :  { %2267 = vmatmul.msk.bf16.vlgmr.msra.gmra.mxu3 %vm427_vm0, %v3008_v45 }
0x1252   :  { %v1215_v34 = vpop.permute.xlu1 %1214 }
0x1262   :  { %v1213_v35 = vpop.permute.xlu0 %1212 }
0x12d3   :  { %v1175_v16 = vpop.f32.mrf.mxu3 }
0x12db   :  { %v1177_v19 = vpop.f32.mrf.mxu3 }
0x12dc   :  { %v1180_v22 = vpack.c.bf16 %v1177_v19, %v1175_v16 }
0x12de   :  { %2268 = vmatmul.msk.bf16.vlgmr.msra.gmra.mxu0 %vm578_vm2, %v1180_v22 }
0x12df   :  { %1430 = vmatpush.bf16.msra.mxu0 %v3038_v52 }
0x12e3   :  { %1431 = vmatpush.bf16.msra.mxu0 %v3044_v15 }
0x135b   :  { %v1193_v24 = vpop.f32.mrf.mxu0 }
0x135c   :  { %v1198_v20 = vadd.f32 %v1193_v24, %v499_v23 }
0x135e   :  { %v1200_v25 = vsub.f32 0.0, %v1198_v20 }
0x1360   :  { %v1202_v27 = vmul.f32 1.442695, %v1200_v25 }
0x1362   :  { %2395 = vpow2.f32 %v1202_v27 }
0x1363   :  { %v1195_v29 = vpop.f32.mrf.mxu0 }
0x1364   :  { %v1199_v30 = vadd.f32 %v1195_v29, %v501_v28 }
0x1366   :  { %v1201_v47 = vsub.f32 0.0, %v1199_v30 }
0x1368   :  { %v1204_v21 = vmul.f32 1.442695, %v1201_v47  ;;  %v2396_v31 = vpop.eup %2395 }
0x1369   :  { %v1206_v32 = vadd.f32 1.0, %v2396_v31 }
0x136a   :  { %2397 = vpow2.f32 %v1204_v21 }
0x136b   :  { %2399 = vrcp.f32 %v1206_v32 }
0x1370   :  { %v2398_v43 = vpop.eup %2397 }
0x1371   :  { %v1207_v44 = vadd.f32 1.0, %v2398_v43  ;;  %v2400_v42 = vpop.eup %2399 }
0x1372   :  { %v1218_v36 = vmul.f32 %v2400_v42, %v1213_v35  ;;  %v1267_v55 = vsub.f32 1.0, %v2400_v42  ;;  %v1265_v7 = vmul.f32 %v2400_v42, %v3064_v11 }
0x1373   :  { %2401 = vrcp.f32 %v1207_v44 }
0x1379   :  { %v2402_v33 = vpop.eup %2401 }
0x137a   :  { %v1219_v37 = vmul.f32 %v2402_v33, %v1215_v34  ;;  %v1268_v10 = vsub.f32 1.0, %v2402_v33  ;;  %v1266_v9 = vmul.f32 %v2402_v33, %v3059_v6  ;;  %v409_v6 = vld [vmem:[#allocation2 + $0x60] sm:$0xff] }
0x137b   :  { %v504_v20 = vadd.f32 %v2980_v57, %v409_v6 }
0x137c   :  { %v1220_v54 = vpack.c.bf16 %v1219_v37, %v1218_v36 }
0x137e   :  { %1228 = vmatpush.bf16.msrb.mxu1 %v1220_v54 }
0x1381   :  { %2269 = vmatmul.msk.bf16.vlgmr.msrb.gmra.mxu1 %vm427_vm0, %v3008_v45 }
0x13fe   :  { %v1230_v56 = vpop.f32.mrf.mxu1 }
0x1406   :  { %v1232_v38 = vpop.f32.mrf.mxu1 }
0x1407   :  { %v1235_v39 = vpack.c.bf16 %v1232_v38, %v1230_v56 }
0x1409   :  { %2270 = vmatmul.msk.bf16.vlgmr.msra.gmra.mxu2 %vm578_vm2, %v1235_v39 }
0x140a   :  { %1485 = vmatpush.bf16.msra.mxu2 %v3084_v40 }
0x140e   :  { %1486 = vmatpush.bf16.msra.mxu2 %v3090_v41 }
0x148c   :  { %v1248_v8 = vpop.f32.mrf.mxu2 }
0x148d   :  { %1255 = vrot.lane.b32.xlu2 %v1248_v8, %s2549_s24 }
0x1494   :  { %v1250_v46 = vpop.f32.mrf.mxu2 }
0x1495   :  { %1257 = vrot.lane.b32.xlu0 %v1250_v46, %s2549_s24 }
0x14e7   :  { %v1256_v48 = vpop.permute.xlu2 %1255 }
0x14e8   :  { %v1261_v49 = vadd.f32 %v1256_v48, %v499_v23 }
0x14ea   :  { %2403 = vtanh.f32 %v1261_v49 }
0x14f0   :  { %v2404_v50 = vpop.eup %2403 }
0x14f1   :  { %1271 = vrot.lane.b32.xlu1 %v2404_v50, %s2550_s25 }
0x1507   :  { %v1258_v51 = vpop.permute.xlu0 %1257 }
0x1508   :  { %v1262_v17 = vadd.f32 %v1258_v51, %v501_v28  ;;  %v410_v28 = vld [vmem:[#allocation2 + $0x68] sm:$0xff] }
0x1509   :  { %v506_v30 = vadd.f32 %v2982_v58, %v410_v28  ;;  %v412_v28 = vld [vmem:[#allocation2 + $0x78] sm:$0xff] }
0x150a   :  { %2405 = vtanh.f32 %v1262_v17 }
0x1510   :  { %v2406_v18 = vpop.eup %2405 }
0x1511   :  { %1273 = vrot.lane.b32.xlu2 %v2406_v18, %s2550_s25 }
0x1563   :  { %v1272_v5 = vpop.permute.xlu1 %1271 }
0x1564   :  { %v1277_v1 = vmul.f32 %v1272_v5, %v1267_v55 }
0x1566   :  { %v3098_v12 = vadd.f32 %v1277_v1, %v1265_v7 }
0x1568   :  { %1332 = vrot.lane.b32.xlu1 %v3098_v12, %s2550_s25 }
0x156b   :  { %v1274_v13 = vpop.permute.xlu2 %1273 }
0x156c   :  { %v1278_v16 = vmul.f32 %v1274_v13, %v1268_v10 }
0x156e   :  { %v3103_v19 = vadd.f32 %v1278_v16, %v1266_v9 }
0x1570   :  { %1334 = vrot.lane.b32.xlu2 %v3103_v19, %s2550_s25  ;;  %v1281_v22 = vpack.c.bf16 %v3103_v19, %v3098_v12 }
0x1572   :  { %1283 = vrot.lane.b32.xlu0 %v1281_v22, %s2550_s25 }
0x15ca   :  { %v1335_v35 = vpop.permute.xlu2 %1334 }
0x15da   :  { %v1333_v36 = vpop.permute.xlu1 %1332 }
0x15e4   :  { %v1284_v11 = vpop.permute.xlu0 %1283 }
0x15e5   :  { %1293 = vmatpush.bf16.msrb.mxu3 %v1284_v11 }
0x15e8   :  { %2271 = vmatmul.msk.bf16.vlgmr.msrb.gmra.mxu3 %vm427_vm0, %v3008_v45 }
0x166b   :  { %v1295_v53 = vpop.f32.mrf.mxu3 }
0x1673   :  { %v1297_v23 = vpop.f32.mrf.mxu3 }
0x1674   :  { %v1300_v24 = vpack.c.bf16 %v1297_v23, %v1295_v53 }
0x1676   :  { %2272 = vmatmul.msk.bf16.vlgmr.msrb.gmra.mxu0 %vm578_vm2, %v1300_v24 }
0x1677   :  { %1550 = vmatpush.bf16.msrb.mxu0 %v3038_v52 }
0x167b   :  { %1551 = vmatpush.bf16.msrb.mxu0 %v3044_v15 }
0x16f3   :  { %v1313_v25 = vpop.f32.mrf.mxu0 }
0x16f4   :  { %v1318_v26 = vadd.f32 %v1313_v25, %v504_v20 }
0x16f6   :  { %v1320_v27 = vsub.f32 0.0, %v1318_v26 }
0x16f8   :  { %v1322_v29 = vmul.f32 1.442695, %v1320_v27 }
0x16fa   :  { %2407 = vpow2.f32 %v1322_v29 }
0x16fb   :  { %v1315_v47 = vpop.f32.mrf.mxu0 }
0x16fc   :  { %v1319_v21 = vadd.f32 %v1315_v47, %v506_v30 }
0x16fe   :  { %v1321_v31 = vsub.f32 0.0, %v1319_v21 }
0x1700   :  { %v1324_v32 = vmul.f32 1.442695, %v1321_v31  ;;  %v2408_v43 = vpop.eup %2407 }
0x1701   :  { %v1326_v44 = vadd.f32 1.0, %v2408_v43 }
0x1702   :  { %2409 = vpow2.f32 %v1324_v32 }
0x1703   :  { %2411 = vrcp.f32 %v1326_v44 }
0x1708   :  { %v2410_v42 = vpop.eup %2409 }
0x1709   :  { %v1327_v33 = vadd.f32 1.0, %v2410_v42  ;;  %v2412_v57 = vpop.eup %2411 }
0x170a   :  { %v1338_v37 = vmul.f32 %v2412_v57, %v1333_v36  ;;  %v1387_v55 = vsub.f32 1.0, %v2412_v57  ;;  %v1385_v7 = vmul.f32 %v2412_v57, %v3098_v12 }
0x170b   :  { %2413 = vrcp.f32 %v1327_v33 }
0x1711   :  { %v2414_v34 = vpop.eup %2413 }
0x1712   :  { %v1339_v54 = vmul.f32 %v2414_v34, %v1335_v35  ;;  %v1388_v13 = vsub.f32 1.0, %v2414_v34  ;;  %v1386_v16 = vmul.f32 %v2414_v34, %v3103_v19  ;;  %v411_v19 = vld [vmem:[#allocation2 + $0x70] sm:$0xff] }
0x1714   :  { %v1340_v56 = vpack.c.bf16 %v1339_v54, %v1338_v37 }
0x1716   :  { %1348 = vmatpush.bf16.msra.mxu1 %v1340_v56 }
0x1719   :  { %2273 = vmatmul.msk.bf16.vlgmr.msra.gmra.mxu1 %vm427_vm0, %v3008_v45 }
0x1796   :  { %v1350_v58 = vpop.f32.mrf.mxu1 }
0x179e   :  { %v1352_v38 = vpop.f32.mrf.mxu1 }
0x179f   :  { %v1355_v39 = vpack.c.bf16 %v1352_v38, %v1350_v58 }
0x17a1   :  { %2274 = vmatmul.msk.bf16.vlgmr.msrb.gmra.mxu2 %vm578_vm2, %v1355_v39 }
0x17a2   :  { %1605 = vmatpush.bf16.msrb.mxu2 %v3084_v40 }
0x17a6   :  { %1606 = vmatpush.bf16.msrb.mxu2 %v3090_v41 }
0x1824   :  { %v1368_v8 = vpop.f32.mrf.mxu2 }
0x1825   :  { %1375 = vrot.lane.b32.xlu0 %v1368_v8, %s2549_s24 }
0x182c   :  { %v1370_v46 = vpop.f32.mrf.mxu2 }
0x182d   :  { %1377 = vrot.lane.b32.xlu1 %v1370_v46, %s2549_s24 }
0x1897   :  { %v1376_v48 = vpop.permute.xlu0 %1375 }
0x1898   :  { %v1381_v49 = vadd.f32 %v1376_v48, %v504_v20  ;;  %v509_v20 = vadd.f32 %v2984_v59, %v411_v19 }
0x189a   :  { %2415 = vtanh.f32 %v1381_v49 }
0x189f   :  { %v1378_v50 = vpop.permute.xlu1 %1377 }
0x18a0   :  { %v2416_v51 = vpop.eup %2415  ;;  %v1382_v17 = vadd.f32 %v1378_v50, %v506_v30  ;;  %v511_v30 = vadd.f32 %v2986_v60, %v412_v28 }
0x18a1   :  { %1391 = vrot.lane.b32.xlu2 %v2416_v51, %s2550_s25 }
0x18a2   :  { %2417 = vtanh.f32 %v1382_v17 }
0x18a8   :  { %v2418_v18 = vpop.eup %2417 }
0x18a9   :  { %1393 = vrot.lane.b32.xlu0 %v2418_v18, %s2550_s25 }
0x18fb   :  { %v1392_v5 = vpop.permute.xlu2 %1391 }
0x18fc   :  { %v1397_v1 = vmul.f32 %v1392_v5, %v1387_v55 }
0x18fe   :  { %v3127_v10 = vadd.f32 %v1397_v1, %v1385_v7 }
0x1900   :  { %1452 = vrot.lane.b32.xlu2 %v3127_v10, %s2550_s25 }
0x191b   :  { %v1394_v9 = vpop.permute.xlu0 %1393 }
0x191c   :  { %v1398_v22 = vmul.f32 %v1394_v9, %v1388_v13 }
0x191e   :  { %v3132_v11 = vadd.f32 %v1398_v22, %v1386_v16 }
0x1920   :  { %1454 = vrot.lane.b32.xlu0 %v3132_v11, %s2550_s25  ;;  %v1401_v53 = vpack.c.bf16 %v3132_v11, %v3127_v10 }
0x1922   :  { %1403 = vrot.lane.b32.xlu1 %v1401_v53, %s2550_s25 }
0x195a   :  { %v1453_v34 = vpop.permute.xlu2 %1452 }
0x1992   :  { %v1455_v35 = vpop.permute.xlu0 %1454 }
0x1994   :  { %v1404_v12 = vpop.permute.xlu1 %1403 }
0x1995   :  { %1413 = vmatpush.bf16.msra.mxu3 %v1404_v12 }
0x1998   :  { %2275 = vmatmul.msk.bf16.vlgmr.msra.gmra.mxu3 %vm427_vm0, %v3008_v45 }
0x1a1b   :  { %v1415_v23 = vpop.f32.mrf.mxu3 }
0x1a23   :  { %v1417_v24 = vpop.f32.mrf.mxu3 }
0x1a24   :  { %v1420_v6 = vpack.c.bf16 %v1417_v24, %v1415_v23 }
0x1a26   :  { %2276 = vmatmul.msk.bf16.vlgmr.msra.gmra.mxu0 %vm578_vm2, %v1420_v6 }
0x1a27   :  { %1670 = vmatpush.bf16.msra.mxu0 %v3038_v52 }
0x1a2b   :  { %1671 = vmatpush.bf16.msra.mxu0 %v3044_v15 }
0x1aa3   :  { %v1433_v25 = vpop.f32.mrf.mxu0 }
0x1aa4   :  { %v1438_v26 = vadd.f32 %v1433_v25, %v509_v20 }
0x1aa6   :  { %v1440_v27 = vsub.f32 0.0, %v1438_v26  ;;  %v414_v26 = vld [vmem:[#allocation2 + $0x88] sm:$0xff] }
0x1aa7   :  { %v516_v28 = vadd.f32 %v2990_v62, %v414_v26 }
0x1aa8   :  { %v1442_v29 = vmul.f32 1.442695, %v1440_v27 }
0x1aaa   :  { %2419 = vpow2.f32 %v1442_v29 }
0x1aab   :  { %v1435_v47 = vpop.f32.mrf.mxu0 }
0x1aac   :  { %v1439_v21 = vadd.f32 %v1435_v47, %v511_v30 }
0x1aae   :  { %v1441_v31 = vsub.f32 0.0, %v1439_v21 }
0x1ab0   :  { %v1444_v32 = vmul.f32 1.442695, %v1441_v31  ;;  %v2420_v43 = vpop.eup %2419 }
0x1ab1   :  { %v1446_v44 = vadd.f32 1.0, %v2420_v43 }
0x1ab2   :  { %2421 = vpow2.f32 %v1444_v32 }
0x1ab3   :  { %2423 = vrcp.f32 %v1446_v44 }
0x1ab8   :  { %v2422_v42 = vpop.eup %2421 }
0x1ab9   :  { %v1447_v33 = vadd.f32 1.0, %v2422_v42  ;;  %v2424_v59 = vpop.eup %2423 }
0x1aba   :  { %v1458_v36 = vmul.f32 %v2424_v59, %v1453_v34  ;;  %v1507_v1 = vsub.f32 1.0, %v2424_v59  ;;  %v1505_v9 = vmul.f32 %v2424_v59, %v3127_v10  ;;  %v413_v10 = vld [vmem:[#allocation2 + $0x80] sm:$0xff] }
0x1abb   :  { %2425 = vrcp.f32 %v1447_v33  ;;  %v514_v6 = vadd.f32 %v2988_v61, %v413_v10 }
0x1ac1   :  { %v2426_v57 = vpop.eup %2425 }
0x1ac2   :  { %v1459_v37 = vmul.f32 %v2426_v57, %v1455_v35  ;;  %v1508_v17 = vsub.f32 1.0, %v2426_v57  ;;  %v1506_v55 = vmul.f32 %v2426_v57, %v3132_v11 }
0x1ac4   :  { %v1460_v54 = vpack.c.bf16 %v1459_v37, %v1458_v36 }
0x1ac6   :  { %1468 = vmatpush.bf16.msrb.mxu1 %v1460_v54 }
0x1ac9   :  { %2277 = vmatmul.msk.bf16.vlgmr.msrb.gmra.mxu1 %vm427_vm0, %v3008_v45 }
0x1b46   :  { %v1470_v60 = vpop.f32.mrf.mxu1 }
0x1b4e   :  { %v1472_v56 = vpop.f32.mrf.mxu1 }
0x1b4f   :  { %v1475_v58 = vpack.c.bf16 %v1472_v56, %v1470_v60 }
0x1b51   :  { %2278 = vmatmul.msk.bf16.vlgmr.msra.gmra.mxu2 %vm578_vm2, %v1475_v58 }
0x1b52   :  { %1725 = vmatpush.bf16.msra.mxu2 %v3084_v40 }
0x1b56   :  { %1726 = vmatpush.bf16.msra.mxu2 %v3090_v41 }
0x1bd4   :  { %v1488_v38 = vpop.f32.mrf.mxu2 }
0x1bd5   :  { %1495 = vrot.lane.b32.xlu1 %v1488_v38, %s2549_s24 }
0x1bdc   :  { %v1490_v39 = vpop.f32.mrf.mxu2 }
0x1bdd   :  { %1497 = vrot.lane.b32.xlu2 %v1490_v39, %s2549_s24 }
0x1c37   :  { %v1498_v8 = vpop.permute.xlu2 %1497 }
0x1c38   :  { %v1502_v46 = vadd.f32 %v1498_v8, %v511_v30 }
0x1c3a   :  { %2427 = vtanh.f32 %v1502_v46 }
0x1c40   :  { %v2428_v48 = vpop.eup %2427 }
0x1c41   :  { %1513 = vrot.lane.b32.xlu1 %v2428_v48, %s2550_s25 }
0x1c47   :  { %v1496_v49 = vpop.permute.xlu1 %1495 }
0x1c48   :  { %v1501_v50 = vadd.f32 %v1496_v49, %v509_v20 }
0x1c4a   :  { %2429 = vtanh.f32 %v1501_v50 }
0x1c50   :  { %v2430_v51 = vpop.eup %2429 }
0x1c51   :  { %1511 = vrot.lane.b32.xlu0 %v2430_v51, %s2550_s25 }
0x1cb3   :  { %v1514_v18 = vpop.permute.xlu1 %1513 }
0x1cb4   :  { %v1518_v5 = vmul.f32 %v1514_v18, %v1508_v17 }
0x1cb6   :  { %v3156_v7 = vadd.f32 %v1518_v5, %v1506_v55 }
0x1cb8   :  { %1574 = vrot.lane.b32.xlu1 %v3156_v7, %s2550_s25 }
0x1cc3   :  { %v1512_v13 = vpop.permute.xlu0 %1511 }
0x1cc4   :  { %v1517_v16 = vmul.f32 %v1512_v13, %v1507_v1 }
0x1cc6   :  { %v3161_v22 = vadd.f32 %v1517_v16, %v1505_v9 }
0x1cc8   :  { %1572 = vrot.lane.b32.xlu0 %v3161_v22, %s2550_s25  ;;  %v1521_v53 = vpack.c.bf16 %v3156_v7, %v3161_v22 }
0x1cca   :  { %1523 = vrot.lane.b32.xlu2 %v1521_v53, %s2550_s25 }
0x1d24   :  { %v1524_v11 = vpop.permute.xlu2 %1523 }
0x1d25   :  { %1533 = vmatpush.bf16.msrb.mxu3 %v1524_v11 }
0x1d28   :  { %2279 = vmatmul.msk.bf16.vlgmr.msrb.gmra.mxu3 %vm427_vm0, %v3008_v45 }
0x1d2a   :  { %v1575_v33 = vpop.permute.xlu1 %1574 }
0x1d3a   :  { %v1573_v59 = vpop.permute.xlu0 %1572 }
0x1dab   :  { %v1535_v12 = vpop.f32.mrf.mxu3 }
0x1db3   :  { %v1537_v23 = vpop.f32.mrf.mxu3 }
0x1db4   :  { %v1540_v24 = vpack.c.bf16 %v1537_v23, %v1535_v12 }
0x1db6   :  { %2280 = vmatmul.msk.bf16.vlgmr.msrb.gmra.mxu0 %vm578_vm2, %v1540_v24 }
0x1db7   :  { %1790 = vmatpush.bf16.msrb.mxu0 %v3038_v52 }
0x1dbb   :  { %1791 = vmatpush.bf16.msrb.mxu0 %v3044_v15 }
0x1e33   :  { %v1553_v19 = vpop.f32.mrf.mxu0 }
0x1e34   :  { %v1558_v20 = vadd.f32 %v1553_v19, %v514_v6 }
0x1e36   :  { %v1560_v25 = vsub.f32 0.0, %v1558_v20 }
0x1e38   :  { %v1562_v27 = vmul.f32 1.442695, %v1560_v25 }
0x1e3a   :  { %2431 = vpow2.f32 %v1562_v27 }
0x1e3b   :  { %v1555_v29 = vpop.f32.mrf.mxu0 }
0x1e3c   :  { %v1559_v30 = vadd.f32 %v1555_v29, %v516_v28 }
0x1e3e   :  { %v1561_v47 = vsub.f32 0.0, %v1559_v30 }
0x1e40   :  { %v1564_v21 = vmul.f32 1.442695, %v1561_v47  ;;  %v2432_v31 = vpop.eup %2431 }
0x1e41   :  { %v1566_v32 = vadd.f32 1.0, %v2432_v31 }
0x1e42   :  { %2433 = vpow2.f32 %v1564_v21 }
0x1e43   :  { %2435 = vrcp.f32 %v1566_v32 }
0x1e48   :  { %v2434_v43 = vpop.eup %2433 }
0x1e49   :  { %v1567_v44 = vadd.f32 1.0, %v2434_v43  ;;  %v2436_v61 = vpop.eup %2435 }
0x1e4a   :  { %v1578_v57 = vmul.f32 %v2436_v61, %v1573_v59  ;;  %v1627_v48 = vsub.f32 1.0, %v2436_v61  ;;  %v1625_v50 = vmul.f32 %v2436_v61, %v3161_v22 }
0x1e4b   :  { %2437 = vrcp.f32 %v1567_v44 }
0x1e51   :  { %v2438_v42 = vpop.eup %2437 }
0x1e52   :  { %v1579_v34 = vmul.f32 %v2438_v42, %v1575_v33  ;;  %v1628_v18 = vsub.f32 1.0, %v2438_v42  ;;  %v1626_v5 = vmul.f32 %v2438_v42, %v3156_v7  ;;  %v415_v7 = vld [vmem:[#allocation2 + $0x90] sm:$0xff] }
0x1e53   :  { %v519_v12 = vadd.f32 %v2992_v14, %v415_v7 }
0x1e54   :  { %v1580_v35 = vpack.c.bf16 %v1579_v34, %v1578_v57 }
0x1e56   :  { %1588 = vmatpush.bf16.msra.mxu1 %v1580_v35 }
0x1e59   :  { %2281 = vmatmul.msk.bf16.vlgmr.msra.gmra.mxu1 %vm427_vm0, %v3008_v45 }
0x1ed6   :  { %v1590_v62 = vpop.f32.mrf.mxu1 }
0x1ede   :  { %v1592_v36 = vpop.f32.mrf.mxu1 }
0x1edf   :  { %v1595_v37 = vpack.c.bf16 %v1592_v36, %v1590_v62 }
0x1ee1   :  { %2282 = vmatmul.msk.bf16.vlgmr.msrb.gmra.mxu2 %vm578_vm2, %v1595_v37 }
0x1ee2   :  { %1845 = vmatpush.bf16.msrb.mxu2 %v3084_v40 }
0x1ee6   :  { %1846 = vmatpush.bf16.msrb.mxu2 %v3090_v41 }
0x1f64   :  { %v1608_v54 = vpop.f32.mrf.mxu2 }
0x1f65   :  { %1615 = vrot.lane.b32.xlu2 %v1608_v54, %s2549_s24 }
0x1f6c   :  { %v1610_v60 = vpop.f32.mrf.mxu2 }
0x1f6d   :  { %1617 = vrot.lane.b32.xlu0 %v1610_v60, %s2549_s24 }
0x1fbf   :  { %v1616_v56 = vpop.permute.xlu2 %1615 }
0x1fc0   :  { %v1621_v58 = vadd.f32 %v1616_v56, %v514_v6  ;;  %v416_v6 = vld [vmem:[#allocation2 + $0x98] sm:$0xff] }
0x1fc1   :  { %v521_v20 = vadd.f32 %v2994_v63, %v416_v6 }
0x1fc2   :  { %2439 = vtanh.f32 %v1621_v58 }
0x1fc8   :  { %v2440_v38 = vpop.eup %2439 }
0x1fc9   :  { %1631 = vrot.lane.b32.xlu1 %v2440_v38, %s2550_s25 }
0x1fdf   :  { %v1618_v39 = vpop.permute.xlu0 %1617 }
0x1fe0   :  { %v1622_v8 = vadd.f32 %v1618_v39, %v516_v28 }
0x1fe2   :  { %2441 = vtanh.f32 %v1622_v8 }
0x1fe8   :  { %v2442_v46 = vpop.eup %2441 }
0x1fe9   :  { %1633 = vrot.lane.b32.xlu2 %v2442_v46, %s2550_s25 }
0x203b   :  { %v1632_v49 = vpop.permute.xlu1 %1631 }
0x203c   :  { %v1637_v51 = vmul.f32 %v1632_v49, %v1627_v48 }
0x203e   :  { %v3185_v17 = vadd.f32 %v1637_v51, %v1625_v50 }
0x2040   :  { %1692 = vrot.lane.b32.xlu1 %v3185_v17, %s2550_s25 }
0x2043   :  { %v1634_v55 = vpop.permute.xlu2 %1633 }
0x2044   :  { %v1638_v1 = vmul.f32 %v1634_v55, %v1628_v18  ;;  %v417_v18 = vld [vmem:[#allocation2 + $0xa0] sm:$0xff] }
0x2045   :  { %v524_v55 = vadd.f32 %v2996_v0, %v417_v18 }
0x2046   :  { %v3190_v13 = vadd.f32 %v1638_v1, %v1626_v5 }
0x2048   :  { %1694 = vrot.lane.b32.xlu2 %v3190_v13, %s2550_s25  ;;  %v1641_v9 = vpack.c.bf16 %v3190_v13, %v3185_v17 }
0x204a   :  { %1643 = vrot.lane.b32.xlu0 %v1641_v9, %s2550_s25  ;;  %v418_v9 = vld [vmem:[#allocation2 + $0xa8] sm:$0xff] }
0x20a2   :  { %v1695_v21 = vpop.permute.xlu2 %1694 }
0x20b2   :  { %v1693_v31 = vpop.permute.xlu1 %1692 }
0x20bc   :  { %v1644_v16 = vpop.permute.xlu0 %1643 }
0x20bd   :  { %1653 = vmatpush.bf16.msra.mxu3 %v1644_v16 }
0x20c0   :  { %2283 = vmatmul.msk.bf16.vlgmr.msra.gmra.mxu3 %vm427_vm0, %v3008_v45 }
0x2143   :  { %v1655_v22 = vpop.f32.mrf.mxu3 }
0x214b   :  { %v1657_v53 = vpop.f32.mrf.mxu3 }
0x214c   :  { %v1660_v11 = vpack.c.bf16 %v1657_v53, %v1655_v22  ;;  %v526_v22 = vadd.f32 %v2998_v2, %v418_v9 }
0x214e   :  { %2284 = vmatmul.msk.bf16.vlgmr.msra.gmra.mxu0 %vm578_vm2, %v1660_v11 }
0x214f   :  { %1910 = vmatpush.bf16.msra.mxu0 %v3038_v52 }
0x2153   :  { %1911 = vmatpush.bf16.msra.mxu0 %v3044_v15 }
0x21cb   :  { %v1673_v23 = vpop.f32.mrf.mxu0 }
0x21cc   :  { %v1678_v24 = vadd.f32 %v1673_v23, %v519_v12 }
0x21ce   :  { %v1680_v10 = vsub.f32 0.0, %v1678_v24 }
0x21d0   :  { %v1682_v19 = vmul.f32 1.442695, %v1680_v10 }
0x21d2   :  { %2443 = vpow2.f32 %v1682_v19 }
0x21d3   :  { %v1675_v25 = vpop.f32.mrf.mxu0 }
0x21d4   :  { %v1679_v26 = vadd.f32 %v1675_v25, %v521_v20 }
0x21d6   :  { %v1681_v27 = vsub.f32 0.0, %v1679_v26 }
0x21d8   :  { %v1684_v28 = vmul.f32 1.442695, %v1681_v27  ;;  %v2444_v29 = vpop.eup %2443 }
0x21d9   :  { %v1686_v52 = vadd.f32 1.0, %v2444_v29 }
0x21da   :  { %2445 = vpow2.f32 %v1684_v28 }
0x21db   :  { %2447 = vrcp.f32 %v1686_v52 }
0x21e0   :  { %v2446_v30 = vpop.eup %2445 }
0x21e1   :  { %v1687_v15 = vadd.f32 1.0, %v2446_v30  ;;  %v2448_v14 = vpop.eup %2447 }
0x21e2   :  { %v1698_v32 = vmul.f32 %v2448_v14, %v1693_v31  ;;  %v1745_v54 = vmul.f32 %v2448_v14, %v3185_v17 }
0x21e3   :  { %2449 = vrcp.f32 %v1687_v15 }
0x21e9   :  { %v2450_v47 = vpop.eup %2449 }
0x21ea   :  { %v1699_v43 = vmul.f32 %v2450_v47, %v1695_v21  ;;  %v1748_v58 = vsub.f32 1.0, %v2450_v47  ;;  %v1746_v39 = vmul.f32 %v2450_v47, %v3190_v13 }
0x21ec   :  { %v1700_v44 = vpack.c.bf16 %v1699_v43, %v1698_v32 }
0x21ee   :  { %1708 = vmatpush.bf16.msrb.mxu1 %v1700_v44 }
0x21f1   :  { %2285 = vmatmul.msk.bf16.vlgmr.msrb.gmra.mxu1 %vm427_vm0, %v3008_v45 }
0x226e   :  { %v1710_v63 = vpop.f32.mrf.mxu1 }
0x2276   :  { %v1712_v61 = vpop.f32.mrf.mxu1 }
0x2277   :  { %v1715_v42 = vpack.c.bf16 %v1712_v61, %v1710_v63 }
0x2279   :  { %2286 = vmatmul.msk.bf16.vlgmr.msra.gmra.mxu2 %vm578_vm2, %v1715_v42 }
0x227a   :  { %1965 = vmatpush.bf16.msra.mxu2 %v3084_v40  ;;  %v1747_v40 = vsub.f32 1.0, %v2448_v14 }
0x227e   :  { %1966 = vmatpush.bf16.msra.mxu2 %v3090_v41 }
0x22fc   :  { %v1728_v33 = vpop.f32.mrf.mxu2 }
0x22fd   :  { %1735 = vrot.lane.b32.xlu0 %v1728_v33, %s2549_s24 }
0x2304   :  { %v1730_v59 = vpop.f32.mrf.mxu2 }
0x2305   :  { %1737 = vrot.lane.b32.xlu1 %v1730_v59, %s2549_s24 }
0x236f   :  { %v1736_v57 = vpop.permute.xlu0 %1735 }
0x2370   :  { %v1741_v34 = vadd.f32 %v1736_v57, %v519_v12 }
0x2372   :  { %2451 = vtanh.f32 %v1741_v34 }
0x2377   :  { %v1738_v35 = vpop.permute.xlu1 %1737 }
0x2378   :  { %v2452_v62 = vpop.eup %2451  ;;  %v1742_v36 = vadd.f32 %v1738_v35, %v521_v20 }
0x2379   :  { %1751 = vrot.lane.b32.xlu2 %v2452_v62, %s2550_s25 }
0x237a   :  { %2453 = vtanh.f32 %v1742_v36 }
0x2380   :  { %v2454_v37 = vpop.eup %2453 }
0x2381   :  { %1753 = vrot.lane.b32.xlu0 %v2454_v37, %s2550_s25  ;;  %v2492_v37 = vld [vmem:[%s3291_s2 + $0x28] sm:$0xff]  ;;  %s2551_s2 = smov 80  }
0x23d3   :  { %v1752_v41 = vpop.permute.xlu2 %1751 }
0x23d4   :  { %v1757_v60 = vmul.f32 %v1752_v41, %v1747_v40 }
0x23d6   :  { %v3214_v56 = vadd.f32 %v1757_v60, %v1745_v54  ;;  %v419_v60 = vld [vmem:[#allocation2 + $0xb0] sm:$0xff] }
0x23d8   :  { %1812 = vrot.lane.b32.xlu2 %v3214_v56, %s2550_s25 }
0x23f3   :  { %v1754_v38 = vpop.permute.xlu0 %1753 }
0x23f4   :  { %v1758_v8 = vmul.f32 %v1754_v38, %v1748_v58 }
0x23f6   :  { %v1760_v46 = vadd.f32 %v1758_v8, %v1746_v39  ;;  %v420_v8 = vld [vmem:[#allocation2 + $0xb8] sm:$0xff] }
0x23f8   :  { %1814 = vrot.lane.b32.xlu0 %v1760_v46, %s2550_s25  ;;  %v1761_v48 = vpack.c.bf16 %v1760_v46, %v3214_v56 }
0x23fa   :  { %1763 = vrot.lane.b32.xlu1 %v1761_v48, %s2550_s25  ;;  %v531_v48 = vadd.f32 %v3002_v4, %v420_v8 }
0x2432   :  { %v1813_v20 = vpop.permute.xlu2 %1812 }
0x246a   :  { %v1815_v25 = vpop.permute.xlu0 %1814 }
0x246c   :  { %v1764_v49 = vpop.permute.xlu1 %1763 }
0x246d   :  { %1773 = vmatpush.bf16.msrb.mxu3 %v1764_v49 }
0x2470   :  { %2287 = vmatmul.msk.bf16.vlgmr.msrb.gmra.mxu3 %vm427_vm0, %v3008_v45 }
0x24f3   :  { %v1775_v50 = vpop.f32.mrf.mxu3 }
0x24fb   :  { %v1777_v51 = vpop.f32.mrf.mxu3 }
0x24fc   :  { %v1780_v17 = vpack.c.bf16 %v1777_v51, %v1775_v50 }
0x24fe   :  { %2288 = vmatmul.msk.bf16.vlgmr.msrb.gmra.mxu0 %vm578_vm2, %v1780_v17 }
0x257b   :  { %v1793_v5 = vpop.f32.mrf.mxu0 }
0x257c   :  { %v1798_v1 = vadd.f32 %v1793_v5, %v524_v55 }
0x257e   :  { %v1800_v13 = vsub.f32 0.0, %v1798_v1 }
0x2580   :  { %v1802_v16 = vmul.f32 1.442695, %v1800_v13 }
0x2582   :  { %2455 = vpow2.f32 %v1802_v16 }
0x2583   :  { %v1795_v53 = vpop.f32.mrf.mxu0 }
0x2584   :  { %v1799_v11 = vadd.f32 %v1795_v53, %v526_v22 }
0x2586   :  { %v1801_v7 = vsub.f32 0.0, %v1799_v11 }
0x2588   :  { %v1804_v12 = vmul.f32 1.442695, %v1801_v7  ;;  %v2456_v23 = vpop.eup %2455 }
0x2589   :  { %v1806_v24 = vadd.f32 1.0, %v2456_v23 }
0x258a   :  { %2457 = vpow2.f32 %v1804_v12 }
0x258b   :  { %2459 = vrcp.f32 %v1806_v24 }
0x2590   :  { %v2458_v10 = vpop.eup %2457 }
0x2591   :  { %v1807_v6 = vadd.f32 1.0, %v2458_v10  ;;  %v2460_v0 = vpop.eup %2459 }
0x2592   :  { %v1818_v26 = vmul.f32 %v2460_v0, %v1813_v20  ;;  %v1867_v33 = vsub.f32 1.0, %v2460_v0  ;;  %v1865_v57 = vmul.f32 %v2460_v0, %v3214_v56  ;;  %v529_v56 = vadd.f32 %v3000_v3, %v419_v60 }
0x2593   :  { %2461 = vrcp.f32 %v1807_v6 }
0x2599   :  { %v2462_v19 = vpop.eup %2461 }
0x259a   :  { %v1819_v27 = vmul.f32 %v2462_v19, %v1815_v25  ;;  %v1868_v43 = vsub.f32 1.0, %v2462_v19  ;;  %v1866_v63 = vmul.f32 %v2462_v19, %v1760_v46 }
0x259c   :  { %v1820_v28 = vpack.c.bf16 %v1819_v27, %v1818_v26 }
0x259e   :  { %1828 = vmatpush.bf16.msra.mxu1 %v1820_v28 }
0x25a1   :  { %2289 = vmatmul.msk.bf16.vlgmr.msra.gmra.mxu1 %vm427_vm0, %v3008_v45 }
0x261e   :  { %v1830_v2 = vpop.f32.mrf.mxu1 }
0x2626   :  { %v1832_v29 = vpop.f32.mrf.mxu1 }
0x2627   :  { %v1835_v52 = vpack.c.bf16 %v1832_v29, %v1830_v2 }
0x2629   :  { %2290 = vmatmul.msk.bf16.vlgmr.msrb.gmra.mxu2 %vm578_vm2, %v1835_v52 }
0x26ac   :  { %v1848_v30 = vpop.f32.mrf.mxu2 }
0x26ad   :  { %1855 = vrot.lane.b32.xlu1 %v1848_v30, %s2549_s24 }
0x26b4   :  { %v1850_v15 = vpop.f32.mrf.mxu2 }
0x26b5   :  { %1857 = vrot.lane.b32.xlu2 %v1850_v15, %s2549_s24 }
0x270f   :  { %v1858_v14 = vpop.permute.xlu2 %1857 }
0x2710   :  { %v1862_v47 = vadd.f32 %v1858_v14, %v526_v22 }
0x2712   :  { %2463 = vtanh.f32 %v1862_v47 }
0x2718   :  { %v2464_v21 = vpop.eup %2463 }
0x2719   :  { %1873 = vrot.lane.b32.xlu1 %v2464_v21, %s2550_s25 }
0x271f   :  { %v1856_v31 = vpop.permute.xlu1 %1855 }
0x2720   :  { %v1861_v32 = vadd.f32 %v1856_v31, %v524_v55 }
0x2722   :  { %2465 = vtanh.f32 %v1861_v32 }
0x2728   :  { %v2466_v45 = vpop.eup %2465 }
0x2729   :  { %1871 = vrot.lane.b32.xlu0 %v2466_v45, %s2550_s25 }
0x278b   :  { %v1874_v44 = vpop.permute.xlu1 %1873 }
0x278c   :  { %v1878_v61 = vmul.f32 %v1874_v44, %v1868_v43 }
0x278e   :  { %v3234_v42 = vadd.f32 %v1878_v61, %v1866_v63 }
0x2790   :  { %1934 = vrot.lane.b32.xlu1 %v3234_v42, %s2550_s25 }
0x279b   :  { %v1872_v59 = vpop.permute.xlu0 %1871 }
0x279c   :  { %v1877_v34 = vmul.f32 %v1872_v59, %v1867_v33 }
0x279e   :  { %v1879_v35 = vadd.f32 %v1877_v34, %v1865_v57 }
0x27a0   :  { %1932 = vrot.lane.b32.xlu0 %v1879_v35, %s2550_s25  ;;  %v1881_v62 = vpack.c.bf16 %v3234_v42, %v1879_v35 }
0x27a2   :  { %1883 = vrot.lane.b32.xlu2 %v1881_v62, %s2550_s25 }
0x27fc   :  { %v1884_v36 = vpop.permute.xlu2 %1883 }
0x27fd   :  { %1893 = vmatpush.bf16.msra.mxu3 %v1884_v36 }
0x2800   :  { %2291 = vmatmul.msk.bf16.vlgmr.msra.gmra.mxu3 %vm427_vm0, %v2492_v37 }
0x2802   :  { %v1935_v9 = vpop.permute.xlu1 %1934 }
0x2812   :  { %v1933_v16 = vpop.permute.xlu0 %1932 }
0x2883   :  { %v1895_v40 = vpop.f32.mrf.mxu3 }
0x288b   :  { %v1897_v41 = vpop.f32.mrf.mxu3 }
0x288c   :  { %v1900_v54 = vpack.c.bf16 %v1897_v41, %v1895_v40  ;;  %v2011_v41 = vld [vmem:[%s3293_s4] sm:$0xff] }
0x288e   :  { %2292 = vmatmul.msk.bf16.vlgmr.msra.gmra.mxu0 %vm578_vm2, %v1900_v54 }
0x290b   :  { %v1913_v58 = vpop.f32.mrf.mxu0 }
0x290c   :  { %v1918_v38 = vadd.f32 %v1913_v58, %v529_v56 }
0x290e   :  { %v1920_v39 = vsub.f32 0.0, %v1918_v38 }
0x2910   :  { %v1922_v46 = vmul.f32 1.442695, %v1920_v39 }
0x2912   :  { %2467 = vpow2.f32 %v1922_v46  ;;  %v2013_v46 = vld [vmem:[%s3293_s4 + $0x10] sm:$0xff] }
0x2913   :  { %v1915_v49 = vpop.f32.mrf.mxu0 }
0x2914   :  { %v1919_v50 = vadd.f32 %v1915_v49, %v531_v48 }
0x2916   :  { %v1921_v51 = vsub.f32 0.0, %v1919_v50 }
0x2918   :  { %v1924_v17 = vmul.f32 1.442695, %v1921_v51  ;;  %v2468_v18 = vpop.eup %2467 }
0x2919   :  { %v1926_v55 = vadd.f32 1.0, %v2468_v18 }
0x291a   :  { %2469 = vpow2.f32 %v1924_v17 }
0x291b   :  { %2471 = vrcp.f32 %v1926_v55 }
0x2920   :  { %v2470_v5 = vpop.eup %2469 }
0x2921   :  { %v1927_v1 = vadd.f32 1.0, %v2470_v5  ;;  %v2472_v3 = vpop.eup %2471 }
0x2922   :  { %v1938_v22 = vmul.f32 %v2472_v3, %v1933_v16  ;;  %v1987_v26 = vsub.f32 1.0, %v2472_v3  ;;  %v1985_v28 = vmul.f32 %v2472_v3, %v1879_v35 }
0x2923   :  { %2473 = vrcp.f32 %v1927_v1  ;;  %v2015_v1 = vld [vmem:[%s3293_s4 + $0x20] sm:$0xff] }
0x2924   :  { %v2056_v3 = vperm.slane %v2015_v1, 0 }
0x2929   :  { %v2474_v13 = vpop.eup %2473 }
0x292a   :  { %v1939_v53 = vmul.f32 %v2474_v13, %v1935_v9  ;;  %v1988_v30 = vsub.f32 1.0, %v2474_v13  ;;  %v1986_v47 = vmul.f32 %v2474_v13, %v3234_v42 }
0x292c   :  { %v1940_v11 = vpack.c.bf16 %v1939_v53, %v1938_v22 }
0x292e   :  { %1948 = vmatpush.bf16.msrb.mxu1 %v1940_v11 }
0x2931   :  { %2293 = vmatmul.msk.bf16.vlgmr.msrb.gmra.mxu1 %vm427_vm0, %v2492_v37 }
0x29ae   :  { %v1950_v4 = vpop.f32.mrf.mxu1 }
0x29b6   :  { %v1952_v7 = vpop.f32.mrf.mxu1 }
0x29b7   :  { %v1955_v12 = vpack.c.bf16 %v1952_v7, %v1950_v4 }
0x29b9   :  { %2294 = vmatmul.msk.bf16.vlgmr.msra.gmra.mxu2 %vm578_vm2, %v1955_v12 }
0x2a3c   :  { %v1968_v23 = vpop.f32.mrf.mxu2 }
0x2a3d   :  { %1975 = vrot.lane.b32.xlu2 %v1968_v23, %s2549_s24 }
0x2a44   :  { %v1970_v24 = vpop.f32.mrf.mxu2 }
0x2a45   :  { %1977 = vrot.lane.b32.xlu0 %v1970_v24, %s2549_s24 }
0x2a97   :  { %v1976_v10 = vpop.permute.xlu2 %1975 }
0x2a98   :  { %v1981_v6 = vadd.f32 %v1976_v10, %v529_v56  ;;  %v2012_v56 = vld [vmem:[%s3293_s4 + $0x8] sm:$0xff] }
0x2a9a   :  { %2475 = vtanh.f32 %v1981_v6 }
0x2aa0   :  { %v2476_v0 = vpop.eup %2475 }
0x2aa1   :  { %1991 = vrot.lane.b32.xlu1 %v2476_v0, %s2550_s25 }
0x2ab7   :  { %v1978_v19 = vpop.permute.xlu0 %1977 }
0x2ab8   :  { %v1982_v20 = vadd.f32 %v1978_v19, %v531_v48  ;;  %v2014_v48 = vld [vmem:[%s3293_s4 + $0x18] sm:$0xff] }
0x2ab9   :  { %v2016_v49 = vpack.c.bf16 %v2014_v48, %v2013_v46 }
0x2aba   :  { %2477 = vtanh.f32 %v1982_v20 }
0x2abb   :  { %2070 = vmatpush.bf16.msrb.mxu3 %v2016_v49 }
0x2ac0   :  { %v2478_v25 = vpop.eup %2477 }
0x2ac1   :  { %1993 = vrot.lane.b32.xlu2 %v2478_v25, %s2550_s25 }
0x2b13   :  { %v1992_v27 = vpop.permute.xlu1 %1991 }
0x2b14   :  { %v1997_v2 = vmul.f32 %v1992_v27, %v1987_v26 }
0x2b16   :  { %v1999_v29 = vadd.f32 %v1997_v2, %v1985_v28 }
0x2b18   :  { %v2019_v52 = vand.u32 2147483647, %v1999_v29  ;;  %v2017_v34 = vmax.f32 %v1999_v29, 0.0 }
0x2b1a   :  { %v2021_v15 = vsub.f32 0.0, %v2019_v52 }
0x2b1b   :  { %v1994_v14 = vpop.permute.xlu2 %1993 }
0x2b1c   :  { %v1998_v21 = vmul.f32 %v1994_v14, %v1988_v30  ;;  %v2023_v31 = vmul.f32 1.442695, %v2021_v15 }
0x2b1e   :  { %v2000_v32 = vadd.f32 %v1998_v21, %v1986_v47  ;;  %2479 = vpow2.f32 %v2023_v31 }
0x2b20   :  { %v2020_v45 = vand.u32 2147483647, %v2000_v32  ;;  %v2018_v36 = vmax.f32 %v2000_v32, 0.0 }
0x2b22   :  { %v2022_v43 = vsub.f32 0.0, %v2020_v45 }
0x2b24   :  { %v2480_v44 = vpop.eup %2479  ;;  %v2025_v63 = vmul.f32 1.442695, %v2022_v43 }
0x2b25   :  { %v2027_v61 = vadd.f32 1.0, %v2480_v44 }
0x2b26   :  { %2481 = vpow2.f32 %v2025_v63 }
0x2b27   :  { %2483 = vlog2.f32 %v2027_v61 }
0x2b2c   :  { %v2482_v33 = vpop.eup %2481 }
0x2b2d   :  { %v2484_v59 = vpop.eup %2483  ;;  %v2028_v57 = vadd.f32 1.0, %v2482_v33 }
0x2b2e   :  { %v2030_v35 = vmul.f32 0.6931472, %v2484_v59 }
0x2b2f   :  { %2485 = vlog2.f32 %v2028_v57 }
0x2b30   :  { %v2033_v62 = vadd.f32 %v2030_v35, %v2017_v34 }
0x2b32   :  { %2037 = vrot.lane.b32.xlu0 %v2033_v62, %s2551_s2 }
0x2b35   :  { %v2486_v42 = vpop.eup %2485 }
0x2b36   :  { %v2032_v37 = vmul.f32 0.6931472, %v2486_v42 }
0x2b38   :  { %v2034_v40 = vadd.f32 %v2032_v37, %v2018_v36 }
0x2b3a   :  { %2039 = vrot.lane.b32.xlu1 %v2034_v40, %s2551_s2 }
0x2ba4   :  { %v2038_v54 = vpop.permute.xlu0 %2037 }
0x2ba5   :  { %v2043_v60 = vmul.f32 %v2038_v54, %v2011_v41 }
0x2ba7   :  { %2047 = vrot.lane.b32.xlu2 %v2043_v60, %s2552_s15 }
0x2bac   :  { %v2040_v58 = vpop.permute.xlu1 %2039 }
0x2bad   :  { %v2044_v38 = vmul.f32 %v2040_v58, %v2012_v56 }
0x2baf   :  { %2049 = vrot.lane.b32.xlu0 %v2044_v38, %s2552_s15  ;;  %2003 = vrot.lane.b32.xlu2 %v1999_v29, %s2550_s25 }
0x2bb7   :  { %2005 = vrot.lane.b32.xlu0 %v2000_v32, %s2550_s25 }
0x2c01   :  { %v2048_v39 = vpop.permute.xlu2 %2047 }
0x2c02   :  { %v2053_v51 = vadd.f32 %v2048_v39, %v1999_v29 }
0x2c09   :  { %v2004_v8 = vpop.permute.xlu2 %2003 }
0x2c0a   :  { %2009 = vst.msk [vmem:[#allocation5] sm:$0xff] %vm578_vm2, %v2004_v8 }
0x2c21   :  { %v2050_v50 = vpop.permute.xlu0 %2049 }
0x2c22   :  { %v2054_v17 = vadd.f32 %v2050_v50, %v2000_v32 }
0x2c24   :  { %v2055_v18 = vpack.c.bf16 %v2054_v17, %v2053_v51 }
0x2c26   :  { %2058 = vrot.lane.b32.xlu1 %v2055_v18, %s2550_s25 }
0x2c29   :  { %v2006_v55 = vpop.permute.xlu0 %2005 }
0x2c2a   :  { %2010 = vst.msk [vmem:[#allocation5 + $0x8] sm:$0xff] %vm578_vm2, %v2006_v55 }
0x2c2b   :  { %2092 = dma.vmem_to_hbm [thread:$0]  %s2085_s22, 256, %s2087_s28, [#allocation4], %s2546_s26, %s2546_s26, %s2547_s27  }
0x2c98   :  { %v2059_v5 = vpop.permute.xlu1 %2058 }
0x2c99   :  { %2295 = vmatmul.msk.bf16.vlgmr.msrb.gmra.mxu3 %vm427_vm0, %v2059_v5 }
0x2d1c   :  { %v2072_v13 = vpop.f32.mrf.mxu3 }
0x2d1d   :  { %v2073_v9 = vadd.f32 %v2072_v13, %v2056_v3 }
0x2d1f   :  { %2078 = vst.msk [vmem:[%s3295_s6] sm:$0xff] %vm2077_vm3, %v2073_v9 }
0x2d24   :  { %v2074_v16 = vpop.f32.mrf.mxu3 }
0x2d25   :  { %v2075_v22 = vadd.f32 %v2074_v16, %v2056_v3 }
0x2d27   :  { %2079 = vst.msk [vmem:[%s3295_s6 + $0x8] sm:$0xff] %vm2077_vm3, %v2075_v22 }
0x2d28   :  { %2543 = dma.done.wait [#allocation4], 256  }
0x2d29   :  { %2544 = vsyncadd [#allocation4], 4294967040 }
0x2d2a   :  { %2101 = vsyncpa [#allocation3], 1 }
0x2d2b   :  { %2102 = vsyncpa [#allocation4], 1 }

</bundles_post_ra>
